<compile_context>
chip_gen: v5e
topology: v5e:2x2
jax: 0.10.0
libtpu: 0.0.40
codegen_flags: <defaults>
</compile_context>

<pallas_src>
import functools

import numpy as np
import jax
import jax.numpy as jnp
from jax import lax
from jax.experimental import pallas as pl
from jax.experimental.pallas import tpu as pltpu

_NEG = -1e30
_LOG_2PI = float(np.log(2.0 * np.pi))
_HIGH = jax.lax.Precision.HIGHEST
_TJC = 16                      # inner j-chunk (sublane-aligned) for the pairwise kernel


def _softplus(x):
    # numerically stable softplus, shared by the kernels and the reference
    return jnp.maximum(x, 0.0) + jnp.log(1.0 + jnp.exp(-jnp.abs(x)))


def _round_up(x, m):
    return ((x + m - 1) // m) * m


def _tpu_flavor():
    try:
        kind = jax.devices()[0].device_kind.lower()
    except Exception:
        return "other"
    if "v7" in kind:
        return "v7x"
    if "v6" in kind:
        return "v6e"
    if "v5 lite" in kind or "v5e" in kind or "v5lite" in kind:
        return "v5e"
    return "other"


_FLAVOR = _tpu_flavor()
# bf16 elementwise/MXU path only on bf16-VPU generations (v6e / v7x); f32 elsewhere.
_USE_BF16 = _FLAVOR in ("v6e", "v7x")
_WORK_DTYPE = jnp.bfloat16 if _USE_BF16 else jnp.float32
_VMEM_LIMITS = {"v7x": 32 << 20, "v6e": 64 << 20, "v5e": 64 << 20}


def _choose_ti(n, flavor):
    rows = _round_up(max(n, 1), 8)
    ti = min(128, rows)
    if flavor == "v7x" and rows >= 16:
        # keep >= 2 i-blocks so both v7x TensorCores get work on the 'parallel' axis
        ti = min(ti, _round_up((rows + 1) // 2, 8))
    return ti


# --------------------------------------------------------------------------- #
# Kernel 1: fc_l / fc_v projections, Gaussian reparameterized samples, d_skl.  #
# --------------------------------------------------------------------------- #
def _head_kernel(zl_ref, zv_ref, wl_ref, wv_ref, bl_ref, bv_ref,
                 eps1_ref, eps2_ref, z1_ref, z2_ref, dskl_ref, *, hidden, batch):
    # fc over the (permuted) length axis, lane-dense in the 2*hidden feature dim;
    # weights arrive pre-broadcast to (T, 2H) so no lane-broadcast relayout here.
    z1f = jnp.sum(zl_ref[...] * wl_ref[...][None, :, :], axis=1) + bl_ref[...]  # (B, 2H)
    z2f = jnp.sum(zv_ref[...] * wv_ref[...][None, :, :], axis=1) + bv_ref[...]

    mu1, rho1 = z1f[:, :hidden], z1f[:, hidden:]
    mu2, rho2 = z2f[:, :hidden], z2f[:, hidden:]
    s1 = _softplus(rho1) + 1e-7
    s2 = _softplus(rho2) + 1e-7

    z1 = mu1 + s1 * eps1_ref[...]          # rsample (noise passed in)
    z2 = mu2 + s2 * eps2_ref[...]
    z1_ref[...] = z1
    z2_ref[...] = z2

    def logprob(mu, sig, v):
        return jnp.sum(-0.5 * jnp.square((v - mu) / sig) - jnp.log(sig)
                       - 0.5 * _LOG_2PI, axis=-1, keepdims=True)   # (B, 1)

    kl_1_2 = logprob(mu1, s1, z1) - logprob(mu2, s2, z1)
    kl_2_1 = logprob(mu2, s2, z2) - logprob(mu1, s1, z2)
    dskl_ref[...] = jnp.sum(kl_1_2 + kl_2_1, keepdims=True) / (2.0 * batch)


def _head_call(zl, zv, wl, bl, wv, bv, eps1, eps2, hidden):
    b, tl, _ = zl.shape
    _, tv, _ = zv.shape
    two_h = 2 * hidden
    wl_b = jnp.broadcast_to(jnp.reshape(wl, (tl, 1)), (tl, two_h))
    wv_b = jnp.broadcast_to(jnp.reshape(wv, (tv, 1)), (tv, two_h))
    kernel = functools.partial(_head_kernel, hidden=hidden, batch=b)
    # TODO(synk): tile the batch/row axis for v7x-sized production batches (64 MiB VMEM).
    z1, z2, dskl = pl.pallas_call(
        kernel,
        out_shape=(jax.ShapeDtypeStruct((b, hidden), jnp.float32),
                   jax.ShapeDtypeStruct((b, hidden), jnp.float32),
                   jax.ShapeDtypeStruct((1, 1), jnp.float32)),
        in_specs=[pl.BlockSpec(memory_space=pltpu.MemorySpace.VMEM)] * 8,
        out_specs=(pl.BlockSpec(memory_space=pltpu.MemorySpace.VMEM),) * 3,
    )(zl, zv, wl_b, wv_b,
      jnp.reshape(bl, (1, 1)), jnp.reshape(bv, (1, 1)), eps1, eps2)
    return z1, z2, dskl[0, 0]


# --------------------------------------------------------------------------- #
# Kernel 2: critic prologue — first-layer projections a, b (b1 folded into b)  #
# and per-row T0.  Hoisted out of the pairwise hot loop (O(N*D*H), not O(N^2)).#
# --------------------------------------------------------------------------- #
def _critic_proj_kernel(x_ref, y_ref, w1x_ref, w1y_ref, b1_ref, w2_ref, b2_ref,
                        a_ref, b_ref, t0_ref, *, n_t0):
    # TODO(synk): at production sizes (D=768, H=300) HIGHEST can be relaxed to
    # DEFAULT on v5e if the accuracy budget allows (perf-review item).
    a = jnp.dot(x_ref[...], w1x_ref[...],
                preferred_element_type=jnp.float32, precision=_HIGH)
    b = jnp.dot(y_ref[...], w1y_ref[...],
                preferred_element_type=jnp.float32, precision=_HIGH) + b1_ref[...]
    a_ref[...] = a.astype(a_ref.dtype)
    b_ref[...] = b.astype(b_ref.dtype)
    # b already contains b1 -> do NOT add it again here.
    h0 = jnp.maximum(a[:n_t0] + b[:n_t0], 0.0)
    s0 = jnp.sum(h0 * w2_ref[...], axis=-1, keepdims=True) + b2_ref[...]
    t0_ref[...] = _softplus(s0)


def _critic_proj_call(x_pad, y_pad, w1x, w1y, b1, w2, b2, n_t0, work_dtype):
    nj = x_pad.shape[0]
    ni = y_pad.shape[0]
    hp = w1x.shape[1]
    kernel = functools.partial(_critic_proj_kernel, n_t0=n_t0)
    # TODO(synk): tile the row axis for v7x-sized production batches.
    a, b, t0 = pl.pallas_call(
        kernel,
        out_shape=(jax.ShapeDtypeStruct((nj, hp), work_dtype),
                   jax.ShapeDtypeStruct((ni, hp), work_dtype),
                   jax.ShapeDtypeStruct((n_t0, 1), jnp.float32)),
        in_specs=[pl.BlockSpec(memory_space=pltpu.MemorySpace.VMEM)] * 7,
        out_specs=(pl.BlockSpec(memory_space=pltpu.MemorySpace.VMEM),) * 3,
    )(x_pad, y_pad, w1x, w1y, b1, w2, b2)
    return a, b, t0


# --------------------------------------------------------------------------- #
# Kernel 3: pairwise critic + online logsumexp over j, chunked inside the      #
# kernel.  grid = (i-blocks,) ('parallel'); `a` is VMEM-resident; the w2       #
# reduction runs on the MXU; the column mask is applied only to the tail chunk.#
# --------------------------------------------------------------------------- #
def _pairwise_lse_kernel(b_ref, a_ref, w2_ref, b2_ref, lse_ref, *,
                         ti, tjc, n_full, tail_cols, inner_precision):
    hp = a_ref.shape[1]
    brow = b_ref[...]                     # (ti, hp)  work dtype, b1 already folded in
    w2c = w2_ref[...]                     # (hp, 1)   work dtype
    b2 = b2_ref[...]                      # (1, 1)    f32

    def chunk_scores(a_c):
        # (ti, tjc, hp) broadcast-add + relu in the work dtype, then the w2
        # reduction on the MXU with f32 accumulation.
        h = jnp.maximum(a_c[None, :, :] + brow[:, None, :], 0)
        s = jnp.dot(h.reshape(ti * tjc, hp), w2c,
                    preferred_element_type=jnp.float32,
                    precision=inner_precision)                    # (ti*tjc, 1) f32
        s = s.reshape(ti, tjc) + b2
        return _softplus(s)                                       # (ti, tjc) f32

    def lse_update(m, l, t1):
        m_new = jnp.maximum(m, jnp.max(t1, axis=1, keepdims=True))
        l_new = (l * jnp.exp(m - m_new)
                 + jnp.sum(jnp.exp(t1 - m_new), axis=1, keepdims=True))
        return m_new, l_new

    m = jnp.full((ti, 1), _NEG, jnp.float32)
    l = jnp.zeros((ti, 1), jnp.float32)

    if n_full > 0:                        # all-valid chunks: no column mask (hoisted)
        def body(c, carry):
            mc, lc = carry
            start = pl.multiple_of(c * tjc, tjc)
            return lse_update(mc, lc, chunk_scores(a_ref[pl.ds(start, tjc), :]))
        m, l = lax.fori_loop(0, n_full, body, (m, l),
                             unroll=n_full if n_full <= 4 else 4)

    if tail_cols > 0:                     # single tail chunk holds all padded columns
        t1 = chunk_scores(a_ref[pl.ds(n_full * tjc, tjc), :])
        lane = lax.broadcasted_iota(jnp.int32, t1.shape, 1)
        t1 = jnp.where(lane < tail_cols, t1, _NEG)
        m, l = lse_update(m, l, t1)

    lse_ref[...] = m + jnp.log(l)


def _pairwise_lse_call(a, b, w2c, b2, *, ti, tjc, n_full, tail_cols,
                       inner_precision, flavor):
    nj, hp = a.shape
    ni = b.shape[0]
    kernel = functools.partial(_pairwise_lse_kernel, ti=ti, tjc=tjc,
                               n_full=n_full, tail_cols=tail_cols,
                               inner_precision=inner_precision)
    return pl.pallas_call(
        kernel,
        out_shape=jax.ShapeDtypeStruct((ni, 1), jnp.float32),
        grid_spec=pltpu.PrefetchScalarGridSpec(
            num_scalar_prefetch=0,
            grid=(ni // ti,),
            in_specs=[
                pl.BlockSpec((ti, hp), lambda i: (i, 0)),    # b rows (i tile)
                pl.BlockSpec((nj, hp), lambda i: (0, 0)),    # a: VMEM-resident
                pl.BlockSpec((hp, 1), lambda i: (0, 0)),     # w2 column (MXU RHS)
                pl.BlockSpec((1, 1), lambda i: (0, 0)),      # b2
            ],
            out_specs=pl.BlockSpec((ti, 1), lambda i: (i, 0)),
        ),
        compiler_params=pltpu.CompilerParams(
            dimension_semantics=("parallel",),
            vmem_limit_bytes=_VMEM_LIMITS.get(flavor)),
    )(b, a, w2c, b2)


def infonce_lower_bound(x, y, w1, b1, w2, b2):
    """x: (N, Dx), y: (N, Dy), w1: (Dx+Dy, H), b1: (H,), w2: (H,), b2: scalar."""
    n, dx = x.shape
    _, dy = y.shape
    hcrit = w1.shape[1]
    hp = _round_up(hcrit, 128)
    work = _WORK_DTYPE
    inner_precision = None if _USE_BF16 else _HIGH

    # lane-pad the critic hidden dim (zero columns are inert: a,b = 0 -> relu -> *w2=0)
    w1x = jnp.zeros((dx, hp), jnp.float32).at[:, :hcrit].set(w1[:dx])
    w1y = jnp.zeros((dy, hp), jnp.float32).at[:, :hcrit].set(w1[dx:])
    b1p = jnp.zeros((1, hp), jnp.float32).at[0, :hcrit].set(b1)
    w2p = jnp.zeros((1, hp), jnp.float32).at[0, :hcrit].set(w2)
    b2p = jnp.reshape(b2, (1, 1)).astype(jnp.float32)

    tjc = _TJC
    n_full, rem = divmod(n, tjc)
    nj = n_full * tjc + (tjc if rem else 0)        # j (column) padding: chunk multiple
    ti = _choose_ti(n, _FLAVOR)
    ni = _round_up(n, ti)                          # i (row) padding: tile multiple
    n_t0 = min(ni, nj)

    x_pad = jnp.zeros((nj, dx), jnp.float32).at[:n].set(x)
    y_pad = jnp.zeros((ni, dy), jnp.float32).at[:n].set(y)

    a, b, t0 = _critic_proj_call(x_pad, y_pad, w1x, w1y, b1p, w2p, b2p, n_t0, work)
    w2c = jnp.reshape(w2p, (hp, 1)).astype(work)
    lse = _pairwise_lse_call(a, b, w2c, b2p, ti=ti, tjc=tjc, n_full=n_full,
                             tail_cols=rem, inner_precision=inner_precision,
                             flavor=_FLAVOR)

    t0_mean = jnp.mean(t0[:n, 0])
    lse_mean = jnp.mean(lse[:n, 0])
    return t0_mean - (lse_mean - jnp.log(jnp.float32(n)))


@functools.partial(jax.jit, static_argnames=("hidden",))
def joint_mi_forward(zl, zv, params, eps1, eps2, *, hidden):
    z1, z2, dskl = _head_call(zl, zv, params["wl"], params["bl"],
                              params["wv"], params["bv"], eps1, eps2, hidden)
    mi = infonce_lower_bound(z1, z2, params["w1"], params["b1"],
                             params["w2"], params["b2"])
    # TODO(synk): the module's host-side, data-dependent `print('infonce is positive')`
    # side effect is intentionally not replicated inside the kernel.
    return dskl - mi


# --------------------------------------------------------------------------- #
# Pure-JAX reference mirroring the PyTorch forward.                            #
# --------------------------------------------------------------------------- #
def joint_mi_ref(zl, zv, params, eps1, eps2, hidden):
    wl, bl = params["wl"], params["bl"]
    wv, bv = params["wv"], params["bv"]
    z1 = jnp.einsum("btd,t->bd", zl, wl, precision=_HIGH) + bl
    z2 = jnp.einsum("btd,t->bd", zv, wv, precision=_HIGH) + bv
    mu1, rho1 = z1[:, :hidden], z1[:, hidden:]
    mu2, rho2 = z2[:, :hidden], z2[:, hidden:]
    s1 = _softplus(rho1) + 1e-7
    s2 = _softplus(rho2) + 1e-7
    z1s = mu1 + s1 * eps1
    z2s = mu2 + s2 * eps2

    def logprob(mu, sig, v):
        return jnp.sum(-0.5 * jnp.square((v - mu) / sig) - jnp.log(sig)
                       - 0.5 * _LOG_2PI, axis=-1)

    kl_1_2 = logprob(mu1, s1, z1s) - logprob(mu2, s2, z1s)
    kl_2_1 = logprob(mu2, s2, z2s) - logprob(mu1, s1, z2s)
    d_skl = jnp.mean(kl_1_2 + kl_2_1) / 2.0

    w1, b1, w2, b2 = params["w1"], params["b1"], params["w2"], params["b2"]
    n = z1s.shape[0]

    def F(z):
        hdn = jnp.maximum(jnp.dot(z, w1, precision=_HIGH) + b1, 0.0)
        return _softplus(jnp.dot(hdn, w2, precision=_HIGH) + b2)

    t0 = F(jnp.concatenate([z1s, z2s], axis=-1))                     # (N,)
    # NOTE: torch applies a random row permutation to y before tiling; the
    # logsumexp(dim=1).mean() is invariant to it, so the identity is used here.
    x_tile = jnp.broadcast_to(z1s[None, :, :], (n, n, z1s.shape[1]))
    y_tile = jnp.broadcast_to(z2s[:, None, :], (n, n, z2s.shape[1]))
    t1 = F(jnp.concatenate([x_tile, y_tile], axis=-1))               # (N, N)
    m = jnp.max(t1, axis=1)
    lse = m + jnp.log(jnp.sum(jnp.exp(t1 - m[:, None]), axis=1))
    lb = jnp.mean(t0) - (jnp.mean(lse) - jnp.log(jnp.float32(n)))
    return d_skl - lb


if __name__ == "__main__":
    # Small shapes consistent with the module (hidden_size scaled 384->64,
    # x1_dim=x2_dim scaled 768->128, InfoNCE hidden scaled 300->32;
    # fc_l/fc_v input features 20/36 are fixed by the module).
    B = 8
    HIDDEN = 64
    D1 = 2 * HIDDEN
    D2 = 2 * HIDDEN
    TL, TV = 20, 36
    MI_HIDDEN = 32
    MI_XDIM = D1 // 2
    MI_YDIM = D2 // 2

    key = jax.random.PRNGKey(0)
    ks = jax.random.split(key, 12)

    zl = jax.random.normal(ks[0], (B, TL, D1), jnp.float32)
    zv = jax.random.normal(ks[1], (B, TV, D2), jnp.float32)

    def uinit(k, shape, fan_in):
        bound = 1.0 / float(np.sqrt(fan_in))
        return jax.random.uniform(k, shape, jnp.float32, -bound, bound)

    params = dict(
        wl=uinit(ks[2], (TL,), TL), bl=uinit(ks[3], (), TL),
        wv=uinit(ks[4], (TV,), TV), bv=uinit(ks[5], (), TV),
        w1=uinit(ks[6], (MI_XDIM + MI_YDIM, MI_HIDDEN), MI_XDIM + MI_YDIM),
        b1=uinit(ks[7], (MI_HIDDEN,), MI_XDIM + MI_YDIM),
        w2=uinit(ks[8], (MI_HIDDEN,), MI_HIDDEN),
        b2=uinit(ks[9], (), MI_HIDDEN),
    )

    # reparameterization noise (torch's Normal.rsample RNG), passed in so the
    # kernel and the reference use identical randomness
    eps1 = jax.random.normal(ks[10], (B, HIDDEN), jnp.float32)
    eps2 = jax.random.normal(ks[11], (B, HIDDEN), jnp.float32)

    out = joint_mi_forward(zl, zv, params, eps1, eps2, hidden=HIDDEN)
    out = jax.block_until_ready(out)

    ref = joint_mi_ref(zl, zv, params, eps1, eps2, HIDDEN)
    # f32 path matches the HIGHEST-precision reference tightly; the bf16
    # elementwise/MXU path on v6e/v7x gets a correspondingly looser bound.
    tol = 1e-2 if _USE_BF16 else 1e-3
    assert np.allclose(np.asarray(out), np.asarray(ref), rtol=tol, atol=tol), \
        (out, ref, _FLAVOR)

    print("KERNEL_OK")
</pallas_src>

<mosaic_0001>
module attributes {stable_mosaic.version = 11 : i64} {
  func.func @_head_kernel(%arg0: memref<8x20x128xf32, #tpu.memory_space<vmem>>, %arg1: memref<8x36x128xf32, #tpu.memory_space<vmem>>, %arg2: memref<20x128xf32, #tpu.memory_space<vmem>>, %arg3: memref<36x128xf32, #tpu.memory_space<vmem>>, %arg4: memref<1x1xf32, #tpu.memory_space<vmem>>, %arg5: memref<1x1xf32, #tpu.memory_space<vmem>>, %arg6: memref<8x64xf32, #tpu.memory_space<vmem>>, %arg7: memref<8x64xf32, #tpu.memory_space<vmem>>, %arg8: memref<8x64xf32, #tpu.memory_space<vmem>>, %arg9: memref<8x64xf32, #tpu.memory_space<vmem>>, %arg10: memref<1x1xf32, #tpu.memory_space<vmem>>) attributes {dimension_semantics = [], scalar_prefetch = 0 : i64, scratch_operands = 0 : i64, tpu.core_type = #tpu.core_type<tc>} {
    %c0 = arith.constant 0 : index
    %c0_0 = arith.constant 0 : index
    %c0_1 = arith.constant 0 : index
    %0 = vector.load %arg0[%c0, %c0_0, %c0_1] : memref<8x20x128xf32, #tpu.memory_space<vmem>>, vector<8x20x128xf32>
    %c0_2 = arith.constant 0 : index
    %c0_3 = arith.constant 0 : index
    %1 = vector.load %arg2[%c0_2, %c0_3] : memref<20x128xf32, #tpu.memory_space<vmem>>, vector<20x128xf32>
    %2 = vector.shape_cast %1 : vector<20x128xf32> to vector<1x20x128xf32>
    %3 = vector.broadcast %2 : vector<1x20x128xf32> to vector<8x20x128xf32>
    %4 = arith.mulf %0, %3 : vector<8x20x128xf32>
    %cst = arith.constant dense<0.000000e+00> : vector<8x128xf32>
    %5 = vector.multi_reduction <add>, %4, %cst [1] : vector<8x20x128xf32> to vector<8x128xf32>
    %c0_4 = arith.constant 0 : index
    %c0_5 = arith.constant 0 : index
    %6 = vector.load %arg4[%c0_4, %c0_5] : memref<1x1xf32, #tpu.memory_space<vmem>>, vector<1x1xf32>
    %7 = vector.broadcast %6 : vector<1x1xf32> to vector<8x128xf32>
    %8 = arith.addf %5, %7 : vector<8x128xf32>
    %c0_6 = arith.constant 0 : index
    %c0_7 = arith.constant 0 : index
    %c0_8 = arith.constant 0 : index
    %9 = vector.load %arg1[%c0_6, %c0_7, %c0_8] : memref<8x36x128xf32, #tpu.memory_space<vmem>>, vector<8x36x128xf32>
    %c0_9 = arith.constant 0 : index
    %c0_10 = arith.constant 0 : index
    %10 = vector.load %arg3[%c0_9, %c0_10] : memref<36x128xf32, #tpu.memory_space<vmem>>, vector<36x128xf32>
    %11 = vector.shape_cast %10 : vector<36x128xf32> to vector<1x36x128xf32>
    %12 = vector.broadcast %11 : vector<1x36x128xf32> to vector<8x36x128xf32>
    %13 = arith.mulf %9, %12 : vector<8x36x128xf32>
    %cst_11 = arith.constant dense<0.000000e+00> : vector<8x128xf32>
    %14 = vector.multi_reduction <add>, %13, %cst_11 [1] : vector<8x36x128xf32> to vector<8x128xf32>
    %c0_12 = arith.constant 0 : index
    %c0_13 = arith.constant 0 : index
    %15 = vector.load %arg5[%c0_12, %c0_13] : memref<1x1xf32, #tpu.memory_space<vmem>>, vector<1x1xf32>
    %16 = vector.broadcast %15 : vector<1x1xf32> to vector<8x128xf32>
    %17 = arith.addf %14, %16 : vector<8x128xf32>
    %18 = vector.extract_strided_slice %8 {offsets = [0, 0], sizes = [8, 64], strides = [1, 1]} : vector<8x128xf32> to vector<8x64xf32>
    %19 = vector.extract_strided_slice %8 {offsets = [0, 64], sizes = [8, 64], strides = [1, 1]} : vector<8x128xf32> to vector<8x64xf32>
    %20 = vector.extract_strided_slice %17 {offsets = [0, 0], sizes = [8, 64], strides = [1, 1]} : vector<8x128xf32> to vector<8x64xf32>
    %21 = vector.extract_strided_slice %17 {offsets = [0, 64], sizes = [8, 64], strides = [1, 1]} : vector<8x128xf32> to vector<8x64xf32>
    %cst_14 = arith.constant 0.000000e+00 : f32
    %22 = vector.broadcast %cst_14 : f32 to vector<8x64xf32>
    %23 = arith.maximumf %19, %22 : vector<8x64xf32>
    %24 = math.absf %19 : vector<8x64xf32>
    %cst_15 = arith.constant 0.000000e+00 : f32
    %25 = vector.broadcast %cst_15 : f32 to vector<8x64xf32>
    %26 = arith.subf %25, %24 : vector<8x64xf32>
    %27 = math.exp %26 : vector<8x64xf32>
    %cst_16 = arith.constant 1.000000e+00 : f32
    %28 = vector.broadcast %cst_16 : f32 to vector<8x64xf32>
    %29 = arith.addf %28, %27 : vector<8x64xf32>
    %30 = math.log %29 : vector<8x64xf32>
    %31 = arith.addf %23, %30 : vector<8x64xf32>
    %cst_17 = arith.constant 1.000000e-07 : f32
    %32 = vector.broadcast %cst_17 : f32 to vector<8x64xf32>
    %33 = arith.addf %31, %32 : vector<8x64xf32>
    %cst_18 = arith.constant 0.000000e+00 : f32
    %34 = vector.broadcast %cst_18 : f32 to vector<8x64xf32>
    %35 = arith.maximumf %21, %34 : vector<8x64xf32>
    %36 = math.absf %21 : vector<8x64xf32>
    %cst_19 = arith.constant 0.000000e+00 : f32
    %37 = vector.broadcast %cst_19 : f32 to vector<8x64xf32>
    %38 = arith.subf %37, %36 : vector<8x64xf32>
    %39 = math.exp %38 : vector<8x64xf32>
    %cst_20 = arith.constant 1.000000e+00 : f32
    %40 = vector.broadcast %cst_20 : f32 to vector<8x64xf32>
    %41 = arith.addf %40, %39 : vector<8x64xf32>
    %42 = math.log %41 : vector<8x64xf32>
    %43 = arith.addf %35, %42 : vector<8x64xf32>
    %cst_21 = arith.constant 1.000000e-07 : f32
    %44 = vector.broadcast %cst_21 : f32 to vector<8x64xf32>
    %45 = arith.addf %43, %44 : vector<8x64xf32>
    %c0_22 = arith.constant 0 : index
    %c0_23 = arith.constant 0 : index
    %46 = vector.load %arg6[%c0_22, %c0_23] : memref<8x64xf32, #tpu.memory_space<vmem>>, vector<8x64xf32>
    %47 = arith.mulf %33, %46 : vector<8x64xf32>
    %48 = arith.addf %18, %47 : vector<8x64xf32>
    %c0_24 = arith.constant 0 : index
    %c0_25 = arith.constant 0 : index
    %49 = vector.load %arg7[%c0_24, %c0_25] : memref<8x64xf32, #tpu.memory_space<vmem>>, vector<8x64xf32>
    %50 = arith.mulf %45, %49 : vector<8x64xf32>
    %51 = arith.addf %20, %50 : vector<8x64xf32>
    %c0_26 = arith.constant 0 : index
    %c0_27 = arith.constant 0 : index
    %52 = vector.load %arg8[%c0_26, %c0_27] : memref<8x64xf32, #tpu.memory_space<vmem>>, vector<8x64xf32>
    tpu.vector_store %arg8[%c0_26, %c0_27], %48 {strides = array<i32>} : memref<8x64xf32, #tpu.memory_space<vmem>>, vector<8x64xf32>,
    %c0_28 = arith.constant 0 : index
    %c0_29 = arith.constant 0 : index
    %53 = vector.load %arg9[%c0_28, %c0_29] : memref<8x64xf32, #tpu.memory_space<vmem>>, vector<8x64xf32>
    tpu.vector_store %arg9[%c0_28, %c0_29], %51 {strides = array<i32>} : memref<8x64xf32, #tpu.memory_space<vmem>>, vector<8x64xf32>,
    %54 = arith.subf %48, %18 : vector<8x64xf32>
    %55 = arith.divf %54, %33 : vector<8x64xf32>
    %56 = arith.mulf %55, %55 : vector<8x64xf32>
    %cst_30 = arith.constant -5.000000e-01 : f32
    %57 = vector.broadcast %cst_30 : f32 to vector<8x64xf32>
    %58 = arith.mulf %57, %56 : vector<8x64xf32>
    %59 = math.log %33 : vector<8x64xf32>
    %60 = arith.subf %58, %59 : vector<8x64xf32>
    %cst_31 = arith.constant 0.918938517 : f32
    %61 = vector.broadcast %cst_31 : f32 to vector<8x64xf32>
    %62 = arith.subf %60, %61 : vector<8x64xf32>
    %cst_32 = arith.constant dense<0.000000e+00> : vector<8xf32>
    %63 = vector.multi_reduction <add>, %62, %cst_32 [1] : vector<8x64xf32> to vector<8xf32>
    %64 = vector.shape_cast %63 : vector<8xf32> to vector<8x1xf32>
    %65 = arith.subf %48, %20 : vector<8x64xf32>
    %66 = arith.divf %65, %45 : vector<8x64xf32>
    %67 = arith.mulf %66, %66 : vector<8x64xf32>
    %cst_33 = arith.constant -5.000000e-01 : f32
    %68 = vector.broadcast %cst_33 : f32 to vector<8x64xf32>
    %69 = arith.mulf %68, %67 : vector<8x64xf32>
    %70 = math.log %45 : vector<8x64xf32>
    %71 = arith.subf %69, %70 : vector<8x64xf32>
    %cst_34 = arith.constant 0.918938517 : f32
    %72 = vector.broadcast %cst_34 : f32 to vector<8x64xf32>
    %73 = arith.subf %71, %72 : vector<8x64xf32>
    %cst_35 = arith.constant dense<0.000000e+00> : vector<8xf32>
    %74 = vector.multi_reduction <add>, %73, %cst_35 [1] : vector<8x64xf32> to vector<8xf32>
    %75 = vector.shape_cast %74 : vector<8xf32> to vector<8x1xf32>
    %76 = arith.subf %64, %75 : vector<8x1xf32>
    %77 = arith.subf %51, %20 : vector<8x64xf32>
    %78 = arith.divf %77, %45 : vector<8x64xf32>
    %79 = arith.mulf %78, %78 : vector<8x64xf32>
    %cst_36 = arith.constant -5.000000e-01 : f32
    %80 = vector.broadcast %cst_36 : f32 to vector<8x64xf32>
    %81 = arith.mulf %80, %79 : vector<8x64xf32>
    %82 = math.log %45 : vector<8x64xf32>
    %83 = arith.subf %81, %82 : vector<8x64xf32>
    %cst_37 = arith.constant 0.918938517 : f32
    %84 = vector.broadcast %cst_37 : f32 to vector<8x64xf32>
    %85 = arith.subf %83, %84 : vector<8x64xf32>
    %cst_38 = arith.constant dense<0.000000e+00> : vector<8xf32>
    %86 = vector.multi_reduction <add>, %85, %cst_38 [1] : vector<8x64xf32> to vector<8xf32>
    %87 = vector.shape_cast %86 : vector<8xf32> to vector<8x1xf32>
    %88 = arith.subf %51, %18 : vector<8x64xf32>
    %89 = arith.divf %88, %33 : vector<8x64xf32>
    %90 = arith.mulf %89, %89 : vector<8x64xf32>
    %cst_39 = arith.constant -5.000000e-01 : f32
    %91 = vector.broadcast %cst_39 : f32 to vector<8x64xf32>
    %92 = arith.mulf %91, %90 : vector<8x64xf32>
    %93 = math.log %33 : vector<8x64xf32>
    %94 = arith.subf %92, %93 : vector<8x64xf32>
    %cst_40 = arith.constant 0.918938517 : f32
    %95 = vector.broadcast %cst_40 : f32 to vector<8x64xf32>
    %96 = arith.subf %94, %95 : vector<8x64xf32>
    %cst_41 = arith.constant dense<0.000000e+00> : vector<8xf32>
    %97 = vector.multi_reduction <add>, %96, %cst_41 [1] : vector<8x64xf32> to vector<8xf32>
    %98 = vector.shape_cast %97 : vector<8xf32> to vector<8x1xf32>
    %99 = arith.subf %87, %98 : vector<8x1xf32>
    %100 = arith.addf %76, %99 : vector<8x1xf32>
    %101 = vector.shape_cast %100 : vector<8x1xf32> to vector<1x8x1xf32>
    %cst_42 = arith.constant dense<0.000000e+00> : vector<1xf32>
    %102 = vector.multi_reduction <add>, %101, %cst_42 [1, 2] : vector<1x8x1xf32> to vector<1xf32>
    %103 = vector.shape_cast %102 : vector<1xf32> to vector<1x1x1xf32>
    %104 = vector.extract %103[0, 0, 0] : f32 from vector<1x1x1xf32>
    %105 = vector.broadcast %104 : f32 to vector<1x1xf32>
    %cst_43 = arith.constant 1.600000e+01 : f32
    %106 = vector.broadcast %cst_43 : f32 to vector<1x1xf32>
    %107 = arith.divf %105, %106 : vector<1x1xf32>
    %c0_44 = arith.constant 0 : index
    %c0_45 = arith.constant 0 : index
    %108 = vector.load %arg10[%c0_44, %c0_45] : memref<1x1xf32, #tpu.memory_space<vmem>>, vector<1x1xf32>
    tpu.vector_store %arg10[%c0_44, %c0_45], %107 {strides = array<i32>} : memref<1x1xf32, #tpu.memory_space<vmem>>, vector<1x1xf32>,
    return
  }
}

module attributes {stable_mosaic.version = 11 : i64} {
  func.func @_critic_proj_kernel(%arg0: memref<16x64xf32, #tpu.memory_space<vmem>>, %arg1: memref<8x64xf32, #tpu.memory_space<vmem>>, %arg2: memref<64x128xf32, #tpu.memory_space<vmem>>, %arg3: memref<64x128xf32, #tpu.memory_space<vmem>>, %arg4: memref<1x128xf32, #tpu.memory_space<vmem>>, %arg5: memref<1x128xf32, #tpu.memory_space<vmem>>, %arg6: memref<1x1xf32, #tpu.memory_space<vmem>>, %arg7: memref<16x128xf32, #tpu.memory_space<vmem>>, %arg8: memref<8x128xf32, #tpu.memory_space<vmem>>, %arg9: memref<8x1xf32, #tpu.memory_space<vmem>>) attributes {dimension_semantics = [], scalar_prefetch = 0 : i64, scratch_operands = 0 : i64, tpu.core_type = #tpu.core_type<tc>} {
    %c0 = arith.constant 0 : index
    %c0_0 = arith.constant 0 : index
    %0 = vector.load %arg0[%c0, %c0_0] : memref<16x64xf32, #tpu.memory_space<vmem>>, vector<16x64xf32>
    %c0_1 = arith.constant 0 : index
    %c0_2 = arith.constant 0 : index
    %1 = vector.load %arg2[%c0_1, %c0_2] : memref<64x128xf32, #tpu.memory_space<vmem>>, vector<64x128xf32>
    %cst = arith.constant dense<0.000000e+00> : vector<16x128xf32>
    %2 = tpu.matmul %0, %1, %cst {dimension_numbers = #tpu.dot_dimension_numbers<[1], [0], [0], [1], [0, 0, 1, 1], [], []>, precision = #tpu.contract_precision<fp32>} : vector<16x64xf32>, vector<64x128xf32>, vector<16x128xf32> -> vector<16x128xf32>
    %c0_3 = arith.constant 0 : index
    %c0_4 = arith.constant 0 : index
    %3 = vector.load %arg1[%c0_3, %c0_4] : memref<8x64xf32, #tpu.memory_space<vmem>>, vector<8x64xf32>
    %c0_5 = arith.constant 0 : index
    %c0_6 = arith.constant 0 : index
    %4 = vector.load %arg3[%c0_5, %c0_6] : memref<64x128xf32, #tpu.memory_space<vmem>>, vector<64x128xf32>
    %cst_7 = arith.constant dense<0.000000e+00> : vector<8x128xf32>
    %5 = tpu.matmul %3, %4, %cst_7 {dimension_numbers = #tpu.dot_dimension_numbers<[1], [0], [0], [1], [0, 0, 1, 1], [], []>, precision = #tpu.contract_precision<fp32>} : vector<8x64xf32>, vector<64x128xf32>, vector<8x128xf32> -> vector<8x128xf32>
    %c0_8 = arith.constant 0 : index
    %c0_9 = arith.constant 0 : index
    %6 = vector.load %arg4[%c0_8, %c0_9] : memref<1x128xf32, #tpu.memory_space<vmem>>, vector<1x128xf32>
    %7 = vector.broadcast %6 : vector<1x128xf32> to vector<8x128xf32>
    %8 = arith.addf %5, %7 : vector<8x128xf32>
    %c0_10 = arith.constant 0 : index
    %c0_11 = arith.constant 0 : index
    %9 = vector.load %arg7[%c0_10, %c0_11] : memref<16x128xf32, #tpu.memory_space<vmem>>, vector<16x128xf32>
    tpu.vector_store %arg7[%c0_10, %c0_11], %2 {strides = array<i32>} : memref<16x128xf32, #tpu.memory_space<vmem>>, vector<16x128xf32>,
    %c0_12 = arith.constant 0 : index
    %c0_13 = arith.constant 0 : index
    %10 = vector.load %arg8[%c0_12, %c0_13] : memref<8x128xf32, #tpu.memory_space<vmem>>, vector<8x128xf32>
    tpu.vector_store %arg8[%c0_12, %c0_13], %8 {strides = array<i32>} : memref<8x128xf32, #tpu.memory_space<vmem>>, vector<8x128xf32>,
    %11 = vector.extract_strided_slice %2 {offsets = [0, 0], sizes = [8, 128], strides = [1, 1]} : vector<16x128xf32> to vector<8x128xf32>
    %12 = arith.addf %11, %8 : vector<8x128xf32>
    %cst_14 = arith.constant 0.000000e+00 : f32
    %13 = vector.broadcast %cst_14 : f32 to vector<8x128xf32>
    %14 = arith.maximumf %12, %13 : vector<8x128xf32>
    %c0_15 = arith.constant 0 : index
    %c0_16 = arith.constant 0 : index
    %15 = vector.load %arg5[%c0_15, %c0_16] : memref<1x128xf32, #tpu.memory_space<vmem>>, vector<1x128xf32>
    %16 = vector.broadcast %15 : vector<1x128xf32> to vector<8x128xf32>
    %17 = arith.mulf %14, %16 : vector<8x128xf32>
    %cst_17 = arith.constant dense<0.000000e+00> : vector<8xf32>
    %18 = vector.multi_reduction <add>, %17, %cst_17 [1] : vector<8x128xf32> to vector<8xf32>
    %19 = vector.shape_cast %18 : vector<8xf32> to vector<8x1xf32>
    %c0_18 = arith.constant 0 : index
    %c0_19 = arith.constant 0 : index
    %20 = vector.load %arg6[%c0_18, %c0_19] : memref<1x1xf32, #tpu.memory_space<vmem>>, vector<1x1xf32>
    %21 = vector.broadcast %20 : vector<1x1xf32> to vector<8x1xf32>
    %22 = arith.addf %19, %21 : vector<8x1xf32>
    %cst_20 = arith.constant 0.000000e+00 : f32
    %23 = vector.broadcast %cst_20 : f32 to vector<8x1xf32>
    %24 = arith.maximumf %22, %23 : vector<8x1xf32>
    %25 = math.absf %22 : vector<8x1xf32>
    %cst_21 = arith.constant 0.000000e+00 : f32
    %26 = vector.broadcast %cst_21 : f32 to vector<8x1xf32>
    %27 = arith.subf %26, %25 : vector<8x1xf32>
    %28 = math.exp %27 : vector<8x1xf32>
    %cst_22 = arith.constant 1.000000e+00 : f32
    %29 = vector.broadcast %cst_22 : f32 to vector<8x1xf32>
    %30 = arith.addf %29, %28 : vector<8x1xf32>
    %31 = math.log %30 : vector<8x1xf32>
    %32 = arith.addf %24, %31 : vector<8x1xf32>
    %c0_23 = arith.constant 0 : index
    %c0_24 = arith.constant 0 : index
    %33 = vector.load %arg9[%c0_23, %c0_24] : memref<8x1xf32, #tpu.memory_space<vmem>>, vector<8x1xf32>
    tpu.vector_store %arg9[%c0_23, %c0_24], %32 {strides = array<i32>} : memref<8x1xf32, #tpu.memory_space<vmem>>, vector<8x1xf32>,
    return
  }
}

module attributes {stable_mosaic.version = 11 : i64} {
  func.func @_pairwise_lse_kernel(%arg0: i32, %arg1: memref<8x128xf32, #tpu.memory_space<vmem>>, %arg2: memref<16x128xf32, #tpu.memory_space<vmem>>, %arg3: memref<128x1xf32, #tpu.memory_space<vmem>>, %arg4: memref<1x1xf32, #tpu.memory_space<vmem>>, %arg5: memref<8x1xf32, #tpu.memory_space<vmem>>) attributes {dimension_semantics = [#tpu.dimension_semantics<parallel>], iteration_bounds = array<i64: 1>, scalar_prefetch = 0 : i64, scratch_operands = 0 : i64, tpu.core_type = #tpu.core_type<tc>, window_params = [{transform_indices = @transform_0, window_bounds = array<i64: 8, 128>}, {pipeline_mode = #tpu.pipeline_mode<synchronous>, transform_indices = @transform_1, window_bounds = array<i64: 16, 128>}, {pipeline_mode = #tpu.pipeline_mode<synchronous>, transform_indices = @transform_2, window_bounds = array<i64: 128, 1>}, {pipeline_mode = #tpu.pipeline_mode<synchronous>, transform_indices = @transform_3, window_bounds = array<i64: 1, 1>}, {transform_indices = @transform_4, window_bounds = array<i64: 8, 1>}]} {
    %c0 = arith.constant 0 : index
    %c0_0 = arith.constant 0 : index
    %0 = vector.load %arg1[%c0, %c0_0] : memref<8x128xf32, #tpu.memory_space<vmem>>, vector<8x128xf32>
    %c0_1 = arith.constant 0 : index
    %c0_2 = arith.constant 0 : index
    %1 = vector.load %arg3[%c0_1, %c0_2] : memref<128x1xf32, #tpu.memory_space<vmem>>, vector<128x1xf32>
    %c0_3 = arith.constant 0 : index
    %c0_4 = arith.constant 0 : index
    %2 = vector.load %arg4[%c0_3, %c0_4] : memref<1x1xf32, #tpu.memory_space<vmem>>, vector<1x1xf32>
    %cst = arith.constant -1.000000e+30 : f32
    %3 = vector.broadcast %cst : f32 to vector<8x1xf32>
    %cst_5 = arith.constant 0.000000e+00 : f32
    %4 = vector.broadcast %cst_5 : f32 to vector<8x1xf32>
    %c0_6 = arith.constant 0 : index
    %c0_7 = arith.constant 0 : index
    %5 = vector.load %arg2[%c0_6, %c0_7] : memref<16x128xf32, #tpu.memory_space<vmem>>, vector<16x128xf32>
    %6 = vector.shape_cast %5 : vector<16x128xf32> to vector<1x16x128xf32>
    %7 = vector.shape_cast %0 : vector<8x128xf32> to vector<8x1x128xf32>
    %8 = vector.broadcast %6 : vector<1x16x128xf32> to vector<8x16x128xf32>
    %9 = vector.broadcast %7 : vector<8x1x128xf32> to vector<8x16x128xf32>
    %10 = arith.addf %8, %9 : vector<8x16x128xf32>
    %cst_8 = arith.constant 0.000000e+00 : f32
    %11 = vector.broadcast %cst_8 : f32 to vector<8x16x128xf32>
    %12 = arith.maximumf %10, %11 : vector<8x16x128xf32>
    %13 = vector.shape_cast %12 : vector<8x16x128xf32> to vector<128x128xf32>
    %cst_9 = arith.constant dense<0.000000e+00> : vector<128x1xf32>
    %14 = tpu.matmul %13, %1, %cst_9 {dimension_numbers = #tpu.dot_dimension_numbers<[1], [0], [0], [1], [0, 0, 1, 1], [], []>, precision = #tpu.contract_precision<fp32>} : vector<128x128xf32>, vector<128x1xf32>, vector<128x1xf32> -> vector<128x1xf32>
    %15 = vector.shape_cast %14 : vector<128x1xf32> to vector<8x16xf32>
    %16 = vector.broadcast %2 : vector<1x1xf32> to vector<8x16xf32>
    %17 = arith.addf %15, %16 : vector<8x16xf32>
    %cst_10 = arith.constant 0.000000e+00 : f32
    %18 = vector.broadcast %cst_10 : f32 to vector<8x16xf32>
    %19 = arith.maximumf %17, %18 : vector<8x16xf32>
    %20 = math.absf %17 : vector<8x16xf32>
    %cst_11 = arith.constant 0.000000e+00 : f32
    %21 = vector.broadcast %cst_11 : f32 to vector<8x16xf32>
    %22 = arith.subf %21, %20 : vector<8x16xf32>
    %23 = math.exp %22 : vector<8x16xf32>
    %cst_12 = arith.constant 1.000000e+00 : f32
    %24 = vector.broadcast %cst_12 : f32 to vector<8x16xf32>
    %25 = arith.addf %24, %23 : vector<8x16xf32>
    %26 = math.log %25 : vector<8x16xf32>
    %27 = arith.addf %19, %26 : vector<8x16xf32>
    %28 = tpu.iota {dimensions = array<i32: 1>} : vector<8x16xi32>
    %c8_i32 = arith.constant 8 : i32
    %29 = vector.broadcast %c8_i32 : i32 to vector<8x16xi32>
    %30 = arith.cmpi slt, %28, %29 : vector<8x16xi32>
    %cst_13 = arith.constant -1.000000e+30 : f32
    %31 = vector.broadcast %cst_13 : f32 to vector<8x16xf32>
    %32 = arith.select %30, %27, %31 : vector<8x16xi1>, vector<8x16xf32>
    %cst_14 = arith.constant dense<0xFF800000> : vector<8xf32>
    %33 = vector.multi_reduction <maximumf>, %32, %cst_14 [1] : vector<8x16xf32> to vector<8xf32>
    %34 = vector.shape_cast %33 : vector<8xf32> to vector<8x1xf32>
    %35 = arith.maximumf %3, %34 : vector<8x1xf32>
    %36 = arith.subf %3, %35 : vector<8x1xf32>
    %37 = math.exp %36 : vector<8x1xf32>
    %38 = arith.mulf %4, %37 : vector<8x1xf32>
    %39 = vector.broadcast %35 : vector<8x1xf32> to vector<8x16xf32>
    %40 = arith.subf %32, %39 : vector<8x16xf32>
    %41 = math.exp %40 : vector<8x16xf32>
    %cst_15 = arith.constant dense<0.000000e+00> : vector<8xf32>
    %42 = vector.multi_reduction <add>, %41, %cst_15 [1] : vector<8x16xf32> to vector<8xf32>
    %43 = vector.shape_cast %42 : vector<8xf32> to vector<8x1xf32>
    %44 = arith.addf %38, %43 : vector<8x1xf32>
    %45 = math.log %44 : vector<8x1xf32>
    %46 = arith.addf %35, %45 : vector<8x1xf32>
    %c0_16 = arith.constant 0 : index
    %c0_17 = arith.constant 0 : index
    %47 = vector.load %arg5[%c0_16, %c0_17] : memref<8x1xf32, #tpu.memory_space<vmem>>, vector<8x1xf32>
    tpu.vector_store %arg5[%c0_16, %c0_17], %46 {strides = array<i32>} : memref<8x1xf32, #tpu.memory_space<vmem>>, vector<8x1xf32>,
    return
  }
  func.func @transform_0(%arg0: i32) -> (i32, i32) {
    %c0_i32 = arith.constant 0 : i32
    %c0_i32_0 = arith.constant 0 : i32
    return %arg0, %c0_i32 : i32, i32
  }
  func.func @transform_1(%arg0: i32) -> (i32, i32) {
    %c0_i32 = arith.constant 0 : i32
    %c0_i32_0 = arith.constant 0 : i32
    %c0_i32_1 = arith.constant 0 : i32
    return %c0_i32, %c0_i32_0 : i32, i32
  }
  func.func @transform_2(%arg0: i32) -> (i32, i32) {
    %c0_i32 = arith.constant 0 : i32
    %c0_i32_0 = arith.constant 0 : i32
    %c0_i32_1 = arith.constant 0 : i32
    return %c0_i32, %c0_i32_0 : i32, i32
  }
  func.func @transform_3(%arg0: i32) -> (i32, i32) {
    %c0_i32 = arith.constant 0 : i32
    %c0_i32_0 = arith.constant 0 : i32
    %c0_i32_1 = arith.constant 0 : i32
    return %c0_i32, %c0_i32_0 : i32, i32
  }
  func.func @transform_4(%arg0: i32) -> (i32, i32) {
    %c0_i32 = arith.constant 0 : i32
    %c0_i32_0 = arith.constant 0 : i32
    return %arg0, %c0_i32 : i32, i32
  }
}

</mosaic_0001>

<bundles_post_ra>
// kernel: joint_mi_forward.4
= control target key start
LH: loop header
LB: loop body
LE: loop exit
PB: predicated region body
PF: predicated region fallthrough
CT: control target
= control target key end

     0   :  { %vm41_vm0 = vcmask 523264   ;;  %vm595_vm1 = vcmask 7168   ;;  %s1024_s2 = inlined_call_operand.vmem [shape: f32[64,128], index: 2, kind: input, shape index: {}]   ;;  %s1025_s0 = inlined_call_operand.vmem [shape: f32[16,64], index: 0, kind: input, shape index: {}]   ;;  %s1026_s3 = inlined_call_operand.vmem [shape: f32[64,128], index: 3, kind: input, shape index: {}]   ;;  %s1027_s1 = inlined_call_operand.vmem [shape: f32[8,64], index: 1, kind: input, shape index: {}]   ;;  %s1028_s4 = inlined_call_operand.vmem [shape: f32[1,128], index: 4, kind: input, shape index: {}]   ;;  %s1029_s5 = inlined_call_operand.vmem [shape: f32[1,128], index: 5, kind: input, shape index: {}]   ;;  %s1030_s6 = inlined_call_operand.<no memory space> [shape: f32[1,1], index: 6, kind: input, shape index: {}]   ;;  %s1031_s7 = inlined_call_operand.vmem [shape: f32[16,128], index: 7, kind: output, shape index: {0}]   ;;  %s1032_s8 = inlined_call_operand.vmem [shape: f32[8,128], index: 8, kind: output, shape index: {1}]   ;;  %s1033_s9 = inlined_call_operand.vmem [shape: f32[8,1], index: 9, kind: output, shape index: {2}]  }
   0x1   :  { %v40_v0 = vld [vmem:[%s1024_s2 + $0x38] sm:$0xff]  ;;  %v39_v1 = vld [vmem:[%s1024_s2 + $0x30] sm:$0xff]  ;;  %v38_v2 = vld [vmem:[%s1024_s2 + $0x28] sm:$0xff] }
   0x2   :  { %v675_v3 = vand.u32 4294901760, %v40_v0  ;;  %v677_v4 = vand.u32 4294901760, %v39_v1  ;;  %v679_v5 = vand.u32 4294901760, %v38_v2  ;;  %v37_v6 = vld [vmem:[%s1024_s2 + $0x20] sm:$0xff]  ;;  %v36_v7 = vld [vmem:[%s1024_s2 + $0x18] sm:$0xff]  ;;  %v35_v8 = vld [vmem:[%s1024_s2 + $0x10] sm:$0xff] }
   0x3   :  { %v690_v9 = vand.u32 4294901760, %v37_v6  ;;  %v692_v10 = vand.u32 4294901760, %v36_v7  ;;  %v694_v11 = vand.u32 4294901760, %v35_v8  ;;  %v34_v12 = vld [vmem:[%s1024_s2 + $0x8] sm:$0xff]  ;;  %v33_v13 = vld [vmem:[%s1024_s2] sm:$0xff]  ;;  %v324_v36 = vld [vmem:[%s1026_s3 + $0x38] sm:$0xff] }
   0x4   :  { %v31_v14 = vld [vmem:[%s1025_s0] sm:$0xff]  ;;  %57 = vmatpush.msra.mxu0 %v675_v3  ;;  %v707_v15 = vsub.f32 %v40_v0, %v675_v3  ;;  %v710_v16 = vsub.f32 %v39_v1, %v677_v4  ;;  %206 = vmatpush.msra.mxu3 %v675_v3  ;;  %v714_v17 = vsub.f32 %v38_v2, %v679_v5  ;;  %v716_v18 = vand.u32 4294901760, %v34_v12  ;;  %v32_v37 = vld [vmem:[%s1025_s0 + $0x8] sm:$0xff]  ;;  %v323_v42 = vld [vmem:[%s1026_s3 + $0x30] sm:$0xff] }
   0x5   :  { %v719_v19 = vsub.f32 %v37_v6, %v690_v9  ;;  %v722_v20 = vsub.f32 %v36_v7, %v692_v10  ;;  %v724_v21 = vand.u32 4294901760, %v33_v13  ;;  %v727_v22 = vsub.f32 %v35_v8, %v694_v11  ;;  %v322_v45 = vld [vmem:[%s1026_s3 + $0x28] sm:$0xff]  ;;  %v321_v50 = vld [vmem:[%s1026_s3 + $0x20] sm:$0xff]  ;;  %v320_v63 = vld [vmem:[%s1026_s3 + $0x18] sm:$0xff] }
   0x6   :  { %59 = vmatpush.msra.mxu0 %v677_v4  ;;  %164 = vmatpush.msra.mxu2 %v707_v15  ;;  %v99_v23 = vand.u32 4294901760, %v707_v15  ;;  %v105_v24 = vand.u32 4294901760, %v710_v16  ;;  %v111_v25 = vand.u32 4294901760, %v714_v17  ;;  %v43_v26 = vsel %vm41_vm0, %v31_v14, 0 }
   0x7   :  { %208 = vmatpush.msra.mxu3 %v677_v4  ;;  %v117_v27 = vand.u32 4294901760, %v719_v19  ;;  %v737_v28 = vand.u32 4294901760, %v43_v26  ;;  %v123_v29 = vand.u32 4294901760, %v722_v20  ;;  %v741_v30 = vsub.f32 %v34_v12, %v716_v18  ;;  %v319_v12 = vld [vmem:[%s1026_s3 + $0x10] sm:$0xff] }
   0x8   :  { %61 = vmatpush.msra.mxu0 %v679_v5  ;;  %167 = vmatpush.msra.mxu2 %v710_v16  ;;  %v100_v31 = vsub.f32 %v707_v15, %v99_v23  ;;  %v106_v32 = vsub.f32 %v710_v16, %v105_v24  ;;  %v112_v33 = vsub.f32 %v714_v17, %v111_v25  ;;  %v129_v35 = vand.u32 4294901760, %v727_v22 }
   0x9   :  { %210 = vmatpush.msra.mxu3 %v679_v5  ;;  %v756_v34 = vsub.f32 %v43_v26, %v737_v28  ;;  %v118_v40 = vsub.f32 %v719_v19, %v117_v27  ;;  %v771_v41 = vsub.f32 %v33_v13, %v724_v21  ;;  %v124_v44 = vsub.f32 %v722_v20, %v123_v29 }
   0xa   :  { %63 = vmatpush.msra.mxu0 %v690_v9  ;;  %v101_v38 = vand.u32 4294901760, %v100_v31  ;;  %170 = vmatpush.msra.mxu2 %v714_v17  ;;  %v107_v39 = vand.u32 4294901760, %v106_v32  ;;  %v113_v46 = vand.u32 4294901760, %v112_v33  ;;  %v135_v47 = vand.u32 4294901760, %v741_v30 }
   0xb   :  { %212 = vmatpush.msra.mxu3 %v690_v9  ;;  %v74_v43 = vand.u32 4294901760, %v756_v34  ;;  %v786_v48 = vand.u32 4294901760, %v324_v36  ;;  %v46_v49 = vsel %vm41_vm0, %v32_v37, 0  ;;  %v130_v52 = vsub.f32 %v727_v22, %v129_v35 }
   0xc   :  { %65 = vmatpush.msra.mxu0 %v692_v10  ;;  %102 = vmatpush.msra.mxu1 %v101_v38  ;;  %v800_v53 = vand.u32 4294901760, %v46_v49  ;;  %v802_v54 = vand.u32 4294901760, %v323_v42  ;;  %v119_v55 = vand.u32 4294901760, %v118_v40  ;;  %v141_v56 = vand.u32 4294901760, %v771_v41 }
   0xd   :  { %173 = vmatpush.msra.mxu2 %v719_v19  ;;  %214 = vmatpush.msra.mxu3 %v692_v10  ;;  %v75_v51 = vsub.f32 %v756_v34, %v74_v43  ;;  %v807_v57 = vsub.f32 %v324_v36, %v786_v48  ;;  %v809_v58 = vand.u32 4294901760, %v322_v45  ;;  %v819_v62 = vand.u32 4294901760, %v321_v50  ;;  %v318_v36 = vld [vmem:[%s1026_s3 + $0x8] sm:$0xff] }
   0xe   :  { %67 = vmatpush.msra.mxu0 %v694_v11  ;;  %108 = vmatpush.msra.mxu1 %v107_v39  ;;  %v814_v60 = vsub.f32 %v46_v49, %v800_v53  ;;  %v817_v61 = vsub.f32 %v323_v42, %v802_v54  ;;  %v125_v0 = vand.u32 4294901760, %v124_v44  ;;  %v136_v1 = vsub.f32 %v741_v30, %v135_v47  ;;  %v317_v44 = vld [vmem:[%s1026_s3] sm:$0xff] }
   0xf   :  { %176 = vmatpush.msra.mxu2 %v722_v20  ;;  %v76_v59 = vand.u32 4294901760, %v75_v51  ;;  %216 = vmatpush.msra.mxu3 %v694_v11  ;;  %v375_v2 = vand.u32 4294901760, %v807_v57  ;;  %v834_v8 = vsub.f32 %v322_v45, %v809_v58  ;;  %v131_v13 = vand.u32 4294901760, %v130_v52 }
  0x10   :  { %69 = vmatpush.msra.mxu0 %v716_v18  ;;  %114 = vmatpush.msra.mxu1 %v113_v46  ;;  %v82_v6 = vand.u32 4294901760, %v814_v60  ;;  %v381_v7 = vand.u32 4294901760, %v817_v61  ;;  %v142_v14 = vsub.f32 %v771_v41, %v141_v56  ;;  %v846_v31 = vand.u32 4294901760, %v320_v63 }
  0x11   :  { %179 = vmatpush.msra.mxu2 %v727_v22  ;;  %218 = vmatpush.msra.mxu3 %v716_v18  ;;  %v376_v26 = vsub.f32 %v807_v57, %v375_v2  ;;  %v853_v33 = vsub.f32 %v321_v50, %v819_v62  ;;  %v137_v37 = vand.u32 4294901760, %v136_v1  ;;  %v860_v38 = vand.u32 4294901760, %v319_v12  ;;  %v316_v50 = vld [vmem:[%s1027_s1] sm:$0xff] }
  0x12   :  { %71 = vmatpush.msra.mxu0 %v724_v21  ;;  %120 = vmatpush.msra.mxu1 %v119_v55  ;;  %v83_v32 = vsub.f32 %v814_v60, %v82_v6  ;;  %v382_v40 = vsub.f32 %v817_v61, %v381_v7  ;;  %v387_v42 = vand.u32 4294901760, %v834_v8  ;;  %v143_v15 = vand.u32 4294901760, %v142_v14 }
  0x13   :  { %77 = vmatmul.f32.vlgmr.msra.gmra.mxu0 %v76_v59  ;;  %182 = vmatpush.msra.mxu2 %v741_v30  ;;  %v377_v39 = vand.u32 4294901760, %v376_v26  ;;  %v876_v45 = vand.u32 4294901760, %v318_v36  ;;  %v393_v49 = vand.u32 4294901760, %v853_v33  ;;  %v885_v16 = vsub.f32 %v319_v12, %v860_v38  ;;  %v609_v26 = vld [vmem:[%s1028_s4] ss:$0 sm:$0xff] }
  0x14   :  { %126 = vmatpush.msra.mxu1 %v125_v0  ;;  %245 = vmatpush.msrb.mxu0 %v99_v23  ;;  %v874_v23 = vsub.f32 %v320_v63, %v846_v31  ;;  %v84_v46 = vand.u32 4294901760, %v83_v32  ;;  %v330_v52 = vsel %vm41_vm0, %v316_v50, 0 }
  0x15   :  { %185 = vmatpush.msra.mxu2 %v771_v41  ;;  %220 = vmatpush.msra.mxu3 %v724_v21  ;;  %v394_v51 = vsub.f32 %v853_v33, %v393_v49  ;;  %v405_v19 = vand.u32 4294901760, %v885_v16  ;;  %v921_v63 = vand.u32 4294901760, %v330_v52 }
  0x16   :  { %132 = vmatpush.msra.mxu1 %v131_v13  ;;  %249 = vmatpush.msrb.mxu0 %v105_v24  ;;  %v887_v24 = vand.u32 4294901760, %v317_v44  ;;  %v399_v17 = vand.u32 4294901760, %v874_v23 }
  0x17   :  { %188 = vmatmul.f32.vlgmr.msra.gmra.mxu2 %v756_v34  ;;  %224 = vmatmul.f32.vlgmr.msra.gmra.mxu3 %v74_v43  ;;  %v383_v34 = vand.u32 4294901760, %v382_v40  ;;  %v388_v43 = vsub.f32 %v834_v8, %v387_v42  ;;  %v395_v20 = vand.u32 4294901760, %v394_v51 }
  0x18   :  { %138 = vmatpush.msra.mxu1 %v137_v37  ;;  %253 = vmatpush.msrb.mxu0 %v111_v25  ;;  %v900_v25 = vsub.f32 %v318_v36, %v876_v45 }
  0x19   :  { %341 = vmatpush.msrb.mxu2 %v786_v48  ;;  %378 = vmatpush.msrb.mxu3 %v377_v39  ;;  %v389_v55 = vand.u32 4294901760, %v388_v43 }
  0x1a   :  { %144 = vmatpush.msra.mxu1 %v143_v15  ;;  %257 = vmatpush.msrb.mxu0 %v117_v27  ;;  %v911_v27 = vsub.f32 %v317_v44, %v887_v24  ;;  %v411_v59 = vand.u32 4294901760, %v900_v25 }
  0x1b   :  { %85 = vmatmul.f32.gmra.mxu0 %v84_v46  ;;  %146 = vmatmul.f32.vlgmr.msra.gmra.mxu1 %v737_v28 }
  0x1c   :  { %292 = vmatpush.msrb.mxu1 %v675_v3  ;;  %343 = vmatpush.msrb.mxu2 %v802_v54  ;;  %v400_v3 = vsub.f32 %v874_v23, %v399_v17 }
  0x1d   :  { %261 = vmatpush.msrb.mxu0 %v123_v29  ;;  %384 = vmatpush.msrb.mxu3 %v383_v34  ;;  %v417_v29 = vand.u32 4294901760, %v911_v27 }
  0x1e   :  { %294 = vmatpush.msrb.mxu1 %v677_v4  ;;  %345 = vmatpush.msrb.mxu2 %v809_v58  ;;  %v406_v4 = vsub.f32 %v885_v16, %v405_v19  ;;  %v401_v22 = vand.u32 4294901760, %v400_v3 }
  0x1f   :  { %265 = vmatpush.msrb.mxu0 %v129_v35  ;;  %193 = vmatmul.f32.gmra.mxu2 %v814_v60  ;;  %v941_v35 = vsub.f32 %v330_v52, %v921_v63 }
  0x20   :  { %296 = vmatpush.msrb.mxu1 %v679_v5  ;;  %347 = vmatpush.msrb.mxu2 %v819_v62  ;;  %v412_v5 = vsub.f32 %v900_v25, %v411_v59  ;;  %v407_v30 = vand.u32 4294901760, %v406_v4 }
  0x21   :  { %390 = vmatpush.msrb.mxu3 %v389_v55  ;;  %269 = vmatpush.msrb.mxu0 %v135_v47  ;;  %v418_v47 = vsub.f32 %v911_v27, %v417_v29  ;;  %v358_v60 = vand.u32 4294901760, %v941_v35 }
  0x22   :  { %230 = vmatmul.f32.gmra.mxu3 %v82_v6  ;;  %298 = vmatpush.msrb.mxu1 %v690_v9  ;;  %v413_v9 = vand.u32 4294901760, %v412_v5 }
  0x23   :  { %349 = vmatpush.msrb.mxu2 %v846_v31  ;;  %396 = vmatpush.msrb.mxu3 %v395_v20  ;;  %v419_v41 = vand.u32 4294901760, %v418_v47 }
  0x24   :  { %273 = vmatpush.msrb.mxu0 %v141_v56  ;;  %150 = vmatmul.f32.gmra.mxu1 %v800_v53 }
  0x25   :  { %275 = vmatmul.f32.vlgmr.msrb.gmra.mxu0 %v737_v28  ;;  %300 = vmatpush.msrb.mxu1 %v692_v10  ;;  %v359_v10 = vsub.f32 %v941_v35, %v358_v60 }
  0x26   :  { %351 = vmatpush.msrb.mxu2 %v860_v38  ;;  %402 = vmatpush.msrb.mxu3 %v401_v22 }
  0x27   :  { %302 = vmatpush.msrb.mxu1 %v694_v11  ;;  %436 = vmatpush.msra.mxu0 %v807_v57  ;;  %v360_v11 = vand.u32 4294901760, %v359_v10 }
  0x28   :  { %353 = vmatpush.msrb.mxu2 %v876_v45  ;;  %408 = vmatpush.msrb.mxu3 %v407_v30 }
  0x29   :  { %304 = vmatpush.msrb.mxu1 %v716_v18  ;;  %439 = vmatpush.msra.mxu0 %v817_v61 }
  0x2a   :  { %355 = vmatpush.msrb.mxu2 %v887_v24  ;;  %414 = vmatpush.msrb.mxu3 %v413_v9 }
  0x2b   :  { %306 = vmatpush.msrb.mxu1 %v724_v21  ;;  %442 = vmatpush.msra.mxu0 %v834_v8 }
  0x2c   :  { %506 = vmatpush.msra.mxu2 %v375_v2  ;;  %420 = vmatpush.msrb.mxu3 %v419_v41 }
  0x2d   :  { %308 = vmatmul.f32.vlgmr.msrb.gmra.mxu1 %v737_v28  ;;  %279 = vmatmul.f32.gmra.mxu0 %v800_v53 }
  0x2e   :  { %510 = vmatpush.msra.mxu2 %v381_v7  ;;  %549 = vmatpush.msra.mxu3 %v786_v48  ;;  %v15_v7 = vstv %s1030_s6 }
  0x2f   :  { %473 = vmatpush.msra.mxu1 %v786_v48  ;;  %361 = vmatmul.f32.vlgmr.msrb.gmra.mxu2 %v360_v11  ;;  %16 = vst [vmem:[#allocation2] sm:$0x1] %v15_v7 }
  0x30   :  { %514 = vmatpush.msra.mxu2 %v387_v42  ;;  %551 = vmatpush.msra.mxu3 %v802_v54 }
  0x31   :  { %475 = vmatpush.msra.mxu1 %v802_v54  ;;  %445 = vmatpush.msra.mxu0 %v853_v33 }
  0x32   :  { %518 = vmatpush.msra.mxu2 %v393_v49  ;;  %553 = vmatpush.msra.mxu3 %v809_v58 }
  0x33   :  { %477 = vmatpush.msra.mxu1 %v809_v58  ;;  %448 = vmatpush.msra.mxu0 %v874_v23 }
  0x34   :  { %522 = vmatpush.msra.mxu2 %v399_v17  ;;  %555 = vmatpush.msra.mxu3 %v819_v62 }
  0x35   :  { %422 = vmatmul.f32.vlgmr.msrb.gmra.mxu3 %v921_v63  ;;  %479 = vmatpush.msra.mxu1 %v819_v62 }
  0x36   :  { %526 = vmatpush.msra.mxu2 %v405_v19  ;;  %557 = vmatpush.msra.mxu3 %v846_v31  ;;  %v611_v43 = vld [vmem:[#allocation2] ss:$0 sm:$0xff] }
  0x37   :  { %312 = vmatmul.f32.gmra.mxu1 %v800_v53  ;;  %451 = vmatpush.msra.mxu0 %v885_v16 }
  0x38   :  { %481 = vmatpush.msra.mxu1 %v846_v31  ;;  %530 = vmatpush.msra.mxu2 %v411_v59 }
  0x39   :  { %559 = vmatpush.msra.mxu3 %v860_v38  ;;  %454 = vmatpush.msra.mxu0 %v900_v25 }
  0x3a   :  { %483 = vmatpush.msra.mxu1 %v860_v38  ;;  %534 = vmatpush.msra.mxu2 %v417_v29 }
  0x3b   :  { %561 = vmatpush.msra.mxu3 %v876_v45  ;;  %457 = vmatpush.msra.mxu0 %v911_v27 }
  0x3c   :  { %485 = vmatpush.msra.mxu1 %v876_v45  ;;  %536 = vmatmul.f32.vlgmr.msra.gmra.mxu2 %v921_v63 }
  0x3d   :  { %563 = vmatpush.msra.mxu3 %v887_v24  ;;  %460 = vmatmul.f32.vlgmr.msra.gmra.mxu0 %v941_v35 }
  0x3e   :  { %487 = vmatpush.msra.mxu1 %v887_v24  ;;  %565 = vmatmul.f32.vlgmr.msra.gmra.mxu3 %v921_v63  ;;  %v610_v24 = vld [vmem:[%s1029_s5] ss:$0 sm:$0xff] }
  0x3f   :  { %491 = vmatmul.f32.vlgmr.msra.gmra.mxu1 %v358_v60 }
  0x90   :  { %v78_v18 = vpop.f32.mrf.mxu0 }
  0x98   :  { %v147_v21 = vpop.f32.mrf.mxu1  ;;  %v86_v28 = vpop.f32.mrf.mxu0 }
  0x99   :  { %v148_v48 = vadd.f32 %v147_v21, %v78_v18 }
  0x9a   :  { %v189_v53 = vpop.f32.mrf.mxu2  ;;  %v225_v57 = vpop.f32.mrf.mxu3 }
  0x9b   :  { %v190_v56 = vadd.f32 %v189_v53, %v148_v48 }
  0x9d   :  { %v226_v61 = vadd.f32 %v225_v57, %v190_v56 }
  0xa1   :  { %v151_v54 = vpop.f32.mrf.mxu1 }
  0xa2   :  { %v276_v58 = vpop.f32.mrf.mxu0  ;;  %v152_v0 = vadd.f32 %v151_v54, %v86_v28  ;;  %v194_v2 = vpop.f32.mrf.mxu2 }
  0xa3   :  { %v277_v62 = vadd.f32 %v276_v58, %v226_v61 }
  0xa4   :  { %v195_v8 = vadd.f32 %v194_v2, %v152_v0 }
  0xa5   :  { %v231_v12 = vpop.f32.mrf.mxu3 }
  0xa6   :  { %v232_v14 = vadd.f32 %v231_v12, %v195_v8 }
  0xaa   :  { %v309_v1 = vpop.f32.mrf.mxu1  ;;  %v280_v13 = vpop.f32.mrf.mxu0 }
  0xab   :  { %v310_v6 = vadd.f32 %v309_v1, %v277_v62  ;;  %v281_v31 = vadd.f32 %v280_v13, %v232_v14 }
  0xad   :  { %569 = vst [vmem:[%s1031_s7] sm:$0xff] %v310_v6 }
  0xb2   :  { %v362_v36 = vpop.f32.mrf.mxu2 }
  0xb3   :  { %v363_v37 = vadd.f32 %v609_v26, %v362_v36 }
  0xb4   :  { %v313_v32 = vpop.f32.mrf.mxu1 }
  0xb5   :  { %v314_v33 = vadd.f32 %v313_v32, %v281_v31 }
  0xb7   :  { %570 = vst [vmem:[%s1031_s7 + $0x8] sm:$0xff] %v314_v33 }
  0xb8   :  { %v423_v38 = vpop.f32.mrf.mxu3 }
  0xb9   :  { %v424_v39 = vadd.f32 %v423_v38, %v363_v37 }
  0xba   :  { %v461_v40 = vpop.f32.mrf.mxu0 }
  0xbb   :  { %v462_v42 = vadd.f32 %v461_v40, %v424_v39 }
  0xbc   :  { %v492_v44 = vpop.f32.mrf.mxu1 }
  0xbd   :  { %v493_v15 = vadd.f32 %v492_v44, %v462_v42 }
  0xbf   :  { %v537_v23 = vpop.f32.mrf.mxu2 }
  0xc0   :  { %v538_v45 = vadd.f32 %v537_v23, %v493_v15 }
  0xc1   :  { %v566_v46 = vpop.f32.mrf.mxu3 }
  0xc2   :  { %v567_v49 = vadd.f32 %v566_v46, %v538_v45 }
  0xc4   :  { %571 = vst [vmem:[%s1032_s8] sm:$0xff] %v567_v49  ;;  %v572_v16 = vadd.f32 %v567_v49, %v310_v6 }
  0xc6   :  { %v573_v50 = vmax.f32 %v572_v16, 0.0 }
  0xc8   :  { %v578_v34 = vmul.f32 %v610_v24, %v573_v50 }
  0xca   :  { %579 = vadd.xlane.f32.xlu0 %v578_v34 }
 0x13d   :  { %v580_v17 = vpop.xlane.xlu0 %579 }
 0x13e   :  { %v585_v25 = vadd.f32 %v611_v43, %v580_v17 }
 0x140   :  { %v587_v51 = vand.u32 2147483647, %v585_v25  ;;  %v586_v59 = vmax.f32 %v585_v25, 0.0 }
 0x142   :  { %v588_v52 = vsub.f32 0.0, %v587_v51 }
 0x144   :  { %v589_v19 = vmul.f32 1.442695, %v588_v52 }
 0x146   :  { %612 = vpow2.f32 %v589_v19 }
 0x14c   :  { %v613_v27 = vpop.eup %612 }
 0x14d   :  { %v591_v55 = vadd.f32 1.0, %v613_v27 }
 0x14f   :  { %614 = vlog2.f32 %v591_v55 }
 0x155   :  { %v615_v3 = vpop.eup %614 }
 0x156   :  { %v593_v63 = vmul.f32 0.6931472, %v615_v3 }
 0x158   :  { %v594_v20 = vadd.f32 %v593_v63, %v586_v59 }
 0x15a   :  { %596 = vst.msk [vmem:[%s1033_s9] sm:$0xff] %vm595_vm1, %v594_v20 }

// kernel: joint_mi_forward.5
= control target key start
LH: loop header
LB: loop body
LE: loop exit
PB: predicated region body
PF: predicated region fallthrough
CT: control target
= control target key end

     0   :  { %vm1137_vm0 = vcmask 130112   ;;  %vm1160_vm1 = vcmask 1041409   ;;  %vm1162_vm2 = vcmask 1042434   ;;  %vm1164_vm3 = vcmask 1043459   ;;  %s2077_s2 = inlined_call_operand.vmem [shape: f32[128,1], index: 2, kind: input, shape index: {}]   ;;  %s2078_s0 = inlined_call_operand.vmem [shape: f32[8,128], index: 0, kind: input, shape index: {}]   ;;  %s2079_s1 = inlined_call_operand.vmem [shape: f32[16,128], index: 1, kind: input, shape index: {}]   ;;  %s2080_s3 = inlined_call_operand.<no memory space> [shape: f32[1,1], index: 3, kind: input, shape index: {}]   ;;  %s2081_s4 = inlined_call_operand.vmem [shape: f32[8,1], index: 4, kind: output, shape index: {}]  }
   0x1   :  { %v35_v0 = vld [vmem:[%s2077_s2 + $0x78] sm:$0xff]  ;;  %v34_v1 = vld [vmem:[%s2077_s2 + $0x70] sm:$0xff]  ;;  %v33_v2 = vld [vmem:[%s2077_s2 + $0x68] sm:$0xff]  ;;  %vm1166_vm4 = vcmask 1044484   ;;  %vm1168_vm5 = vcmask 1045509   ;;  %vm1170_vm6 = vcmask 1046534  }
   0x2   :  { %v1343_v3 = vand.u32 4294901760, %v35_v0  ;;  %v1345_v4 = vand.u32 4294901760, %v34_v1  ;;  %v1347_v5 = vand.u32 4294901760, %v33_v2  ;;  %v32_v6 = vld [vmem:[%s2077_s2 + $0x60] sm:$0xff]  ;;  %v31_v7 = vld [vmem:[%s2077_s2 + $0x58] sm:$0xff]  ;;  %v30_v8 = vld [vmem:[%s2077_s2 + $0x50] sm:$0xff] }
   0x3   :  { %v1358_v9 = vand.u32 4294901760, %v32_v6  ;;  %v1360_v10 = vand.u32 4294901760, %v31_v7  ;;  %v1362_v11 = vand.u32 4294901760, %v30_v8  ;;  %v29_v12 = vld [vmem:[%s2077_s2 + $0x48] sm:$0xff]  ;;  %v28_v13 = vld [vmem:[%s2077_s2 + $0x40] sm:$0xff]  ;;  %v27_v17 = vld [vmem:[%s2077_s2 + $0x38] sm:$0xff] }
   0x4   :  { %1201 = vmatpush.msra.mxu2 %v1343_v3  ;;  %v1372_v14 = vsub.f32 %v35_v0, %v1343_v3  ;;  %v1375_v15 = vsub.f32 %v34_v1, %v1345_v4  ;;  %v1378_v16 = vsub.f32 %v33_v2, %v1347_v5  ;;  %96 = vmatpush.msra.mxu0 %v1343_v3  ;;  %v1384_v18 = vand.u32 4294901760, %v29_v12  ;;  %v26_v25 = vld [vmem:[%s2077_s2 + $0x30] sm:$0xff]  ;;  %v25_v26 = vld [vmem:[%s2077_s2 + $0x28] sm:$0xff]  ;;  %v24_v34 = vld [vmem:[%s2077_s2 + $0x20] sm:$0xff] }
   0x5   :  { %v1387_v19 = vsub.f32 %v32_v6, %v1358_v9  ;;  %v1390_v20 = vsub.f32 %v31_v7, %v1360_v10  ;;  %v1396_v24 = vand.u32 4294901760, %v28_v13  ;;  %v1406_v28 = vand.u32 4294901760, %v27_v17  ;;  %v23_v44 = vld [vmem:[%s2077_s2 + $0x18] sm:$0xff]  ;;  %v1458_v49 = vld [vmem:[%s2078_s0] sm:$0xff]  ;;  %v22_v52 = vld [vmem:[%s2077_s2 + $0x10] sm:$0xff] }
   0x6   :  { %1202 = vmatpush.msra.mxu2 %v1345_v4  ;;  %v2096_v21 = vand.u32 4294901760, %v1372_v14  ;;  %v2095_v22 = vand.u32 4294901760, %v1375_v15  ;;  %v2094_v23 = vand.u32 4294901760, %v1378_v16  ;;  %98 = vmatpush.msra.mxu0 %v1345_v4  ;;  %v1409_v29 = vsub.f32 %v30_v8, %v1362_v11  ;;  %v21_v59 = vld [vmem:[%s2077_s2 + $0x8] sm:$0xff]  ;;  %v1497_v2 = vld [vmem:[%s2079_s1] sm:$0xff] }
   0x7   :  { %v2092_v27 = vand.u32 4294901760, %v1387_v19  ;;  %v2090_v33 = vand.u32 4294901760, %v1390_v20  ;;  %v1429_v36 = vand.u32 4294901760, %v26_v25  ;;  %v1431_v37 = vand.u32 4294901760, %v25_v26  ;;  %v20_v8 = vld [vmem:[%s2077_s2] sm:$0xff] }
   0x8   :  { %1203 = vmatpush.msra.mxu2 %v1347_v5  ;;  %v259_v30 = vsub.f32 %v1372_v14, %v2096_v21  ;;  %v265_v31 = vsub.f32 %v1375_v15, %v2095_v22  ;;  %v271_v32 = vsub.f32 %v1378_v16, %v2094_v23  ;;  %100 = vmatpush.msra.mxu0 %v1347_v5  ;;  %v2089_v41 = vand.u32 4294901760, %v1409_v29 }
   0x9   :  { %v277_v35 = vsub.f32 %v1387_v19, %v2092_v27  ;;  %v1434_v38 = vsub.f32 %v29_v12, %v1384_v18  ;;  %v1440_v42 = vsub.f32 %v28_v13, %v1396_v24  ;;  %v1442_v43 = vand.u32 4294901760, %v24_v34 }
   0xa   :  { %1204 = vmatpush.msra.mxu2 %v1358_v9  ;;  %v260_v39 = vand.u32 4294901760, %v259_v30  ;;  %v266_v40 = vand.u32 4294901760, %v265_v31  ;;  %102 = vmatpush.msra.mxu0 %v1358_v9  ;;  %v272_v45 = vand.u32 4294901760, %v271_v32  ;;  %v283_v46 = vsub.f32 %v1390_v20, %v2090_v33  ;;  %v1525_v30 = vld [vmem:[%s2079_s1 + $0x8] sm:$0xff] }
   0xb   :  { %v2087_v47 = vand.u32 4294901760, %v1434_v38  ;;  %v1453_v48 = vsub.f32 %v27_v17, %v1406_v28  ;;  %v278_v50 = vand.u32 4294901760, %v277_v35  ;;  %v2086_v51 = vand.u32 4294901760, %v1440_v42 }
   0xc   :  { %1205 = vmatpush.msra.mxu2 %v1360_v10  ;;  %1217 = vmatpush.msra.mxu3 %v260_v39  ;;  %v1466_v53 = vsub.f32 %v26_v25, %v1429_v36  ;;  %v289_v54 = vsub.f32 %v1409_v29, %v2089_v41  ;;  %v1472_v55 = vand.u32 4294901760, %v23_v44  ;;  %v1476_v57 = vsub.f32 %v25_v26, %v1431_v37 }
   0xd   :  { %261 = vmatpush.msra.mxu1 %v260_v39  ;;  %104 = vmatpush.msra.mxu0 %v1360_v10  ;;  %v2085_v56 = vand.u32 4294901760, %v1453_v48  ;;  %v1484_v60 = vsub.f32 %v24_v34, %v1442_v43  ;;  %v43_v61 = vrot.slane %v1458_v49, 4  ;;  %v284_v62 = vand.u32 4294901760, %v283_v46 }
   0xe   :  { %1206 = vmatpush.msra.mxu2 %v1362_v11  ;;  %1218 = vmatpush.msra.mxu3 %v266_v40  ;;  %v2084_v58 = vand.u32 4294901760, %v1466_v53  ;;  %v295_v63 = vsub.f32 %v1434_v38, %v2087_v47  ;;  %v1491_v0 = vand.u32 4294901760, %v22_v52  ;;  %v2083_v1 = vand.u32 4294901760, %v1476_v57 }
   0xf   :  { %267 = vmatpush.msra.mxu1 %v266_v40  ;;  %106 = vmatpush.msra.mxu0 %v1362_v11  ;;  %v301_v6 = vsub.f32 %v1440_v42, %v2086_v51  ;;  %v1505_v7 = vsub.f32 %v1453_v48, %v2085_v56  ;;  %v51_v12 = vperm.slane %v43_v61, 0  ;;  %v290_v13 = vand.u32 4294901760, %v289_v54 }
  0x10   :  { %1207 = vmatpush.msra.mxu2 %v1384_v18  ;;  %1219 = vmatpush.msra.mxu3 %v272_v45  ;;  %v1515_v17 = vsub.f32 %v1466_v53, %v2084_v58  ;;  %v1517_v25 = vand.u32 4294901760, %v21_v59  ;;  %v1520_v26 = vsub.f32 %v23_v44, %v1472_v55  ;;  %v2082_v31 = vand.u32 4294901760, %v1484_v60 }
  0x11   :  { %273 = vmatpush.msra.mxu1 %v272_v45  ;;  %108 = vmatpush.msra.mxu0 %v1384_v18  ;;  %v71_v32 = vadd.f32 %v51_v12, %v1497_v2  ;;  %v296_v34 = vand.u32 4294901760, %v295_v63  ;;  %v1534_v35 = vsub.f32 %v1476_v57, %v2083_v1  ;;  %v1536_v39 = vand.u32 4294901760, %v20_v8 }
  0x12   :  { %1208 = vmatpush.msra.mxu2 %v1396_v24  ;;  %1220 = vmatpush.msra.mxu3 %v278_v50  ;;  %v1539_v40 = vsub.f32 %v22_v52, %v1491_v0  ;;  %v302_v44 = vand.u32 4294901760, %v301_v6  ;;  %v308_v45 = vand.u32 4294901760, %v1505_v7  ;;  %v314_v54 = vand.u32 4294901760, %v1515_v17 }
  0x13   :  { %279 = vmatpush.msra.mxu1 %v278_v50  ;;  %110 = vmatpush.msra.mxu0 %v1396_v24  ;;  %v87_v46 = vmax.f32 %v71_v32, 0.0  ;;  %v72_v50 = vadd.f32 %v51_v12, %v1525_v30  ;;  %v2088_v61 = vand.u32 4294901760, %v1520_v26  ;;  %v1548_v63 = vsub.f32 %v21_v59, %v1517_v25 }
  0x14   :  { %1209 = vmatpush.msra.mxu2 %v1406_v28  ;;  %1221 = vmatpush.msra.mxu3 %v284_v62  ;;  %v47_v52 = vperm.slane %v1458_v49, 0  ;;  %v44_v12 = vrot.slane %v1458_v49, 5  ;;  %v320_v59 = vand.u32 4294901760, %v1534_v35  ;;  %v2093_v17 = vand.u32 4294901760, %v1539_v40 }
  0x15   :  { %285 = vmatpush.msra.mxu1 %v284_v62  ;;  %112 = vmatpush.msra.mxu0 %v1406_v28  ;;  %v1554_v62 = vsub.f32 %v1484_v60, %v2082_v31  ;;  %v1556_v6 = vand.u32 4294901760, %v87_v46  ;;  %v88_v7 = vmax.f32 %v72_v50, 0.0  ;;  %v40_v58 = vrot.slane %v1458_v49, 1 }
  0x16   :  { %1210 = vmatpush.msra.mxu2 %v1429_v36  ;;  %1222 = vmatpush.msra.mxu3 %v290_v13  ;;  %v64_v32 = vadd.f32 %v47_v52, %v1525_v30  ;;  %v52_v1 = vperm.slane %v44_v12, 0  ;;  %v331_v35 = vsub.f32 %v1520_v26, %v2088_v61  ;;  %v2097_v51 = vand.u32 4294901760, %v1548_v63 }
  0x17   :  { %291 = vmatpush.msra.mxu1 %v290_v13  ;;  %114 = vmatpush.msra.mxu0 %v1429_v36  ;;  %v63_v13 = vadd.f32 %v47_v52, %v1497_v2  ;;  %v1566_v31 = vsub.f32 %v87_v46, %v1556_v6  ;;  %v1569_v50 = vand.u32 4294901760, %v88_v7  ;;  %v1577_v52 = vsub.f32 %v20_v8, %v1536_v39 }
  0x18   :  { %1211 = vmatpush.msra.mxu2 %v1431_v37  ;;  %1223 = vmatpush.msra.mxu3 %v296_v34  ;;  %v80_v46 = vmax.f32 %v64_v32, 0.0  ;;  %v73_v47 = vadd.f32 %v52_v1, %v1497_v2  ;;  %v326_v8 = vand.u32 4294901760, %v1554_v62  ;;  %v74_v33 = vadd.f32 %v52_v1, %v1525_v30 }
  0x19   :  { %297 = vmatpush.msra.mxu1 %v296_v34  ;;  %2104 = vst [vmem:[#allocation3_spill] sm:$0xff] %v1566_v31  ;;  %116 = vmatpush.msra.mxu0 %v1431_v37  ;;  %v79_v34 = vmax.f32 %v63_v13, 0.0  ;;  %v2091_v56 = vand.u32 4294901760, %v1566_v31  ;;  %v1583_v12 = vsub.f32 %v88_v7, %v1569_v50  ;;  %v337_v7 = vsub.f32 %v1539_v40, %v2093_v17 }
  0x1a   :  { %1212 = vmatpush.msra.mxu2 %v1442_v43  ;;  %1224 = vmatpush.msra.mxu3 %v302_v44  ;;  %v1590_v13 = vand.u32 4294901760, %v80_v46  ;;  %v89_v41 = vmax.f32 %v73_v47, 0.0  ;;  %v2100_v62 = vand.u32 4294901760, %v1577_v52  ;;  %v343_v23 = vsub.f32 %v1548_v63, %v2097_v51 }
  0x1b   :  { %303 = vmatpush.msra.mxu1 %v302_v44  ;;  %118 = vmatpush.msra.mxu0 %v1442_v43  ;;  %v1588_v61 = vand.u32 4294901760, %v79_v34  ;;  %v48_v44 = vperm.slane %v40_v58, 0  ;;  %v194_v32 = vsub.f32 %v1566_v31, %v2091_v56  ;;  %v338_v22 = vand.u32 4294901760, %v337_v7 }
  0x1c   :  { %1213 = vmatpush.msra.mxu2 %v1472_v55  ;;  %1225 = vmatpush.msra.mxu3 %v308_v45  ;;  %v1609_v47 = vand.u32 4294901760, %v89_v41  ;;  %v1612_v1 = vsub.f32 %v80_v46, %v1590_v13  ;;  %v90_v21 = vmax.f32 %v74_v33, 0.0  ;;  %v349_v46 = vsub.f32 %v1577_v52, %v2100_v62 }
  0x1d   :  { %309 = vmatpush.msra.mxu1 %v308_v45  ;;  %120 = vmatpush.msra.mxu0 %v1472_v55  ;;  %v1603_v58 = vsub.f32 %v79_v34, %v1588_v61  ;;  %v65_v56 = vadd.f32 %v48_v44, %v1497_v2  ;;  %v45_v45 = vrot.slane %v1458_v49, 6  ;;  %v195_v27 = vand.u32 4294901760, %v194_v32 }
  0x1e   :  { %1214 = vmatpush.msra.mxu2 %v1491_v0  ;;  %1226 = vmatpush.msra.mxu3 %v314_v54  ;;  %v332_v34 = vand.u32 4294901760, %v331_v35  ;;  %v66_v17 = vadd.f32 %v48_v44, %v1525_v30  ;;  %v137_v7 = vand.u32 4294901760, %v1612_v1  ;;  %v344_v62 = vand.u32 4294901760, %v343_v23 }
  0x1f   :  { %315 = vmatpush.msra.mxu1 %v314_v54  ;;  %122 = vmatpush.msra.mxu0 %v1491_v0  ;;  %v2101_v32 = vand.u32 4294901760, %v1603_v58  ;;  %v81_v54 = vmax.f32 %v65_v56, 0.0  ;;  %v53_v51 = vperm.slane %v45_v45, 0  ;;  %v2105_v56 = vand.u32 4294901760, %v1583_v12 }
  0x20   :  { %1215 = vmatpush.msra.mxu2 %v1517_v25  ;;  %1227 = vmatpush.msra.mxu3 %v320_v59  ;;  %v82_v44 = vmax.f32 %v66_v17, 0.0  ;;  %v2106_v17 = vand.u32 4294901760, %v1372_v14  ;;  %vm1172_vm7 = vcmask 1047559   ;;  %vm1176_vm9 = vcmask 130048  }
  0x21   :  { %321 = vmatpush.msra.mxu1 %v320_v59  ;;  %124 = vmatpush.msra.mxu0 %v1517_v25  ;;  %v130_v35 = vsub.f32 %v1603_v58, %v2101_v32  ;;  %v202_v33 = vsub.f32 %v1583_v12, %v2105_v56  ;;  %v1632_v59 = vsub.f32 %v89_v41, %v1609_v47  ;;  %v1635_v31 = vand.u32 4294901760, %v81_v54 }
  0x22   :  { %1216 = vmatpush.msra.mxu2 %v1536_v39  ;;  %1228 = vmatpush.msra.mxu3 %v326_v8  ;;  %v75_v41 = vadd.f32 %v53_v51, %v1497_v2  ;;  %v41_v56 = vrot.slane %v1458_v49, 2  ;;  %vm1195_vm10 = vcmask 7168  }
  0x23   :  { %196 = vmatmul.f32.vlgmr.msra.gmra.mxu2 %v195_v27  ;;  %327 = vmatpush.msra.mxu1 %v326_v8  ;;  %v131_v45 = vand.u32 4294901760, %v130_v35  ;;  %v1639_v27 = vand.u32 4294901760, %v90_v21  ;;  %v350_v8 = vand.u32 4294901760, %v349_v46  ;;  %v203_v32 = vand.u32 4294901760, %v202_v33 }
  0x24   :  { %1229 = vmatpush.msra.mxu3 %v332_v34  ;;  %419 = vmatpush.msrb.mxu2 %v1372_v14  ;;  %v2102_v23 = vand.u32 4294901760, %v1632_v59  ;;  %v1649_v35 = vsub.f32 %v81_v54, %v1635_v31  ;;  %v49_v46 = vperm.slane %v41_v56, 0  ;;  %v91_v33 = vmax.f32 %v75_v41, 0.0 }
  0x25   :  { %333 = vmatpush.msra.mxu1 %v332_v34  ;;  %126 = vmatpush.msra.mxu0 %v1536_v39  ;;  %v138_v34 = vsub.f32 %v1612_v1, %v137_v7 }
  0x26   :  { %1230 = vmatpush.msra.mxu3 %v338_v22  ;;  %422 = vmatpush.msrb.mxu2 %v1375_v15  ;;  %v210_v54 = vsub.f32 %v1632_v59, %v2102_v23  ;;  %v145_v14 = vand.u32 4294901760, %v1649_v35  ;;  %v67_v56 = vadd.f32 %v49_v46, %v1497_v2  ;;  %v1673_v41 = vand.u32 4294901760, %v91_v33 }
  0x27   :  { %339 = vmatpush.msra.mxu1 %v338_v22  ;;  %132 = vmatmul.f32.vlgmr.msra.gmra.mxu0 %v131_v45  ;;  %v1655_v22 = vsub.f32 %v90_v21, %v1639_v27  ;;  %v1658_v45 = vand.u32 4294901760, %v82_v44  ;;  %v2107_v21 = vand.u32 4294901760, %v1375_v15 }
  0x28   :  { %1231 = vmatpush.msra.mxu3 %v344_v62  ;;  %425 = vmatpush.msrb.mxu2 %v1378_v16  ;;  %v211_v23 = vand.u32 4294901760, %v210_v54  ;;  %v146_v15 = vsub.f32 %v1649_v35, %v145_v14 }
  0x29   :  { %345 = vmatpush.msra.mxu1 %v344_v62  ;;  %678 = vmatpush.msrb.mxu0 %v2106_v17  ;;  %v139_v62 = vand.u32 4294901760, %v138_v34  ;;  %v1676_v34 = vsub.f32 %v82_v44, %v1658_v45  ;;  %v76_v17 = vadd.f32 %v53_v51, %v1525_v30  ;;  %v2108_v51 = vand.u32 4294901760, %v1378_v16 }
  0x2a   :  { %1232 = vmatpush.msra.mxu3 %v350_v8  ;;  %428 = vmatpush.msrb.mxu2 %v1387_v19  ;;  %v1695_v44 = vsub.f32 %v91_v33, %v1673_v41  ;;  %v68_v16 = vadd.f32 %v49_v46, %v1525_v30 }
  0x2b   :  { %204 = vmatmul.f32.gmra.mxu2 %v203_v32  ;;  %385 = vmatmul.f32.vlgmr.msra.gmra.mxu3 %v1556_v6  ;;  %v2103_v32 = vand.u32 4294901760, %v1655_v22  ;;  %v153_v54 = vand.u32 4294901760, %v1676_v34 }
  0x2c   :  { %547 = vmatpush.msrb.mxu3 %v1343_v3  ;;  %351 = vmatpush.msra.mxu1 %v350_v8  ;;  %v46_v8 = vrot.slane %v1458_v49, 7 }
  0x2d   :  { %353 = vmatmul.f32.vlgmr.msra.gmra.mxu1 %v1588_v61  ;;  %682 = vmatpush.msrb.mxu0 %v2107_v21  ;;  %v83_v21 = vmax.f32 %v67_v56, 0.0  ;;  %v147_v56 = vand.u32 4294901760, %v146_v15 }
  0x2e   :  { %549 = vmatpush.msrb.mxu3 %v1345_v4  ;;  %805 = vmatpush.msrb.mxu1 %v1343_v3  ;;  %v218_v3 = vsub.f32 %v1655_v22, %v2103_v32 }
  0x2f   :  { %431 = vmatpush.msrb.mxu2 %v1390_v20  ;;  %140 = vmatmul.f32.gmra.mxu0 %v139_v62  ;;  %v92_v62 = vmax.f32 %v76_v17, 0.0  ;;  %v1699_v32 = vand.u32 4294901760, %v83_v21 }
  0x30   :  { %551 = vmatpush.msrb.mxu3 %v1347_v5  ;;  %807 = vmatpush.msrb.mxu1 %v1345_v4  ;;  %v54_v4 = vperm.slane %v46_v8, 0  ;;  %v219_v33 = vand.u32 4294901760, %v218_v3  ;;  %v84_v8 = vmax.f32 %v68_v16, 0.0 }
  0x31   :  { %686 = vmatpush.msrb.mxu0 %v2108_v51  ;;  %434 = vmatpush.msrb.mxu2 %v1409_v29  ;;  %v42_v51 = vrot.slane %v1458_v49, 3  ;;  %v1711_v17 = vand.u32 4294901760, %v92_v62  ;;  %v1719_v46 = vsub.f32 %v83_v21, %v1699_v32  ;;  %v2111_v21 = vand.u32 4294901760, %v1409_v29 }
  0x32   :  { %553 = vmatpush.msrb.mxu3 %v1358_v9  ;;  %809 = vmatpush.msrb.mxu1 %v1347_v5  ;;  %v2109_v5 = vand.u32 4294901760, %v1387_v19  ;;  %v77_v49 = vadd.f32 %v54_v4, %v1497_v2  ;;  %v154_v19 = vsub.f32 %v1676_v34, %v153_v54  ;;  %v2112_v29 = vand.u32 4294901760, %v1434_v38 }
  0x33   :  { %212 = vmatmul.f32.gmra.mxu2 %v211_v23  ;;  %389 = vmatmul.f32.gmra.mxu3 %v1569_v50  ;;  %v225_v23 = vand.u32 4294901760, %v1695_v44  ;;  %v50_v15 = vperm.slane %v42_v51, 0  ;;  %v1737_v51 = vand.u32 4294901760, %v84_v8 }
  0x34   :  { %555 = vmatpush.msrb.mxu3 %v1360_v10  ;;  %690 = vmatpush.msrb.mxu0 %v2109_v5  ;;  %v93_v16 = vmax.f32 %v77_v49, 0.0  ;;  %v78_v49 = vadd.f32 %v54_v4, %v1525_v30 }
  0x35   :  { %357 = vmatmul.f32.gmra.mxu1 %v1590_v13  ;;  %437 = vmatpush.msrb.mxu2 %v1434_v38  ;;  %v226_v3 = vsub.f32 %v1695_v44, %v225_v23  ;;  %v69_v5 = vadd.f32 %v50_v15, %v1497_v2  ;;  %v1756_v38 = vsub.f32 %v84_v8, %v1737_v51  ;;  %v2114_v8 = vand.u32 4294901760, %v1453_v48 }
  0x36   :  { %557 = vmatpush.msrb.mxu3 %v1362_v11  ;;  %811 = vmatpush.msrb.mxu1 %v1358_v9  ;;  %v2110_v9 = vand.u32 4294901760, %v1390_v20  ;;  %v155_v20 = vand.u32 4294901760, %v154_v19 }
  0x37   :  { %148 = vmatmul.f32.gmra.mxu0 %v147_v56  ;;  %440 = vmatpush.msrb.mxu2 %v1440_v42  ;;  %v1733_v56 = vsub.f32 %v92_v62, %v1711_v17  ;;  %v227_v2 = vand.u32 4294901760, %v226_v3  ;;  %v85_v19 = vmax.f32 %v69_v5, 0.0 }
  0x38   :  { %559 = vmatpush.msrb.mxu3 %v1384_v18  ;;  %694 = vmatpush.msrb.mxu0 %v2110_v9  ;;  %v2113_v9 = vand.u32 4294901760, %v1440_v42  ;;  %v94_v42 = vmax.f32 %v78_v49, 0.0  ;;  %v2117_v49 = vand.u32 4294901760, %v1484_v60 }
  0x39   :  { %813 = vmatpush.msrb.mxu1 %v1360_v10  ;;  %443 = vmatpush.msrb.mxu2 %v1453_v48  ;;  %v161_v10 = vand.u32 4294901760, %v1719_v46  ;;  %v233_v62 = vand.u32 4294901760, %v1733_v56  ;;  %v2115_v48 = vand.u32 4294901760, %v1466_v53 }
  0x3a   :  { %561 = vmatpush.msrb.mxu3 %v1396_v24  ;;  %698 = vmatpush.msrb.mxu0 %v2111_v21  ;;  %v1774_v21 = vand.u32 4294901760, %v85_v19  ;;  %v1784_v5 = vand.u32 4294901760, %v94_v42 }
  0x3b   :  { %220 = vmatmul.f32.gmra.mxu2 %v219_v33  ;;  %393 = vmatmul.f32.gmra.mxu3 %v1609_v47  ;;  %v1748_v33 = vand.u32 4294901760, %v93_v16 }
  0x3c   :  { %815 = vmatpush.msrb.mxu1 %v1362_v11  ;;  %563 = vmatpush.msrb.mxu3 %v1406_v28  ;;  %v162_v11 = vsub.f32 %v1719_v46, %v161_v10 }
  0x3d   :  { %361 = vmatmul.f32.gmra.mxu1 %v1635_v31  ;;  %702 = vmatpush.msrb.mxu0 %v2112_v29  ;;  %v1767_v4 = vsub.f32 %v93_v16, %v1748_v33 }
  0x3e   :  { %446 = vmatpush.msrb.mxu2 %v1466_v53  ;;  %817 = vmatpush.msrb.mxu1 %v1384_v18  ;;  %v234_v18 = vsub.f32 %v1733_v56, %v233_v62  ;;  %v163_v3 = vand.u32 4294901760, %v162_v11 }
  0x3f   :  { %156 = vmatmul.f32.gmra.mxu0 %v155_v20  ;;  %565 = vmatpush.msrb.mxu3 %v1429_v36  ;;  %v70_v20 = vadd.f32 %v50_v15, %v1525_v30  ;;  %v241_v29 = vand.u32 4294901760, %v1767_v4  ;;  %v1792_v30 = vsub.f32 %v85_v19, %v1774_v21  ;;  %v2116_v15 = vand.u32 4294901760, %v1476_v57 }
  0x40   :  { %706 = vmatpush.msrb.mxu0 %v2113_v9  ;;  %449 = vmatpush.msrb.mxu2 %v1476_v57  ;;  %v235_v16 = vand.u32 4294901760, %v234_v18 }
  0x41   :  { %819 = vmatpush.msrb.mxu1 %v1396_v24  ;;  %567 = vmatpush.msrb.mxu3 %v1431_v37  ;;  %v169_v24 = vand.u32 4294901760, %v1756_v38  ;;  %v86_v53 = vmax.f32 %v70_v20, 0.0  ;;  %v242_v57 = vsub.f32 %v1767_v4, %v241_v29 }
  0x42   :  { %710 = vmatpush.msrb.mxu0 %v2114_v8  ;;  %452 = vmatpush.msrb.mxu2 %v1484_v60  ;;  %v2118_v60 = vand.u32 4294901760, %v1520_v26  ;;  %v2119_v8 = vand.u32 4294901760, %v1539_v40 }
  0x43   :  { %228 = vmatmul.f32.gmra.mxu2 %v227_v2  ;;  %397 = vmatmul.f32.gmra.mxu3 %v1639_v27  ;;  %v1810_v11 = vand.u32 4294901760, %v86_v53  ;;  %v243_v19 = vand.u32 4294901760, %v242_v57 }
  0x44   :  { %821 = vmatpush.msrb.mxu1 %v1406_v28  ;;  %569 = vmatpush.msrb.mxu3 %v1442_v43  ;;  %v170_v28 = vsub.f32 %v1756_v38, %v169_v24 }
  0x45   :  { %365 = vmatmul.f32.gmra.mxu1 %v1658_v45  ;;  %714 = vmatpush.msrb.mxu0 %v2115_v48  ;;  %v1308_v48 = vmov 0  }
  0x46   :  { %455 = vmatpush.msrb.mxu2 %v1520_v26  ;;  %823 = vmatpush.msrb.mxu1 %v1429_v36  ;;  %v1800_v36 = vsub.f32 %v94_v42, %v1784_v5  ;;  %v171_v2 = vand.u32 4294901760, %v170_v28  ;;  %v2127_v28 = vand.u32 4294901760, %v1655_v22 }
  0x47   :  { %164 = vmatmul.f32.gmra.mxu0 %v163_v3  ;;  %571 = vmatpush.msrb.mxu3 %v1472_v55 }
  0x48   :  { %718 = vmatpush.msrb.mxu0 %v2116_v15  ;;  %458 = vmatpush.msrb.mxu2 %v1539_v40  ;;  %v249_v9 = vand.u32 4294901760, %v1800_v36  ;;  %v2121_v40 = vand.u32 4294901760, %v1577_v52 }
  0x49   :  { %825 = vmatpush.msrb.mxu1 %v1431_v37  ;;  %573 = vmatpush.msrb.mxu3 %v1491_v0  ;;  %v177_v37 = vand.u32 4294901760, %v1792_v30 }
  0x4a   :  { %722 = vmatpush.msrb.mxu0 %v2117_v49  ;;  %461 = vmatpush.msrb.mxu2 %v1548_v63  ;;  %v250_v26 = vsub.f32 %v1800_v36, %v249_v9 }
  0x4b   :  { %236 = vmatmul.f32.gmra.mxu2 %v235_v16  ;;  %401 = vmatmul.f32.gmra.mxu3 %v1673_v41  ;;  %v178_v18 = vsub.f32 %v1792_v30, %v177_v37 }
  0x4c   :  { %827 = vmatpush.msrb.mxu1 %v1442_v43  ;;  %464 = vmatpush.msrb.mxu2 %v1577_v52  ;;  %v1825_v43 = vsub.f32 %v86_v53, %v1810_v11  ;;  %v2122_v52 = vand.u32 4294901760, %v1603_v58 }
  0x4d   :  { %369 = vmatmul.f32.gmra.mxu1 %v1699_v32  ;;  %575 = vmatpush.msrb.mxu3 %v1517_v25  ;;  %v179_v42 = vand.u32 4294901760, %v178_v18 }
  0x4e   :  { %726 = vmatpush.msrb.mxu0 %v2118_v60  ;;  %829 = vmatpush.msrb.mxu1 %v1472_v55  ;;  %v2120_v55 = vand.u32 4294901760, %v1548_v63  ;;  %v185_v3 = vand.u32 4294901760, %v1825_v43  ;;  %v9_v63 = vstv %s2080_s3 }
  0x4f   :  { %172 = vmatmul.f32.gmra.mxu0 %v171_v2  ;;  %577 = vmatpush.msrb.mxu3 %v1536_v39  ;;  %10 = vst [vmem:[#allocation2] sm:$0x1] %v9_v63 }
  0x50   :  { %730 = vmatpush.msrb.mxu0 %v2119_v8  ;;  %831 = vmatpush.msrb.mxu1 %v1491_v0  ;;  %v251_v0 = vand.u32 4294901760, %v250_v26 }
  0x51   :  { %1234 = vset.pattern.permute.xlu0 %v1308_v48  ;;  %1235 = vset.pattern.permute.xlu1 %v1308_v48 }
  0x52   :  { %734 = vmatpush.msrb.mxu0 %v2120_v55  ;;  %833 = vmatpush.msrb.mxu1 %v1517_v25  ;;  %v186_v25 = vsub.f32 %v1825_v43, %v185_v3 }
  0x53   :  { %244 = vmatmul.f32.gmra.mxu2 %v243_v19  ;;  %405 = vmatmul.f32.gmra.mxu3 %v1711_v17 }
  0x54   :  { %738 = vmatpush.msrb.mxu0 %v2121_v40  ;;  %835 = vmatpush.msrb.mxu1 %v1536_v39  ;;  %v187_v20 = vand.u32 4294901760, %v186_v25 }
  0x55   :  { %373 = vmatmul.f32.gmra.mxu1 %v1737_v51  ;;  %1236 = vset.pattern.permute.xlu2 %v1308_v48 }
  0x56   :  { %v1237_v39 = vld [vmem:[#allocation2] ss:$0 sm:$0xff] }
  0x57   :  { %180 = vmatmul.f32.gmra.mxu0 %v179_v42  ;;  %904 = vperm.xlu0 %1234, %v1237_v39  }
  0x5b   :  { %252 = vmatmul.f32.gmra.mxu2 %v251_v0  ;;  %409 = vmatmul.f32.gmra.mxu3 %v1748_v33 }
  0x5d   :  { %377 = vmatmul.f32.gmra.mxu1 %v1774_v21 }
  0x5f   :  { %188 = vmatmul.f32.gmra.mxu0 %v187_v20 }
  0x63   :  { %413 = vmatmul.f32.gmra.mxu3 %v1784_v5  ;;  %467 = vmatmul.f32.vlgmr.msrb.gmra.mxu2 %v1603_v58 }
  0x65   :  { %381 = vmatmul.f32.gmra.mxu1 %v1810_v11 }
  0x67   :  { %740 = vmatmul.f32.vlgmr.msrb.gmra.mxu0 %v1588_v61 }
  0x6b   :  { %472 = vmatmul.f32.gmra.mxu2 %v1612_v1  ;;  %581 = vmatmul.f32.vlgmr.msrb.gmra.mxu3 %v2122_v52 }
  0x6d   :  { %837 = vmatmul.f32.vlgmr.msrb.gmra.mxu1 %v1588_v61 }
  0x6f   :  { %744 = vmatmul.f32.gmra.mxu0 %v1590_v13 }
  0x73   :  { %477 = vmatmul.f32.gmra.mxu2 %v1649_v35  ;;  %587 = vmatmul.f32.gmra.mxu3 %v137_v7 }
  0x75   :  { %841 = vmatmul.f32.gmra.mxu1 %v1590_v13 }
  0x77   :  { %748 = vmatmul.f32.gmra.mxu0 %v1635_v31 }
  0x7b   :  { %482 = vmatmul.f32.gmra.mxu2 %v1676_v34  ;;  %593 = vmatmul.f32.gmra.mxu3 %v145_v14  ;;  %v2125_v34 = vand.u32 4294901760, %v1583_v12 }
  0x7d   :  { %845 = vmatmul.f32.gmra.mxu1 %v1635_v31  ;;  %v2123_v31 = vld [vmem:[#allocation3_spill] sm:$0xff] }
  0x7e   :  { %v2124_v1 = vand.u32 4294901760, %v2123_v31 }
  0x7f   :  { %752 = vmatmul.f32.gmra.mxu0 %v1658_v45 }
  0x83   :  { %487 = vmatmul.f32.gmra.mxu2 %v1719_v46  ;;  %599 = vmatmul.f32.gmra.mxu3 %v153_v54 }
  0x85   :  { %849 = vmatmul.f32.gmra.mxu1 %v1658_v45 }
  0x87   :  { %756 = vmatmul.f32.gmra.mxu0 %v1699_v32 }
  0x8b   :  { %492 = vmatmul.f32.gmra.mxu2 %v1756_v38  ;;  %605 = vmatmul.f32.gmra.mxu3 %v161_v10  ;;  %v2126_v38 = vand.u32 4294901760, %v1632_v59 }
  0x8d   :  { %853 = vmatmul.f32.gmra.mxu1 %v1699_v32 }
  0x8f   :  { %760 = vmatmul.f32.gmra.mxu0 %v1737_v51 }
  0x93   :  { %497 = vmatmul.f32.gmra.mxu2 %v1792_v30  ;;  %611 = vmatmul.f32.gmra.mxu3 %v169_v24 }
  0x95   :  { %857 = vmatmul.f32.gmra.mxu1 %v1737_v51 }
  0x97   :  { %764 = vmatmul.f32.gmra.mxu0 %v1774_v21 }
  0x9b   :  { %502 = vmatmul.f32.gmra.mxu2 %v1825_v43  ;;  %617 = vmatmul.f32.gmra.mxu3 %v177_v37 }
  0x9d   :  { %861 = vmatmul.f32.gmra.mxu1 %v1774_v21 }
  0x9f   :  { %768 = vmatmul.f32.gmra.mxu0 %v1810_v11 }
  0xa3   :  { %507 = vmatmul.f32.gmra.mxu2 %v2123_v31  ;;  %623 = vmatmul.f32.gmra.mxu3 %v185_v3 }
  0xa4   :  { %v1888_v61 = vpop.f32.mrf.mxu0 }
  0xa5   :  { %865 = vmatmul.f32.gmra.mxu1 %v1810_v11 }
  0xa6   :  { %v197_v13 = vpop.f32.mrf.mxu2 }
  0xa7   :  { %772 = vmatmul.f32.gmra.mxu0 %v1556_v6 }
  0xaa   :  { %v1892_v58 = vpop.f32.mrf.mxu1 }
  0xab   :  { %512 = vmatmul.f32.gmra.mxu2 %v1583_v12  ;;  %629 = vmatmul.f32.gmra.mxu3 %v2124_v1 }
  0xac   :  { %v1897_v7 = vpop.f32.mrf.mxu0 }
  0xad   :  { %869 = vmatmul.f32.gmra.mxu1 %v1556_v6 }
  0xae   :  { %v205_v35 = vpop.f32.mrf.mxu2  ;;  %v386_v45 = vpop.f32.mrf.mxu3 }
  0xaf   :  { %v1900_v14 = vadd.f32 %v386_v45, %v197_v13  ;;  %776 = vmatmul.f32.gmra.mxu0 %v1569_v50 }
  0xb2   :  { %v1903_v32 = vpop.f32.mrf.mxu1 }
  0xb3   :  { %517 = vmatmul.f32.gmra.mxu2 %v1632_v59  ;;  %635 = vmatmul.f32.gmra.mxu3 %v2125_v34 }
  0xb4   :  { %v1908_v54 = vpop.f32.mrf.mxu0 }
  0xb5   :  { %873 = vmatmul.f32.gmra.mxu1 %v1569_v50 }
  0xb6   :  { %v213_v46 = vpop.f32.mrf.mxu2  ;;  %v390_v10 = vpop.f32.mrf.mxu3 }
  0xb7   :  { %v1911_v6 = vadd.f32 %v390_v10, %v205_v35  ;;  %780 = vmatmul.f32.gmra.mxu0 %v1609_v47 }
  0xba   :  { %v1914_v51 = vpop.f32.mrf.mxu1 }
  0xbb   :  { %522 = vmatmul.f32.gmra.mxu2 %v1655_v22  ;;  %641 = vmatmul.f32.gmra.mxu3 %v2126_v38  ;;  %v363_v35 = vadd.f32 %v1914_v51, %v1908_v54 }
  0xbc   :  { %v1919_v24 = vpop.f32.mrf.mxu0 }
  0xbd   :  { %877 = vmatmul.f32.gmra.mxu1 %v1609_v47 }
  0xbe   :  { %v221_v12 = vpop.f32.mrf.mxu2  ;;  %v394_v21 = vpop.f32.mrf.mxu3 }
  0xbf   :  { %v1922_v50 = vadd.f32 %v394_v21, %v213_v46  ;;  %784 = vmatmul.f32.gmra.mxu0 %v1639_v27 }
  0xc2   :  { %v1925_v16 = vpop.f32.mrf.mxu1 }
  0xc3   :  { %527 = vmatmul.f32.gmra.mxu2 %v1695_v44  ;;  %647 = vmatmul.f32.gmra.mxu3 %v2127_v28  ;;  %v367_v54 = vadd.f32 %v1925_v16, %v1919_v24 }
  0xc4   :  { %v1930_v30 = vpop.f32.mrf.mxu0 }
  0xc5   :  { %881 = vmatmul.f32.gmra.mxu1 %v1639_v27 }
  0xc6   :  { %v229_v59 = vpop.f32.mrf.mxu2  ;;  %v398_v53 = vpop.f32.mrf.mxu3 }
  0xc7   :  { %v1933_v47 = vadd.f32 %v398_v53, %v221_v12  ;;  %788 = vmatmul.f32.gmra.mxu0 %v1673_v41 }
  0xc9   :  { %v1978_v25 = vpop.permute.xlu0 %904 }
  0xca   :  { %v1936_v15 = vpop.f32.mrf.mxu1 }
  0xcb   :  { %532 = vmatmul.f32.gmra.mxu2 %v1733_v56  ;;  %653 = vmatmul.f32.gmra.mxu3 %v225_v23  ;;  %v371_v24 = vadd.f32 %v1936_v15, %v1930_v30 }
  0xcc   :  { %v1941_v49 = vpop.f32.mrf.mxu0 }
  0xcd   :  { %885 = vmatmul.f32.gmra.mxu1 %v1673_v41 }
  0xce   :  { %v237_v22 = vpop.f32.mrf.mxu2  ;;  %v402_v57 = vpop.f32.mrf.mxu3 }
  0xcf   :  { %v1944_v27 = vadd.f32 %v402_v57, %v229_v59  ;;  %792 = vmatmul.f32.gmra.mxu0 %v1711_v17 }
  0xd2   :  { %v1947_v2 = vpop.f32.mrf.mxu1 }
  0xd3   :  { %537 = vmatmul.f32.gmra.mxu2 %v1767_v4  ;;  %659 = vmatmul.f32.gmra.mxu3 %v233_v62 }
  0xd4   :  { %v1952_v37 = vpop.f32.mrf.mxu0 }
  0xd5   :  { %889 = vmatmul.f32.gmra.mxu1 %v1711_v17 }
  0xd6   :  { %v245_v44 = vpop.f32.mrf.mxu2  ;;  %v406_v23 = vpop.f32.mrf.mxu3 }
  0xd7   :  { %v1955_v41 = vadd.f32 %v406_v23, %v237_v22  ;;  %796 = vmatmul.f32.gmra.mxu0 %v1748_v33 }
  0xda   :  { %v1958_v11 = vpop.f32.mrf.mxu1 }
  0xdb   :  { %542 = vmatmul.f32.gmra.mxu2 %v1800_v36  ;;  %665 = vmatmul.f32.gmra.mxu3 %v241_v29 }
  0xdc   :  { %v1963_v60 = vpop.f32.mrf.mxu0 }
  0xdd   :  { %893 = vmatmul.f32.gmra.mxu1 %v1748_v33  ;;  %v355_v33 = vadd.f32 %v1892_v58, %v1888_v61 }
  0xde   :  { %v253_v56 = vpop.f32.mrf.mxu2  ;;  %v410_v62 = vpop.f32.mrf.mxu3 }
  0xdf   :  { %v1966_v17 = vadd.f32 %v410_v62, %v245_v44  ;;  %800 = vmatmul.f32.gmra.mxu0 %v1784_v5 }
  0xe2   :  { %v1969_v19 = vpop.f32.mrf.mxu1 }
  0xe3   :  { %671 = vmatmul.f32.gmra.mxu3 %v249_v9 }
  0xe4   :  { %v741_v18 = vpop.f32.mrf.mxu0 }
  0xe5   :  { %897 = vmatmul.f32.gmra.mxu1 %v1784_v5  ;;  %v359_v5 = vadd.f32 %v1903_v32, %v1897_v7 }
  0xe6   :  { %v414_v4 = vpop.f32.mrf.mxu3  ;;  %v468_v29 = vpop.f32.mrf.mxu2 }
  0xe7   :  { %v1974_v43 = vadd.f32 %v414_v4, %v253_v56  ;;  %v469_v26 = vadd.f32 %v468_v29, %v355_v33 }
  0xea   :  { %v838_v8 = vpop.f32.mrf.mxu1 }
  0xec   :  { %v745_v55 = vpop.f32.mrf.mxu0 }
  0xee   :  { %v473_v42 = vpop.f32.mrf.mxu2  ;;  %v582_v3 = vpop.f32.mrf.mxu3 }
  0xef   :  { %v583_v40 = vadd.f32 %v582_v3, %v469_v26  ;;  %v474_v20 = vadd.f32 %v473_v42, %v359_v5 }
  0xf1   :  { %v742_v0 = vadd.f32 %v741_v18, %v583_v40 }
  0xf2   :  { %v842_v36 = vpop.f32.mrf.mxu1 }
  0xf3   :  { %v839_v9 = vadd.f32 %v838_v8, %v742_v0 }
  0xf4   :  { %v749_v63 = vpop.f32.mrf.mxu0 }
  0xf5   :  { %v907_v48 = vadd.f32 %v1978_v25, %v839_v9 }
  0xf6   :  { %v478_v39 = vpop.f32.mrf.mxu2  ;;  %v588_v52 = vpop.f32.mrf.mxu3 }
  0xf7   :  { %v589_v31 = vadd.f32 %v588_v52, %v474_v20  ;;  %v939_v61 = vand.u32 2147483647, %v907_v48  ;;  %v479_v10 = vadd.f32 %v478_v39, %v363_v35  ;;  %v923_v0 = vmax.f32 %v907_v48, 0.0 }
  0xf9   :  { %v746_v13 = vadd.f32 %v745_v55, %v589_v31  ;;  %v955_v58 = vsub.f32 0.0, %v939_v61 }
  0xfa   :  { %v846_v1 = vpop.f32.mrf.mxu1 }
  0xfb   :  { %v843_v45 = vadd.f32 %v842_v36, %v746_v13  ;;  %v971_v34 = vmul.f32 1.442695, %v955_v58 }
  0xfc   :  { %v753_v46 = vpop.f32.mrf.mxu0 }
  0xfd   :  { %v1986_v7 = vadd.f32 %v1978_v25, %v843_v45  ;;  %1238 = vpow2.f32 %v971_v34 }
  0xfe   :  { %v483_v32 = vpop.f32.mrf.mxu2  ;;  %v594_v38 = vpop.f32.mrf.mxu3 }
  0xff   :  { %v940_v12 = vand.u32 2147483647, %v1986_v7  ;;  %v595_v21 = vadd.f32 %v594_v38, %v479_v10  ;;  %v484_v56 = vadd.f32 %v483_v32, %v367_v54 }
 0x101   :  { %v956_v28 = vsub.f32 0.0, %v940_v12  ;;  %v750_v59 = vadd.f32 %v749_v63, %v595_v21 }
 0x102   :  { %v850_v53 = vpop.f32.mrf.mxu1 }
 0x103   :  { %v1239_v22 = vpop.eup %1238  ;;  %v973_v51 = vmul.f32 1.442695, %v956_v28  ;;  %v847_v57 = vadd.f32 %v846_v1, %v750_v59  ;;  %v375_v1 = vadd.f32 %v1947_v2, %v1941_v49  ;;  %v924_v59 = vmax.f32 %v1986_v7, 0.0 }
 0x104   :  { %v757_v44 = vpop.f32.mrf.mxu0  ;;  %v1003_v23 = vadd.f32 1.0, %v1239_v22 }
 0x105   :  { %1240 = vpow2.f32 %v973_v51  ;;  %v1992_v62 = vadd.f32 %v1978_v25, %v847_v57 }
 0x106   :  { %v488_v18 = vpop.f32.mrf.mxu2  ;;  %v600_v4 = vpop.f32.mrf.mxu3  ;;  %1242 = vlog2.f32 %v1003_v23 }
 0x107   :  { %v941_v29 = vand.u32 2147483647, %v1992_v62  ;;  %v601_v8 = vadd.f32 %v600_v4, %v484_v56  ;;  %v489_v9 = vadd.f32 %v488_v18, %v371_v24 }
 0x109   :  { %v957_v33 = vsub.f32 0.0, %v941_v29  ;;  %v754_v55 = vadd.f32 %v753_v46, %v601_v8 }
 0x10a   :  { %v854_v26 = vpop.f32.mrf.mxu1 }
 0x10b   :  { %v1241_v42 = vpop.eup %1240  ;;  %v975_v16 = vmul.f32 1.442695, %v957_v33  ;;  %v851_v3 = vadd.f32 %v850_v53, %v754_v55  ;;  %v925_v55 = vmax.f32 %v1992_v62, 0.0 }
 0x10c   :  { %v1243_v40 = vpop.eup %1242  ;;  %v761_v36 = vpop.f32.mrf.mxu0  ;;  %v1004_v5 = vadd.f32 1.0, %v1241_v42 }
 0x10d   :  { %1244 = vpow2.f32 %v975_v16  ;;  %v1998_v63 = vadd.f32 %v1978_v25, %v851_v3  ;;  %v1020_v20 = vmul.f32 0.6931472, %v1243_v40 }
 0x10e   :  { %v493_v39 = vpop.f32.mrf.mxu2  ;;  %v606_v52 = vpop.f32.mrf.mxu3  ;;  %1246 = vlog2.f32 %v1004_v5 }
 0x10f   :  { %v942_v31 = vand.u32 2147483647, %v1998_v63  ;;  %v607_v61 = vadd.f32 %v606_v52, %v489_v9  ;;  %v1051_v13 = vadd.f32 %v1020_v20, %v923_v0  ;;  %v494_v32 = vadd.f32 %v493_v39, %v375_v1 }
 0x111   :  { %v958_v30 = vsub.f32 0.0, %v942_v31  ;;  %v758_v15 = vadd.f32 %v757_v44, %v607_v61  ;;  %1087 = vperm.xlu0 %1234, %v1051_v13   ;;  %v379_v44 = vadd.f32 %v1958_v11, %v1952_v37 }
 0x112   :  { %v858_v58 = vpop.f32.mrf.mxu1 }
 0x113   :  { %v1245_v48 = vpop.eup %1244  ;;  %v977_v35 = vmul.f32 1.442695, %v958_v30  ;;  %v855_v45 = vadd.f32 %v854_v26, %v758_v15  ;;  %v926_v15 = vmax.f32 %v1998_v63, 0.0 }
 0x114   :  { %v1247_v34 = vpop.eup %1246  ;;  %v1005_v46 = vadd.f32 1.0, %v1245_v48  ;;  %v765_v10 = vpop.f32.mrf.mxu0 }
 0x115   :  { %1248 = vpow2.f32 %v977_v35  ;;  %v2004_v38 = vadd.f32 %v1978_v25, %v855_v45  ;;  %v1022_v12 = vmul.f32 0.6931472, %v1247_v34 }
 0x116   :  { %v498_v21 = vpop.f32.mrf.mxu2  ;;  %v612_v28 = vpop.f32.mrf.mxu3  ;;  %1250 = vlog2.f32 %v1005_v46 }
 0x117   :  { %v943_v53 = vand.u32 2147483647, %v2004_v38  ;;  %v613_v22 = vadd.f32 %v612_v28, %v494_v32  ;;  %v1052_v49 = vadd.f32 %v1022_v12, %v924_v59  ;;  %v499_v7 = vadd.f32 %v498_v21, %v379_v44 }
 0x118   :  { %v927_v59 = vmax.f32 %v2004_v38, 0.0 }
 0x119   :  { %v959_v2 = vsub.f32 0.0, %v943_v53  ;;  %v762_v54 = vadd.f32 %v761_v36, %v613_v22  ;;  %1090 = vperm.xlu1 %1235, %v1052_v49   ;;  %v383_v36 = vadd.f32 %v1969_v19, %v1963_v60 }
 0x11a   :  { %v862_v51 = vpop.f32.mrf.mxu1 }
 0x11b   :  { %v1249_v57 = vpop.eup %1248  ;;  %v979_v23 = vmul.f32 1.442695, %v959_v2  ;;  %v859_v56 = vadd.f32 %v858_v58, %v762_v54 }
 0x11c   :  { %v1251_v18 = vpop.eup %1250  ;;  %v769_v4 = vpop.f32.mrf.mxu0  ;;  %v1006_v29 = vadd.f32 1.0, %v1249_v57 }
 0x11d   :  { %1252 = vpow2.f32 %v979_v23  ;;  %v2011_v8 = vadd.f32 %v1978_v25, %v859_v56  ;;  %v1024_v33 = vmul.f32 0.6931472, %v1251_v18 }
 0x11e   :  { %v503_v26 = vpop.f32.mrf.mxu2  ;;  %v618_v42 = vpop.f32.mrf.mxu3  ;;  %1254 = vlog2.f32 %v1006_v29 }
 0x11f   :  { %v944_v24 = vand.u32 2147483647, %v2011_v8  ;;  %v619_v16 = vadd.f32 %v618_v42, %v499_v7  ;;  %v1053_v37 = vadd.f32 %v1024_v33, %v925_v55  ;;  %v504_v52 = vadd.f32 %v503_v26, %v383_v36 }
 0x120   :  { %v928_v55 = vmax.f32 %v2011_v8, 0.0 }
 0x121   :  { %v960_v11 = vsub.f32 0.0, %v944_v24  ;;  %v766_v3 = vadd.f32 %v765_v10, %v619_v16  ;;  %1093 = vperm.xlu1 %1235, %v1053_v37  }
 0x122   :  { %v866_v40 = vpop.f32.mrf.mxu1 }
 0x123   :  { %v1253_v0 = vpop.eup %1252  ;;  %v981_v5 = vmul.f32 1.442695, %v960_v11  ;;  %v863_v9 = vadd.f32 %v862_v51, %v766_v3 }
 0x124   :  { %v1255_v20 = vpop.eup %1254  ;;  %v1007_v39 = vadd.f32 1.0, %v1253_v0  ;;  %v773_v62 = vpop.f32.mrf.mxu0 }
 0x125   :  { %1256 = vpow2.f32 %v981_v5  ;;  %v2018_v31 = vadd.f32 %v1978_v25, %v863_v9  ;;  %v1026_v61 = vmul.f32 0.6931472, %v1255_v20 }
 0x126   :  { %v508_v13 = vpop.f32.mrf.mxu2  ;;  %v624_v30 = vpop.f32.mrf.mxu3  ;;  %1258 = vlog2.f32 %v1007_v39 }
 0x127   :  { %v945_v58 = vand.u32 2147483647, %v2018_v31  ;;  %v625_v48 = vadd.f32 %v624_v30, %v504_v52  ;;  %v1054_v60 = vadd.f32 %v1026_v61, %v926_v15  ;;  %v509_v21 = vadd.f32 %v508_v13, %v1900_v14 }
 0x128   :  { %v929_v52 = vmax.f32 %v2018_v31, 0.0 }
 0x129   :  { %v961_v19 = vsub.f32 0.0, %v945_v58  ;;  %v770_v1 = vadd.f32 %v769_v4, %v625_v48  ;;  %1096 = vperm.xlu2 %1236, %v1054_v60  }
 0x12a   :  { %v870_v35 = vpop.f32.mrf.mxu1 }
 0x12b   :  { %v1257_v45 = vpop.eup %1256  ;;  %v983_v34 = vmul.f32 1.442695, %v961_v19  ;;  %v867_v46 = vadd.f32 %v866_v40, %v770_v1 }
 0x12c   :  { %v1259_v10 = vpop.eup %1258  ;;  %v1008_v32 = vadd.f32 1.0, %v1257_v45  ;;  %v777_v12 = vpop.f32.mrf.mxu0 }
 0x12d   :  { %1260 = vpow2.f32 %v983_v34  ;;  %v2024_v63 = vadd.f32 %v1978_v25, %v867_v46  ;;  %v1028_v28 = vmul.f32 0.6931472, %v1259_v10 }
 0x12e   :  { %v513_v53 = vpop.f32.mrf.mxu2  ;;  %v630_v22 = vpop.f32.mrf.mxu3  ;;  %1262 = vlog2.f32 %v1008_v32 }
 0x12f   :  { %v946_v49 = vand.u32 2147483647, %v2024_v63  ;;  %v631_v2 = vadd.f32 %v630_v22, %v509_v21  ;;  %v1055_v54 = vadd.f32 %v1028_v28, %v927_v59  ;;  %v514_v38 = vadd.f32 %v513_v53, %v1911_v6 }
 0x130   :  { %v930_v32 = vmax.f32 %v2024_v63, 0.0 }
 0x131   :  { %v962_v51 = vsub.f32 0.0, %v946_v49  ;;  %v774_v57 = vadd.f32 %v773_v62, %v631_v2  ;;  %1099 = vperm.xlu2 %1236, %v1055_v54  }
 0x132   :  { %v874_v44 = vpop.f32.mrf.mxu1 }
 0x133   :  { %v1261_v23 = vpop.eup %1260  ;;  %v985_v56 = vmul.f32 1.442695, %v962_v51  ;;  %v871_v14 = vadd.f32 %v870_v35, %v774_v57 }
 0x134   :  { %v1263_v18 = vpop.eup %1262  ;;  %v1009_v4 = vadd.f32 1.0, %v1261_v23  ;;  %v781_v29 = vpop.f32.mrf.mxu0 }
 0x135   :  { %1264 = vpow2.f32 %v985_v56  ;;  %v2030_v7 = vadd.f32 %v1978_v25, %v871_v14  ;;  %v1030_v33 = vmul.f32 0.6931472, %v1263_v18 }
 0x136   :  { %v518_v26 = vpop.f32.mrf.mxu2  ;;  %v636_v42 = vpop.f32.mrf.mxu3  ;;  %1266 = vlog2.f32 %v1009_v4 }
 0x137   :  { %v947_v24 = vand.u32 2147483647, %v2030_v7  ;;  %v637_v16 = vadd.f32 %v636_v42, %v514_v38  ;;  %v1056_v37 = vadd.f32 %v1030_v33, %v928_v55  ;;  %v519_v20 = vadd.f32 %v518_v26, %v1922_v50 }
 0x138   :  { %v931_v18 = vmax.f32 %v2030_v7, 0.0 }
 0x139   :  { %v963_v11 = vsub.f32 0.0, %v947_v24  ;;  %v778_v3 = vadd.f32 %v777_v12, %v637_v16  ;;  %1102 = vperm.xlu0 %1234, %v1056_v37  }
 0x13a   :  { %v878_v40 = vpop.f32.mrf.mxu1 }
 0x13b   :  { %v1265_v0 = vpop.eup %1264  ;;  %v987_v36 = vmul.f32 1.442695, %v963_v11  ;;  %v875_v6 = vadd.f32 %v874_v44, %v778_v3 }
 0x13c   :  { %v1267_v5 = vpop.eup %1266  ;;  %v1010_v9 = vadd.f32 1.0, %v1265_v0  ;;  %v785_v62 = vpop.f32.mrf.mxu0 }
 0x13d   :  { %1268 = vpow2.f32 %v987_v36  ;;  %v2036_v8 = vadd.f32 %v1978_v25, %v875_v6  ;;  %v1032_v39 = vmul.f32 0.6931472, %v1267_v5 }
 0x13e   :  { %v523_v61 = vpop.f32.mrf.mxu2  ;;  %v642_v13 = vpop.f32.mrf.mxu3  ;;  %1270 = vlog2.f32 %v1010_v9 }
 0x13f   :  { %v948_v30 = vand.u32 2147483647, %v2036_v8  ;;  %v643_v15 = vadd.f32 %v642_v13, %v519_v20  ;;  %v1057_v58 = vadd.f32 %v1032_v39, %v929_v52  ;;  %v524_v46 = vadd.f32 %v523_v61, %v1933_v47 }
 0x140   :  { %v932_v6 = vmax.f32 %v2036_v8, 0.0 }
 0x141   :  { %v964_v48 = vsub.f32 0.0, %v948_v30  ;;  %v782_v60 = vadd.f32 %v781_v29, %v643_v15  ;;  %1105 = vperm.xlu1 %1235, %v1057_v58  }
 0x142   :  { %v882_v19 = vpop.f32.mrf.mxu1 }
 0x143   :  { %v1269_v1 = vpop.eup %1268  ;;  %v989_v50 = vmul.f32 1.442695, %v964_v48  ;;  %v879_v35 = vadd.f32 %v878_v40, %v782_v60 }
 0x144   :  { %v1271_v45 = vpop.eup %1270  ;;  %v1011_v34 = vadd.f32 1.0, %v1269_v1  ;;  %v789_v22 = vpop.f32.mrf.mxu0 }
 0x145   :  { %1272 = vpow2.f32 %v989_v50  ;;  %v2042_v31 = vadd.f32 %v1978_v25, %v879_v35  ;;  %v1034_v10 = vmul.f32 0.6931472, %v1271_v45 }
 0x146   :  { %v528_v12 = vpop.f32.mrf.mxu2  ;;  %v648_v21 = vpop.f32.mrf.mxu3  ;;  %1274 = vlog2.f32 %v1011_v34 }
 0x147   :  { %v949_v28 = vand.u32 2147483647, %v2042_v31  ;;  %v649_v59 = vadd.f32 %v648_v21, %v524_v46  ;;  %v1058_v53 = vadd.f32 %v1034_v10, %v930_v32  ;;  %v529_v63 = vadd.f32 %v528_v12, %v1944_v27 }
 0x148   :  { %v933_v1 = vmax.f32 %v2042_v31, 0.0 }
 0x149   :  { %v965_v49 = vsub.f32 0.0, %v949_v28  ;;  %v786_v2 = vadd.f32 %v785_v62, %v649_v59  ;;  %1108 = vperm.xlu2 %1236, %v1058_v53  }
 0x14a   :  { %v886_v54 = vpop.f32.mrf.mxu1 }
 0x14b   :  { %v1273_v51 = vpop.eup %1272  ;;  %v991_v47 = vmul.f32 1.442695, %v965_v49  ;;  %v883_v57 = vadd.f32 %v882_v19, %v786_v2 }
 0x14c   :  { %v1275_v44 = vpop.eup %1274  ;;  %v1012_v23 = vadd.f32 1.0, %v1273_v51  ;;  %v793_v24 = vpop.f32.mrf.mxu0 }
 0x14d   :  { %1276 = vpow2.f32 %v991_v47  ;;  %v2048_v56 = vadd.f32 %v1978_v25, %v883_v57  ;;  %v1036_v14 = vmul.f32 0.6931472, %v1275_v44 }
 0x14e   :  { %v533_v4 = vpop.f32.mrf.mxu2  ;;  %v654_v29 = vpop.f32.mrf.mxu3  ;;  %1278 = vlog2.f32 %v1012_v23 }
 0x14f   :  { %v950_v38 = vand.u32 2147483647, %v2048_v56  ;;  %v655_v33 = vadd.f32 %v654_v29, %v529_v63  ;;  %v1059_v55 = vadd.f32 %v1036_v14, %v931_v18  ;;  %v534_v7 = vadd.f32 %v533_v4, %v1955_v41 }
 0x151   :  { %v966_v26 = vsub.f32 0.0, %v950_v38  ;;  %v790_v42 = vadd.f32 %v789_v22, %v655_v33  ;;  %1111 = vperm.xlu0 %1234, %v1059_v55  }
 0x152   :  { %v890_v40 = vpop.f32.mrf.mxu1 }
 0x153   :  { %v1277_v16 = vpop.eup %1276  ;;  %v993_v37 = vmul.f32 1.442695, %v966_v26  ;;  %v887_v27 = vadd.f32 %v886_v54, %v790_v42 }
 0x154   :  { %v1279_v11 = vpop.eup %1278  ;;  %v1013_v3 = vadd.f32 1.0, %v1277_v16  ;;  %v797_v48 = vpop.f32.mrf.mxu0 }
 0x155   :  { %1280 = vpow2.f32 %v993_v37  ;;  %v2054_v0 = vadd.f32 %v1978_v25, %v887_v27  ;;  %v1038_v36 = vmul.f32 0.6931472, %v1279_v11 }
 0x156   :  { %v660_v5 = vpop.f32.mrf.mxu3  ;;  %1282 = vlog2.f32 %v1013_v3  ;;  %v538_v39 = vpop.f32.mrf.mxu2 }
 0x157   :  { %v951_v9 = vand.u32 2147483647, %v2054_v0  ;;  %v661_v20 = vadd.f32 %v660_v5, %v534_v7  ;;  %v1060_v62 = vadd.f32 %v1038_v36, %v932_v6  ;;  %v539_v60 = vadd.f32 %v538_v39, %v1966_v17 }
 0x158   :  { %v934_v17 = vmax.f32 %v2048_v56, 0.0 }
 0x159   :  { %v967_v52 = vsub.f32 0.0, %v951_v9  ;;  %v794_v61 = vadd.f32 %v793_v24, %v661_v20  ;;  %1114 = vperm.xlu1 %1235, %v1060_v62  }
 0x15a   :  { %v894_v35 = vpop.f32.mrf.mxu1 }
 0x15b   :  { %v1281_v13 = vpop.eup %1280  ;;  %v995_v30 = vmul.f32 1.442695, %v967_v52  ;;  %v891_v15 = vadd.f32 %v890_v40, %v794_v61 }
 0x15c   :  { %v1283_v41 = vpop.eup %1282  ;;  %v1014_v58 = vadd.f32 1.0, %v1281_v13  ;;  %v801_v51 = vpop.f32.mrf.mxu0 }
 0x15d   :  { %1284 = vpow2.f32 %v995_v30  ;;  %v920_v8 = vadd.f32 %v1978_v25, %v891_v15  ;;  %v1040_v19 = vmul.f32 0.6931472, %v1283_v41 }
 0x15e   :  { %v666_v50 = vpop.f32.mrf.mxu3  ;;  %1286 = vlog2.f32 %v1014_v58  ;;  %v543_v12 = vpop.f32.mrf.mxu2 }
 0x15f   :  { %v952_v45 = vand.u32 2147483647, %v920_v8  ;;  %v667_v34 = vadd.f32 %v666_v50, %v539_v60  ;;  %v1061_v46 = vadd.f32 %v1040_v19, %v933_v1  ;;  %v544_v31 = vadd.f32 %v543_v12, %v1974_v43 }
 0x160   :  { %v935_v43 = vmax.f32 %v2054_v0, 0.0  ;;  %v936_v3 = vmax.f32 %v920_v8, 0.0  ;;  %v1067_v8 = vlaneseq }
 0x161   :  { %v968_v10 = vsub.f32 0.0, %v952_v45  ;;  %v798_v32 = vadd.f32 %v797_v48, %v667_v34  ;;  %1117 = vperm.xlu2 %1236, %v1061_v46  }
 0x162   :  { %v898_v23 = vpop.f32.mrf.mxu1  ;;  %v1068_v50 = vand.u32 127, %v1067_v8 }
 0x163   :  { %v1285_v21 = vpop.eup %1284  ;;  %v997_v28 = vmul.f32 1.442695, %v968_v10  ;;  %v895_v59 = vadd.f32 %v894_v35, %v798_v32 }
 0x164   :  { %v1287_v53 = vpop.eup %1286  ;;  %v1015_v22 = vadd.f32 1.0, %v1285_v21  ;;  %v1135_v45 = vadd.s32 4294967288, %v1068_v50  ;;  %vm1069_vm8 = vcmp.lt.s32.totalorder %v1068_v50, 8 }
 0x165   :  { %1288 = vpow2.f32 %v997_v28  ;;  %v921_v49 = vadd.f32 %v1978_v25, %v895_v59  ;;  %v1042_v2 = vmul.f32 0.6931472, %v1287_v53 }
 0x166   :  { %v672_v54 = vpop.f32.mrf.mxu3  ;;  %1290 = vlog2.f32 %v1015_v22 }
 0x167   :  { %v953_v47 = vand.u32 2147483647, %v921_v49  ;;  %v673_v57 = vadd.f32 %v672_v54, %v544_v31  ;;  %v1062_v44 = vadd.f32 %v1042_v2, %v934_v17 }
 0x169   :  { %v969_v63 = vsub.f32 0.0, %v953_v47  ;;  %v802_v14 = vadd.f32 %v801_v51, %v673_v57  ;;  %1120 = vperm.xlu0 %1234, %v1062_v44  }
 0x16b   :  { %v1289_v18 = vpop.eup %1288  ;;  %v999_v4 = vmul.f32 1.442695, %v969_v63  ;;  %v899_v56 = vadd.f32 %v898_v23, %v802_v14 }
 0x16c   :  { %v1291_v29 = vpop.eup %1290  ;;  %v1016_v38 = vadd.f32 1.0, %v1289_v18 }
 0x16d   :  { %1292 = vpow2.f32 %v999_v4  ;;  %v922_v33 = vadd.f32 %v1978_v25, %v899_v56  ;;  %v1044_v55 = vmul.f32 0.6931472, %v1291_v29  ;;  %v937_v25 = vmax.f32 %v921_v49, 0.0 }
 0x16e   :  { %1294 = vlog2.f32 %v1016_v38 }
 0x16f   :  { %v954_v26 = vand.u32 2147483647, %v922_v33  ;;  %v1063_v42 = vadd.f32 %v1044_v55, %v935_v43  ;;  %v938_v39 = vmax.f32 %v922_v33, 0.0 }
 0x171   :  { %v970_v24 = vsub.f32 0.0, %v954_v26  ;;  %1123 = vperm.xlu1 %1235, %v1063_v42  }
 0x173   :  { %v1293_v16 = vpop.eup %1292  ;;  %v1001_v37 = vmul.f32 1.442695, %v970_v24 }
 0x174   :  { %v1295_v27 = vpop.eup %1294  ;;  %v1017_v11 = vadd.f32 1.0, %v1293_v16 }
 0x175   :  { %1296 = vpow2.f32 %v1001_v37  ;;  %v1046_v40 = vmul.f32 0.6931472, %v1295_v27 }
 0x176   :  { %1298 = vlog2.f32 %v1017_v11 }
 0x177   :  { %v1064_v7 = vadd.f32 %v1046_v40, %v936_v3 }
 0x179   :  { %1126 = vperm.xlu2 %1236, %v1064_v7  }
 0x17b   :  { %v1297_v0 = vpop.eup %1296 }
 0x17c   :  { %v1299_v36 = vpop.eup %1298  ;;  %v1018_v6 = vadd.f32 1.0, %v1297_v0 }
 0x17d   :  { %v1048_v5 = vmul.f32 0.6931472, %v1299_v36 }
 0x17e   :  { %1300 = vlog2.f32 %v1018_v6 }
 0x17f   :  { %v1065_v9 = vadd.f32 %v1048_v5, %v937_v25 }
 0x181   :  { %1129 = vperm.xlu0 %1234, %v1065_v9  }
 0x183   :  { %v1097_v13 = vpop.permute.xlu2 %1096  ;;  %v1088_v30 = vpop.permute.xlu0 %1087 }
 0x184   :  { %v1301_v20 = vpop.eup %1300  ;;  %v1140_v12 = vperm.slane %v1097_v13, %v1135_v45  ;;  %v1134_v17 = vperm.slane %v1088_v30, %v1068_v50 }
 0x185   :  { %v1050_v62 = vmul.f32 0.6931472, %v1301_v20 }
 0x187   :  { %v1066_v52 = vadd.f32 %v1050_v62, %v938_v39 }
 0x189   :  { %1132 = vperm.xlu1 %1235, %v1066_v52  }
 0x18b   :  { %v1091_v61 = vpop.permute.xlu1 %1090  ;;  %v1100_v41 = vpop.permute.xlu2 %1099 }
 0x18c   :  { %v1136_v21 = vperm.slane %v1091_v61, %v1135_v45  ;;  %v1142_v59 = vperm.slane %v1100_v41, %v1068_v50 }
 0x18e   :  { %v1138_v57 = vsel %vm1137_vm0, %v1136_v21, %v1134_v17 }
 0x193   :  { %v1094_v15 = vpop.permute.xlu1 %1093 }
 0x194   :  { %v1139_v46 = vperm.slane %v1094_v15, %v1068_v50 }
 0x196   :  { %v1141_v22 = vsel %vm1137_vm0, %v1140_v12, %v1139_v46 }
 0x197   :  { %v1161_v63 = vsel %vm1160_vm1, %v1141_v22, %v1138_v57 }
 0x1a3   :  { %v1109_v60 = vpop.permute.xlu2 %1108 }
 0x1a4   :  { %v1146_v31 = vperm.slane %v1109_v60, %v1135_v45 }
 0x1ab   :  { %v1103_v58 = vpop.permute.xlu0 %1102 }
 0x1ac   :  { %v1143_v10 = vperm.slane %v1103_v58, %v1135_v45 }
 0x1ae   :  { %v1144_v54 = vsel %vm1137_vm0, %v1143_v10, %v1142_v59 }
 0x1af   :  { %v1163_v56 = vsel %vm1162_vm2, %v1144_v54, %v1161_v63 }
 0x1b3   :  { %v1106_v48 = vpop.permute.xlu1 %1105 }
 0x1b4   :  { %v1145_v28 = vperm.slane %v1106_v48, %v1068_v50 }
 0x1b6   :  { %v1147_v44 = vsel %vm1137_vm0, %v1146_v31, %v1145_v28 }
 0x1b7   :  { %v1165_v38 = vsel %vm1164_vm3, %v1147_v44, %v1163_v56 }
 0x1bb   :  { %v1118_v35 = vpop.permute.xlu2 %1117 }
 0x1bc   :  { %v1151_v23 = vperm.slane %v1118_v35, %v1068_v50 }
 0x1c3   :  { %v1112_v19 = vpop.permute.xlu0 %1111 }
 0x1c4   :  { %v1148_v51 = vperm.slane %v1112_v19, %v1068_v50 }
 0x1cb   :  { %v1115_v1 = vpop.permute.xlu1 %1114 }
 0x1cc   :  { %v1149_v53 = vperm.slane %v1115_v1, %v1135_v45 }
 0x1ce   :  { %v1150_v14 = vsel %vm1137_vm0, %v1149_v53, %v1148_v51 }
 0x1cf   :  { %v1167_v55 = vsel %vm1166_vm4, %v1150_v14, %v1165_v38 }
 0x1d3   :  { %v1127_v49 = vpop.permute.xlu2 %1126 }
 0x1d4   :  { %v1155_v18 = vperm.slane %v1127_v49, %v1135_v45 }
 0x1db   :  { %v1121_v34 = vpop.permute.xlu0 %1120 }
 0x1dc   :  { %v1152_v2 = vperm.slane %v1121_v34, %v1135_v45 }
 0x1de   :  { %v1153_v29 = vsel %vm1137_vm0, %v1152_v2, %v1151_v23 }
 0x1df   :  { %v1169_v24 = vsel %vm1168_vm5, %v1153_v29, %v1167_v55 }
 0x1e3   :  { %v1124_v32 = vpop.permute.xlu1 %1123 }
 0x1e4   :  { %v1154_v47 = vperm.slane %v1124_v32, %v1068_v50 }
 0x1e6   :  { %v1156_v43 = vsel %vm1137_vm0, %v1155_v18, %v1154_v47 }
 0x1e7   :  { %v1171_v37 = vsel %vm1170_vm6, %v1156_v43, %v1169_v24 }
 0x1f3   :  { %v1130_v4 = vpop.permute.xlu0 %1129 }
 0x1f4   :  { %v1157_v26 = vperm.slane %v1130_v4, %v1068_v50 }
 0x1fb   :  { %v1133_v33 = vpop.permute.xlu1 %1132 }
 0x1fc   :  { %v1158_v42 = vperm.slane %v1133_v33, %v1135_v45 }
 0x1fe   :  { %v1159_v16 = vsel %vm1137_vm0, %v1158_v42, %v1157_v26 }
 0x1ff   :  { %v1173_v27 = vsel %vm1172_vm7, %v1159_v16, %v1171_v37 }
 0x200   :  { %v1175_v11 = vsel %vm1069_vm8, %v1173_v27, -1e+30 }
 0x201   :  { %v1177_v3 = vsel %vm1176_vm9, %v1175_v11, -inf }
 0x202   :  { %1178 = vmax.xlane.f32.xlu2 %v1177_v3 }
 0x275   :  { %v1179_v40 = vpop.xlane.xlu2 %1178 }
 0x276   :  { %v1180_v7 = vmax.f32 %v1179_v40, -1e+30 }
 0x278   :  { %v1185_v0 = vsub.f32 %v1175_v11, %v1180_v7  ;;  %v1181_v5 = vsub.f32 -1e+30, %v1180_v7 }
 0x27a   :  { %v1186_v36 = vmul.f32 1.442695, %v1185_v0  ;;  %v1182_v9 = vmul.f32 1.442695, %v1181_v5 }
 0x27c   :  { %1302 = vpow2.f32 %v1186_v36 }
 0x27d   :  { %1304 = vpow2.f32 %v1182_v9 }
 0x282   :  { %v1303_v6 = vpop.eup %1302 }
 0x283   :  { %v1188_v25 = vsel %vm1176_vm9, %v1303_v6, 0.0  ;;  %v1305_v20 = vpop.eup %1304 }
 0x284   :  { %1189 = vadd.xlane.f32.xlu0 %v1188_v25  ;;  %v1184_v39 = vmul.f32 0.0, %v1305_v20 }
 0x2f7   :  { %v1190_v62 = vpop.xlane.xlu0 %1189 }
 0x2f8   :  { %v1191_v52 = vadd.f32 %v1190_v62, %v1184_v39 }
 0x2fa   :  { %1306 = vlog2.f32 %v1191_v52 }
 0x300   :  { %v1307_v61 = vpop.eup %1306 }
 0x301   :  { %v1193_v13 = vmul.f32 0.6931472, %v1307_v61 }
 0x303   :  { %v1194_v30 = vadd.f32 %v1193_v13, %v1180_v7 }
 0x305   :  { %1196 = vst.msk [vmem:[%s2081_s4] sm:$0xff] %vm1195_vm10, %v1194_v30 }

// kernel: joint_mi_forward.3
= control target key start
LH: loop header
LB: loop body
LE: loop exit
PB: predicated region body
PF: predicated region fallthrough
CT: control target
= control target key end

     0   :  { %s3157_s0 = inlined_call_operand.vmem [shape: f32[8,20,128], index: 0, kind: input, shape index: {}]   ;;  %s3158_s1 = inlined_call_operand.vmem [shape: f32[8,36,128], index: 1, kind: input, shape index: {}]   ;;  %s3159_s2 = inlined_call_operand.vmem [shape: f32[20,128], index: 2, kind: input, shape index: {}]   ;;  %s3160_s3 = inlined_call_operand.vmem [shape: f32[36,128], index: 3, kind: input, shape index: {}]   ;;  %s3161_s4 = inlined_call_operand.<no memory space> [shape: f32[1,1], index: 4, kind: input, shape index: {}]   ;;  %s3162_s6 = inlined_call_operand.vmem [shape: f32[8,64], index: 6, kind: input, shape index: {}]   ;;  %s3163_s7 = inlined_call_operand.vmem [shape: f32[8,64], index: 7, kind: input, shape index: {}]   ;;  %s3164_s8 = inlined_call_operand.vmem [shape: f32[8,64], index: 8, kind: output, shape index: {0}]   ;;  %s3165_s9 = inlined_call_operand.vmem [shape: f32[8,64], index: 9, kind: output, shape index: {1}]   ;;  %s3166_s10 = inlined_call_operand.hbm [shape: f32[1,1], index: 10, kind: output, shape index: {2}]   ;;  %s3167_s5 = inlined_call_operand.<no memory space> [shape: f32[1,1], index: 5, kind: input, shape index: {}]  }
   0x1   :  { %v16_v0 = vstv %s3161_s4  ;;  %v18_v1 = vstv %s3167_s5 }
   0x2   :  { %17 = vst [vmem:[#allocation2] sm:$0x1] %v16_v0 }
   0x3   :  { %19 = vst [vmem:[#allocation3] sm:$0x1] %v18_v1 }
   0x4   :  { %v524_v2 = vld [vmem:[%s3162_s6] sm:$0xff]  ;;  %v1668_v3 = vmov 0   ;;  %s1669_s19 = smov 64  }
   0x5   :  { %1509 = vset.pattern.permute.xlu0 %v1668_v3  ;;  %v526_v4 = vrot.slane %v524_v2, 1  ;;  %v527_v6 = vrot.slane %v524_v2, 2 }
   0x7   :  { %535 = vrot.lane.b32.xlu1 %v526_v4, %s1669_s19 }
   0x9   :  { %v1510_v5 = vld [vmem:[#allocation2] ss:$0 sm:$0xff] }
   0xa   :  { %165 = vperm.xlu0 %1509, %v1510_v5  }
   0xb   :  { %20 = vsyncpa [#allocation5], 0  ;;  %v605_v7 = vld [vmem:[%s3163_s7] sm:$0xff]  ;;  %537 = vrot.lane.b32.xlu2 %v527_v6, %s1669_s19  ;;  %v528_v11 = vrot.slane %v524_v2, 3  ;;  %v529_v12 = vrot.slane %v524_v2, 4  ;;  %v530_v16 = vrot.slane %v524_v2, 5 }
   0xc   :  { %v607_v8 = vrot.slane %v605_v7, 1  ;;  %v1511_v9 = vld [vmem:[#allocation3] ss:$0 sm:$0xff]  ;;  %v608_v10 = vrot.slane %v605_v7, 2  ;;  %v609_v13 = vrot.slane %v605_v7, 3  ;;  %v610_v14 = vrot.slane %v605_v7, 4 }
   0xd   :  { %v611_v15 = vrot.slane %v605_v7, 5  ;;  %v531_v17 = vrot.slane %v524_v2, 6  ;;  %v532_v18 = vrot.slane %v524_v2, 7  ;;  %v612_v19 = vrot.slane %v605_v7, 6  ;;  %v55_v21 = vld [vmem:[%s3157_s0 + $0x90] sm:$0xff]  ;;  %v56_v22 = vld [vmem:[%s3157_s0 + $0x98] sm:$0xff] }
   0xe   :  { %v613_v20 = vrot.slane %v605_v7, 7  ;;  %v57_v23 = vld [vmem:[%s3157_s0 + $0xa0] sm:$0xf]  ;;  %v1772_v25 = vld [vmem:[%s3159_s2 + $0x8] sm:$0xff]  ;;  %v1777_v26 = vld [vmem:[%s3159_s2 + $0x10] sm:$0xf] }
   0xf   :  { %616 = vrot.lane.b32.xlu1 %v607_v8, %s1669_s19  ;;  %v1767_v24 = vld [vmem:[%s3159_s2] sm:$0xff]  ;;  %v83_v28 = vmul.f32 %v1772_v25, %v56_v22  ;;  %v84_v29 = vmul.f32 %v1777_v26, %v57_v23  ;;  %vm89_vm0 = vcmask 1043456   ;;  %v46_v33 = vld [vmem:[%s3157_s0 + $0x48] sm:$0xff]  ;;  %v47_v34 = vld [vmem:[%s3157_s0 + $0x50] sm:$0xff]  ;;  %s1458_s18 = sshll.u32 %s3166_s10, 4  ;;  %s1459_s18 = int_to_ptr.hbm [resolvable:$true] %s1458_s18 }
  0x10   :  { %v82_v27 = vmul.f32 %v1767_v24, %v55_v21  ;;  %v48_v35 = vld [vmem:[%s3157_s0 + $0x58] sm:$0xf]  ;;  %v73_v36 = vmul.f32 %v1767_v24, %v46_v33  ;;  %v74_v37 = vmul.f32 %v1772_v25, %v47_v34  ;;  %v49_v39 = vld [vmem:[%s3157_s0 + $0x60] sm:$0xff]  ;;  %v50_v40 = vld [vmem:[%s3157_s0 + $0x68] sm:$0xff] }
  0x11   :  { %v144_v31 = vsel %vm89_vm0, %v84_v29, 0.0  ;;  %v75_v38 = vmul.f32 %v1777_v26, %v48_v35  ;;  %v51_v41 = vld [vmem:[%s3157_s0 + $0x70] sm:$0xf]  ;;  %v37_v42 = vld [vmem:[%s3157_s0] sm:$0xff]  ;;  %v38_v43 = vld [vmem:[%s3157_s0 + $0x8] sm:$0xff]  ;;  %v76_v46 = vmul.f32 %v1767_v24, %v49_v39  ;;  %v77_v47 = vmul.f32 %v1772_v25, %v50_v40 }
  0x12   :  { %353 = vperm.xlu0 %1509, %v1511_v9   ;;  %v143_v30 = vadd.f32 %v83_v28, %v82_v27  ;;  %v116_v44 = vadd.f32 %v74_v37, %v73_v36  ;;  %v201_v45 = vld [vmem:[%s3158_s1 + $0xc8] sm:$0xff]  ;;  %v202_v49 = vld [vmem:[%s3158_s1 + $0xd0] sm:$0xff]  ;;  %v1822_v50 = vld [vmem:[%s3160_s3] sm:$0xff]  ;;  %v78_v53 = vmul.f32 %v1777_v26, %v51_v41  ;;  %v64_v54 = vmul.f32 %v1767_v24, %v37_v42 }
  0x13   :  { %618 = vrot.lane.b32.xlu2 %v608_v10, %s1669_s19  ;;  %v117_v48 = vsel %vm89_vm0, %v75_v38, 0.0  ;;  %v1827_v51 = vld [vmem:[%s3160_s3 + $0x8] sm:$0xff]  ;;  %v39_v52 = vld [vmem:[%s3157_s0 + $0x10] sm:$0xf]  ;;  %v65_v56 = vmul.f32 %v1772_v25, %v38_v43  ;;  %v246_v58 = vmul.f32 %v1822_v50, %v201_v45  ;;  %v125_v61 = vadd.f32 %v77_v47, %v76_v46  ;;  %v203_v62 = vld [vmem:[%s3158_s1 + $0xd8] sm:$0xff] }
  0x14   :  { %v145_v32 = vadd.f32 %v144_v31, %v143_v30  ;;  %v118_v57 = vadd.f32 %v117_v48, %v116_v44  ;;  %v247_v59 = vmul.f32 %v1827_v51, %v202_v49  ;;  %v66_v60 = vmul.f32 %v1777_v26, %v39_v52  ;;  %v1844_v63 = vld [vmem:[%s3160_s3 + $0x10] sm:$0xff]  ;;  %v52_v1 = vld [vmem:[%s3157_s0 + $0x78] sm:$0xff]  ;;  %v54_v4 = vld [vmem:[%s3157_s0 + $0x88] sm:$0xf] }
  0x15   :  { %v126_v0 = vsel %vm89_vm0, %v78_v53, 0.0  ;;  %v58_v5 = vld [vmem:[%s3157_s0 + $0xa8] sm:$0xff]  ;;  %v59_v6 = vld [vmem:[%s3157_s0 + $0xb0] sm:$0xff]  ;;  %v248_v9 = vmul.f32 %v1844_v63, %v203_v62  ;;  %v45_v37 = vld [vmem:[%s3157_s0 + $0x40] sm:$0xf] }
  0x16   :  { %v146_v55 = vrot.slane %v145_v32, 4  ;;  %v119_v8 = vrot.slane %v118_v57, 4  ;;  %v316_v10 = vadd.f32 %v247_v59, %v246_v58  ;;  %v85_v21 = vmul.f32 %v1767_v24, %v58_v5  ;;  %v43_v31 = vld [vmem:[%s3157_s0 + $0x30] sm:$0xff]  ;;  %v192_v58 = vld [vmem:[%s3158_s1 + $0x80] sm:$0xff] }
  0x17   :  { %539 = vrot.lane.b32.xlu1 %v528_v11, %s1669_s19  ;;  %v90_v11 = vsel %vm89_vm0, %v66_v60, 0.0  ;;  %v86_v22 = vmul.f32 %v1772_v25, %v59_v6  ;;  %v70_v40 = vmul.f32 %v1767_v24, %v43_v31  ;;  %v72_v48 = vmul.f32 %v1777_v26, %v45_v37  ;;  %v196_v31 = vld [vmem:[%s3158_s1 + $0xa0] sm:$0xff] }
  0x18   :  { %v147_v3 = vadd.f32 %v146_v55, %v145_v32  ;;  %v120_v28 = vadd.f32 %v119_v8, %v118_v57  ;;  %v317_v30 = vadd.f32 %v316_v10, %v248_v9  ;;  %v44_v32 = vld [vmem:[%s3157_s0 + $0x38] sm:$0xff]  ;;  %v237_v6 = vmul.f32 %v1827_v51, %v192_v58  ;;  %v41_v9 = vld [vmem:[%s3157_s0 + $0x20] sm:$0xff] }
  0x19   :  { %v71_v41 = vmul.f32 %v1772_v25, %v44_v32  ;;  %v152_v44 = vadd.f32 %v86_v22, %v85_v21  ;;  %v191_v57 = vld [vmem:[%s3158_s1 + $0x78] sm:$0xff]  ;;  %v178_v21 = vld [vmem:[%s3158_s1 + $0x10] sm:$0xff]  ;;  %v197_v32 = vld [vmem:[%s3158_s1 + $0xa8] sm:$0xff] }
  0x1a   :  { %533 = vrot.lane.b32.xlu0 %v524_v2, %s1669_s19  ;;  %v53_v2 = vld [vmem:[%s3157_s0 + $0x80] sm:$0xff]  ;;  %v148_v23 = vrot.slane %v147_v3, 2  ;;  %v121_v43 = vrot.slane %v120_v28, 2  ;;  %v236_v5 = vmul.f32 %v1822_v50, %v191_v57  ;;  %v40_v8 = vld [vmem:[%s3157_s0 + $0x18] sm:$0xff]  ;;  %v198_v57 = vld [vmem:[%s3158_s1 + $0xb0] sm:$0xff] }
  0x1b   :  { %614 = vrot.lane.b32.xlu2 %v605_v7, %s1669_s19  ;;  %v88_v7 = vadd.f32 %v65_v56, %v64_v54  ;;  %v107_v49 = vadd.f32 %v71_v41, %v70_v40  ;;  %v108_v54 = vsel %vm89_vm0, %v72_v48, 0.0  ;;  %v195_v40 = vld [vmem:[%s3158_s1 + $0x98] sm:$0xf]  ;;  %v223_v41 = vmul.f32 %v1844_v63, %v178_v21  ;;  %v180_v48 = vld [vmem:[%s3158_s1 + $0x20] sm:$0xf] }
  0x1c   :  { %v149_v39 = vadd.f32 %v148_v23, %v147_v3  ;;  %v122_v55 = vadd.f32 %v121_v43, %v120_v28  ;;  %v68_v28 = vmul.f32 %v1772_v25, %v41_v9  ;;  %v207_v43 = vld [vmem:[%s3158_s1 + $0xf8] sm:$0xff] }
  0x1d   :  { %v91_v27 = vadd.f32 %v90_v11, %v88_v7 }
  0x1e   :  { %v150_v53 = vrot.slane %v149_v39, 1  ;;  %v123_v10 = vrot.slane %v122_v55, 1 }
  0x1f   :  { %541 = vrot.lane.b32.xlu1 %v529_v12, %s1669_s19  ;;  %v127_v12 = vadd.f32 %v126_v0, %v125_v61  ;;  %v92_v42 = vrot.slane %v91_v27, 4  ;;  %v109_v0 = vadd.f32 %v108_v54, %v107_v49 }
  0x20   :  { %v151_v3 = vadd.f32 %v150_v53, %v149_v39 }
  0x21   :  { %v128_v33 = vrot.slane %v127_v12, 4  ;;  %v93_v60 = vadd.f32 %v92_v42, %v91_v27  ;;  %v110_v7 = vrot.slane %v109_v0, 4  ;;  %v67_v27 = vmul.f32 %v1767_v24, %v40_v8  ;;  %v179_v42 = vld [vmem:[%s3158_s1 + $0x18] sm:$0xff] }
  0x22   :  { %620 = vrot.lane.b32.xlu0 %v609_v13, %s1669_s19  ;;  %v204_v13 = vld [vmem:[%s3158_s1 + $0xe0] sm:$0xff]  ;;  %v243_v8 = vmul.f32 %v1844_v63, %v198_v57  ;;  %v181_v57 = vld [vmem:[%s3158_s1 + $0x28] sm:$0xff] }
  0x23   :  { %622 = vrot.lane.b32.xlu2 %v610_v14, %s1669_s19  ;;  %v1870_v14 = vld [vmem:[%s3160_s3 + $0x18] sm:$0xff]  ;;  %v129_v46 = vadd.f32 %v128_v33, %v127_v12  ;;  %v294_v33 = vadd.f32 %v237_v6, %v236_v5 }
  0x24   :  { %v249_v29 = vmul.f32 %v1870_v14, %v204_v13  ;;  %v42_v13 = vld [vmem:[%s3157_s0 + $0x28] sm:$0xf]  ;;  %v199_v6 = vld [vmem:[%s3158_s1 + $0xb8] sm:$0xff] }
  0x25   :  { %v130_v61 = vrot.slane %v129_v46, 2 }
  0x26   :  { %v318_v45 = vadd.f32 %v317_v30, %v249_v29  ;;  %v194_v30 = vld [vmem:[%s3158_s1 + $0x90] sm:$0xff] }
  0x27   :  { %624 = vrot.lane.b32.xlu1 %v611_v15, %s1669_s19  ;;  %v79_v15 = vmul.f32 %v1767_v24, %v52_v1  ;;  %v176_v1 = vld [vmem:[%s3158_s1] sm:$0xff]  ;;  %v69_v24 = vmul.f32 %v1777_v26, %v42_v13 }
  0x29   :  { %v99_v54 = vsel %vm89_vm0, %v69_v24, 0.0 }
  0x2a   :  { %543 = vrot.lane.b32.xlu0 %v530_v16, %s1669_s19  ;;  %v80_v16 = vmul.f32 %v1772_v25, %v53_v2  ;;  %v177_v2 = vld [vmem:[%s3158_s1 + $0x8] sm:$0xff]  ;;  %v124_v25 = vadd.f32 %v123_v10, %v122_v55 }
  0x2b   :  { %545 = vrot.lane.b32.xlu2 %v531_v17, %s1669_s19  ;;  %v205_v17 = vld [vmem:[%s3158_s1 + $0xe8] sm:$0xf]  ;;  %v222_v22 = vmul.f32 %v1827_v51, %v177_v2  ;;  %v208_v2 = vld [vmem:[%s3158_s1 + $0x100] sm:$0xff] }
  0x2c   :  { %v134_v36 = vadd.f32 %v80_v16, %v79_v15  ;;  %v94_v16 = vrot.slane %v93_v60, 2  ;;  %v253_v21 = vmul.f32 %v1844_v63, %v208_v2 }
  0x2e   :  { %v1956_v37 = vadd.f32 %v94_v16, %v93_v60 }
  0x2f   :  { %547 = vrot.lane.b32.xlu1 %v532_v18, %s1669_s19  ;;  %v1880_v18 = vld [vmem:[%s3160_s3 + $0x20] sm:$0xf] }
  0x30   :  { %v250_v34 = vmul.f32 %v1880_v18, %v205_v17  ;;  %v131_v17 = vadd.f32 %v130_v61, %v129_v46  ;;  %v242_v46 = vmul.f32 %v1827_v51, %v197_v32  ;;  %v240_v58 = vmul.f32 %v1880_v18, %v195_v40  ;;  %v210_v32 = vld [vmem:[%s3158_s1 + $0x110] sm:$0xf] }
  0x31   :  { %v224_v61 = vmul.f32 %v1870_v14, %v179_v42 }
  0x32   :  { %626 = vrot.lane.b32.xlu0 %v612_v19, %s1669_s19  ;;  %v60_v19 = vld [vmem:[%s3157_s0 + $0xb8] sm:$0xf]  ;;  %v319_v47 = vsel %vm89_vm0, %v250_v34, 0.0  ;;  %v111_v34 = vadd.f32 %v110_v7, %v109_v0  ;;  %v252_v0 = vmul.f32 %v1827_v51, %v207_v43  ;;  %v200_v7 = vld [vmem:[%s3158_s1 + $0xc0] sm:$0xf]  ;;  %v297_v13 = vsel %vm89_vm0, %v240_v58, 0.0 }
  0x33   :  { %628 = vrot.lane.b32.xlu2 %v613_v20, %s1669_s19  ;;  %v81_v20 = vmul.f32 %v1777_v26, %v54_v4  ;;  %v87_v35 = vmul.f32 %v1777_v26, %v60_v19  ;;  %v320_v59 = vadd.f32 %v319_v47, %v318_v45  ;;  %v193_v4 = vld [vmem:[%s3158_s1 + $0x88] sm:$0xff]  ;;  %v206_v26 = vld [vmem:[%s3158_s1 + $0xf0] sm:$0xff]  ;;  %v241_v45 = vmul.f32 %v1822_v50, %v196_v31 }
  0x34   :  { %v238_v23 = vmul.f32 %v1844_v63, %v193_v4  ;;  %v98_v47 = vadd.f32 %v68_v28, %v67_v27  ;;  %v112_v53 = vrot.slane %v111_v34, 2  ;;  %v244_v27 = vmul.f32 %v1870_v14, %v199_v6  ;;  %v182_v58 = vld [vmem:[%s3158_s1 + $0x30] sm:$0xff] }
  0x35   :  { %v135_v38 = vsel %vm89_vm0, %v81_v20, 0.0  ;;  %v153_v52 = vsel %vm89_vm0, %v87_v35, 0.0  ;;  %v321_v12 = vrot.slane %v320_v59, 4  ;;  %v221_v20 = vmul.f32 %v1822_v50, %v176_v1 }
  0x36   :  { %v136_v56 = vadd.f32 %v135_v38, %v134_v36  ;;  %v154_v62 = vadd.f32 %v153_v52, %v152_v44  ;;  %v132_v38 = vrot.slane %v131_v17, 1  ;;  %v239_v44 = vmul.f32 %v1870_v14, %v194_v30 }
  0x37   :  { %v322_v36 = vadd.f32 %v321_v12, %v320_v59  ;;  %v261_v49 = vadd.f32 %v222_v22, %v221_v20  ;;  %v295_v52 = vadd.f32 %v294_v33, %v238_v23  ;;  %v113_v4 = vadd.f32 %v112_v53, %v111_v34  ;;  %v209_v23 = vld [vmem:[%s3158_s1 + $0x108] sm:$0xff]  ;;  %v211_v33 = vld [vmem:[%s3158_s1 + $0x118] sm:$0xff] }
  0x38   :  { %v137_v11 = vrot.slane %v136_v56, 4  ;;  %v155_v19 = vrot.slane %v154_v62, 4  ;;  %v133_v60 = vadd.f32 %v132_v38, %v131_v17  ;;  %v100_v5 = vadd.f32 %v99_v54, %v98_v47 }
  0x39   :  { %v323_v59 = vrot.slane %v322_v36, 2  ;;  %v262_v9 = vadd.f32 %v261_v49, %v223_v41  ;;  %v296_v10 = vadd.f32 %v295_v52, %v239_v44  ;;  %v96_v12 = vrot.slane %v1956_v37, 1 }
  0x3a   :  { %v138_v35 = vadd.f32 %v137_v11, %v136_v56  ;;  %v156_v39 = vadd.f32 %v155_v19, %v154_v62  ;;  %v251_v62 = vmul.f32 %v1822_v50, %v206_v26  ;;  %v305_v11 = vadd.f32 %v242_v46, %v241_v45  ;;  %v213_v46 = vld [vmem:[%s3158_s1 + $0x128] sm:$0xff] }
  0x3b   :  { %v324_v16 = vadd.f32 %v323_v59, %v322_v36  ;;  %v245_v28 = vmul.f32 %v1880_v18, %v200_v7  ;;  %v114_v30 = vrot.slane %v113_v4, 1  ;;  %v101_v31 = vrot.slane %v100_v5, 4  ;;  %v212_v36 = vld [vmem:[%s3158_s1 + $0x120] sm:$0xff] }
  0x3c   :  { %v139_v55 = vrot.slane %v138_v35, 2  ;;  %v157_v1 = vrot.slane %v156_v39, 2  ;;  %v327_v22 = vadd.f32 %v252_v0, %v251_v62  ;;  %v263_v34 = vadd.f32 %v262_v9, %v224_v61 }
  0x3d   :  { %v306_v24 = vadd.f32 %v305_v11, %v243_v8  ;;  %v325_v38 = vrot.slane %v324_v16, 1  ;;  %v115_v41 = vadd.f32 %v114_v30, %v113_v4  ;;  %v102_v42 = vadd.f32 %v101_v31, %v100_v5  ;;  %v183_v5 = vld [vmem:[%s3158_s1 + $0x38] sm:$0xff] }
  0x3e   :  { %v2002_v19 = vadd.f32 %v139_v55, %v138_v35  ;;  %v298_v35 = vadd.f32 %v297_v13, %v296_v10  ;;  %v2023_v26 = vadd.f32 %v157_v1, %v156_v39  ;;  %v254_v43 = vmul.f32 %v1870_v14, %v209_v23 }
  0x3f   :  { %v328_v44 = vadd.f32 %v327_v22, %v253_v21  ;;  %v255_v47 = vmul.f32 %v1880_v18, %v210_v32  ;;  %v103_v52 = vrot.slane %v102_v42, 2  ;;  %v257_v39 = vmul.f32 %v1827_v51, %v212_v36  ;;  %v185_v21 = vld [vmem:[%s3158_s1 + $0x48] sm:$0xf] }
  0x40   :  { %v307_v53 = vadd.f32 %v306_v24, %v244_v27  ;;  %v299_v55 = vrot.slane %v298_v35, 4  ;;  %v308_v59 = vsel %vm89_vm0, %v245_v28, 0.0  ;;  %v258_v0 = vmul.f32 %v1844_v63, %v213_v46 }
  0x41   :  { %v329_v1 = vadd.f32 %v328_v44, %v254_v43  ;;  %v104_v4 = vadd.f32 %v103_v52, %v102_v42  ;;  %v330_v6 = vsel %vm89_vm0, %v255_v47, 0.0  ;;  %v226_v8 = vmul.f32 %v1822_v50, %v181_v57 }
  0x42   :  { %v227_v9 = vmul.f32 %v1827_v51, %v182_v58  ;;  %v300_v11 = vadd.f32 %v299_v55, %v298_v35  ;;  %v309_v13 = vadd.f32 %v308_v59, %v307_v53  ;;  %v228_v27 = vmul.f32 %v1844_v63, %v183_v5 }
  0x43   :  { %v331_v30 = vadd.f32 %v330_v6, %v329_v1  ;;  %v97_v36 = vadd.f32 %v96_v12, %v1956_v37  ;;  %v159_v42 = vrot.slane %v2023_v26, 1  ;;  %v141_v59 = vrot.slane %v2002_v19, 1  ;;  %v187_v6 = vld [vmem:[%s3158_s1 + $0x58] sm:$0xff] }
  0x44   :  { %v272_v35 = vadd.f32 %v227_v9, %v226_v8 }
  0x7c   :  { %v1933_v15 = vpop.permute.xlu0 %165 }
  0x7d   :  { %v1944_v29 = vadd.f32 %v1933_v15, %v151_v3  ;;  %v1979_v56 = vadd.f32 %v1933_v15, %v124_v25  ;;  %v225_v3 = vmul.f32 %v1880_v18, %v180_v48  ;;  %v2005_v20 = vadd.f32 %v1933_v15, %v133_v60 }
  0x7e   :  { %v256_v48 = vmul.f32 %v1822_v50, %v211_v33  ;;  %v2033_v49 = vadd.f32 %v1933_v15, %v115_v41  ;;  %v326_v60 = vadd.f32 %v325_v38, %v324_v16  ;;  %v105_v16 = vrot.slane %v104_v4, 1  ;;  %v214_v33 = vld [vmem:[%s3158_s1 + $0x130] sm:$0xff] }
  0x7f   :  { %v375_v17 = vand.u32 2147483647, %v1979_v56  ;;  %v264_v25 = vsel %vm89_vm0, %v225_v3, 0.0  ;;  %v376_v45 = vand.u32 2147483647, %v2005_v20  ;;  %v301_v38 = vrot.slane %v300_v11, 2 }
  0x80   :  { %v265_v54 = vadd.f32 %v264_v25, %v263_v34  ;;  %v374_v62 = vand.u32 2147483647, %v2033_v49  ;;  %v338_v28 = vadd.f32 %v257_v39, %v256_v48  ;;  %v106_v32 = vadd.f32 %v105_v16, %v104_v4  ;;  %v215_v34 = vld [vmem:[%s3158_s1 + $0x138] sm:$0xf] }
  0x81   :  { %v383_v40 = vsub.f32 0.0, %v375_v17  ;;  %v384_v3 = vsub.f32 0.0, %v376_v45  ;;  %v184_v17 = vld [vmem:[%s3158_s1 + $0x40] sm:$0xff]  ;;  %v230_v25 = vmul.f32 %v1880_v18, %v185_v21  ;;  %v273_v45 = vadd.f32 %v272_v35, %v228_v27 }
  0x82   :  { %v382_v7 = vsub.f32 0.0, %v374_v62  ;;  %v266_v10 = vrot.slane %v265_v54, 4  ;;  %v229_v24 = vmul.f32 %v1870_v14, %v184_v17  ;;  %v2075_v41 = vadd.f32 %v1933_v15, %v106_v32  ;;  %v188_v17 = vld [vmem:[%s3158_s1 + $0x60] sm:$0xff]  ;;  %v189_v32 = vld [vmem:[%s3158_s1 + $0x68] sm:$0xff] }
  0x83   :  { %v394_v61 = vmul.f32 1.442695, %v383_v40  ;;  %v396_v31 = vmul.f32 1.442695, %v384_v3  ;;  %v310_v40 = vrot.slane %v309_v13, 4  ;;  %v259_v46 = vmul.f32 %v1870_v14, %v214_v33 }
  0x84   :  { %v2045_v2 = vpop.permute.xlu0 %353  ;;  %v392_v23 = vmul.f32 1.442695, %v382_v7  ;;  %v267_v43 = vadd.f32 %v266_v10, %v265_v54  ;;  %v260_v47 = vmul.f32 %v1880_v18, %v215_v34  ;;  %v373_v48 = vand.u32 2147483647, %v2075_v41  ;;  %v190_v33 = vld [vmem:[%s3158_s1 + $0x70] sm:$0xf] }
  0x85   :  { %v2060_v22 = vadd.f32 %v2045_v2, %v326_v60  ;;  %1512 = vpow2.f32 %v394_v61  ;;  %v275_v52 = vsel %vm89_vm0, %v230_v25, 0.0  ;;  %v339_v12 = vadd.f32 %v338_v28, %v258_v0  ;;  %v186_v0 = vld [vmem:[%s3158_s1 + $0x50] sm:$0xff] }
  0x86   :  { %1514 = vpow2.f32 %v392_v23  ;;  %v332_v39 = vrot.slane %v331_v30, 4  ;;  %v274_v53 = vadd.f32 %v273_v45, %v229_v24  ;;  %v302_v55 = vadd.f32 %v301_v38, %v300_v11 }
  0x87   :  { %v457_v44 = vand.u32 2147483647, %v2060_v22  ;;  %1516 = vpow2.f32 %v396_v31  ;;  %v311_v57 = vadd.f32 %v310_v40, %v309_v13  ;;  %v381_v58 = vsub.f32 0.0, %v373_v48 }
  0x88   :  { %v268_v60 = vrot.slane %v267_v43, 2  ;;  %v276_v62 = vadd.f32 %v275_v52, %v274_v53  ;;  %v2085_v1 = vadd.f32 %v1933_v15, %v97_v36  ;;  %v160_v7 = vadd.f32 %v159_v42, %v2023_v26 }
  0x89   :  { %v465_v61 = vsub.f32 0.0, %v457_v44  ;;  %v390_v5 = vmul.f32 1.442695, %v381_v58  ;;  %v340_v8 = vadd.f32 %v339_v12, %v259_v46  ;;  %v333_v9 = vadd.f32 %v332_v39, %v331_v30 }
  0x8a   :  { %v341_v10 = vsel %vm89_vm0, %v260_v47, 0.0  ;;  %v303_v11 = vrot.slane %v302_v55, 1  ;;  %v312_v13 = vrot.slane %v311_v57, 2  ;;  %v277_v16 = vrot.slane %v276_v62, 4 }
  0x8b   :  { %v1513_v37 = vpop.eup %1512  ;;  %v478_v23 = vmul.f32 1.442695, %v465_v61  ;;  %v231_v27 = vmul.f32 %v1822_v50, %v186_v0  ;;  %v232_v28 = vmul.f32 %v1827_v51, %v187_v6  ;;  %v269_v26 = vadd.f32 %v268_v60, %v267_v43 }
  0x8c   :  { %v1515_v54 = vpop.eup %1514  ;;  %v407_v3 = vadd.f32 1.0, %v1513_v37  ;;  %v372_v30 = vand.u32 2147483647, %v2085_v1  ;;  %v278_v31 = vadd.f32 %v277_v16, %v276_v62  ;;  %v142_v34 = vadd.f32 %v141_v59, %v2002_v19 }
  0x8d   :  { %v406_v4 = vadd.f32 1.0, %v1515_v54  ;;  %v1517_v21 = vpop.eup %1516  ;;  %v2109_v24 = vadd.f32 %v1933_v15, %v160_v7  ;;  %v342_v50 = vadd.f32 %v341_v10, %v340_v8  ;;  %v233_v51 = vmul.f32 %v1844_v63, %v188_v17 }
  0x8e   :  { %v304_v25 = vadd.f32 %v303_v11, %v302_v55  ;;  %v334_v35 = vrot.slane %v333_v9, 2  ;;  %v408_v36 = vadd.f32 1.0, %v1517_v21  ;;  %v279_v38 = vrot.slane %v278_v31, 2 }
  0x8f   :  { %1518 = vlog2.f32 %v406_v4  ;;  %3181 = vst [vmem:[#allocation7_spill] sm:$0xff] %v2109_v24  ;;  %v234_v40 = vmul.f32 %v1870_v14, %v189_v32  ;;  %v235_v42 = vmul.f32 %v1880_v18, %v190_v33  ;;  %v283_v43 = vadd.f32 %v232_v28, %v231_v27 }
  0x90   :  { %1520 = vpow2.f32 %v390_v5  ;;  %v270_v45 = vrot.slane %v269_v26, 1  ;;  %v313_v46 = vadd.f32 %v312_v13, %v311_v57  ;;  %v380_v19 = vsub.f32 0.0, %v372_v30 }
  0x91   :  { %1522 = vlog2.f32 %v407_v3  ;;  %v280_v47 = vadd.f32 %v279_v38, %v278_v31  ;;  %v366_v52 = vmax.f32 %v2033_v49, 0.0  ;;  %v284_v63 = vadd.f32 %v283_v43, %v233_v51 }
  0x92   :  { %1524 = vpow2.f32 %v478_v23  ;;  %v379_v12 = vand.u32 2147483647, %v2109_v24  ;;  %v2117_v53 = vadd.f32 %v2045_v2, %v304_v25  ;;  %v286_v18 = vsel %vm89_vm0, %v235_v42, 0.0 }
  0x93   :  { %v281_v55 = vrot.slane %v280_v47, 1  ;;  %1526 = vlog2.f32 %v408_v36  ;;  %v285_v57 = vadd.f32 %v284_v63, %v234_v40  ;;  %v271_v59 = vadd.f32 %v270_v45, %v269_v26 }
  0x94   :  { %v387_v54 = vsub.f32 0.0, %v379_v12  ;;  %v343_v60 = vrot.slane %v342_v50, 4  ;;  %v335_v3 = vadd.f32 %v334_v35, %v333_v9  ;;  %v314_v6 = vrot.slane %v313_v46, 1 }
  0x95   :  { %v1519_v44 = vpop.eup %1518  ;;  %v282_v61 = vadd.f32 %v281_v55, %v280_v47  ;;  %v287_v0 = vadd.f32 %v286_v18, %v285_v57  ;;  %v388_v7 = vmul.f32 1.442695, %v380_v19  ;;  %v367_v11 = vmax.f32 %v1979_v56, 0.0 }
  0x96   :  { %v1521_v48 = vpop.eup %1520  ;;  %v417_v37 = vmul.f32 0.6931472, %v1519_v44  ;;  %v402_v10 = vmul.f32 1.442695, %v387_v54  ;;  %v455_v13 = vand.u32 2147483647, %v2117_v53  ;;  %v2130_v9 = vadd.f32 %v2045_v2, %v271_v59 }
  0x97   :  { %v1523_v39 = vpop.eup %1522  ;;  %v405_v14 = vadd.f32 1.0, %v1521_v48  ;;  %v2123_v8 = vadd.f32 %v2045_v2, %v282_v61  ;;  %v288_v16 = vrot.slane %v287_v0, 4  ;;  %v336_v27 = vrot.slane %v335_v3, 1 }
  0x98   :  { %v430_v58 = vadd.f32 %v417_v37, %v366_v52  ;;  %v1525_v62 = vpop.eup %1524  ;;  %v419_v4 = vmul.f32 0.6931472, %v1523_v39  ;;  %v344_v28 = vadd.f32 %v343_v60, %v342_v50  ;;  %v2134_v32 = vadd.f32 %v1933_v15, %v142_v34 }
  0x99   :  { %1528 = vlog2.f32 %v405_v14  ;;  %v489_v17 = vadd.f32 1.0, %v1525_v62  ;;  %v453_v21 = vand.u32 2147483647, %v2123_v8  ;;  %v1527_v23 = vpop.eup %1526  ;;  %v289_v30 = vadd.f32 %v288_v16, %v287_v0 }
  0x9a   :  { %v2120_v5 = vadd.f32 1e-07, %v430_v58  ;;  %1530 = vpow2.f32 %v402_v10  ;;  %v431_v26 = vadd.f32 %v419_v4, %v367_v11  ;;  %v315_v33 = vadd.f32 %v314_v6, %v313_v46 }
  0x9b   :  { %1532 = vpow2.f32 %v388_v7  ;;  %v461_v51 = vsub.f32 0.0, %v453_v21  ;;  %v463_v25 = vsub.f32 0.0, %v455_v13  ;;  %v365_v35 = vmax.f32 %v2075_v41, 0.0 }
  0x9c   :  { %762 = vrot.lane.b32.xlu2 %v2120_v5, %s1669_s19  ;;  %v290_v38 = vrot.slane %v289_v30, 2  ;;  %v452_v40 = vand.u32 2147483647, %v2130_v9  ;;  %v421_v42 = vmul.f32 0.6931472, %v1527_v23  ;;  %1534 = vlog2.f32 %v489_v17 }
  0x9d   :  { %v470_v43 = vmul.f32 1.442695, %v461_v51  ;;  %v2138_v50 = vadd.f32 1e-07, %v431_v26  ;;  %v337_v15 = vadd.f32 %v336_v27, %v335_v3  ;;  %v345_v34 = vrot.slane %v344_v28, 2 }
  0x9e   :  { %v291_v45 = vadd.f32 %v290_v38, %v289_v30  ;;  %v368_v46 = vmax.f32 %v2005_v20, 0.0  ;;  %v2142_v47 = vadd.f32 %v2045_v2, %v315_v33  ;;  %v474_v48 = vmul.f32 1.442695, %v463_v25 }
  0x9f   :  { %v1529_v31 = vpop.eup %1528  ;;  %1536 = vpow2.f32 %v470_v43  ;;  %v460_v12 = vsub.f32 0.0, %v452_v40  ;;  %v377_v14 = vand.u32 2147483647, %v2134_v32  ;;  %v346_v57 = vadd.f32 %v345_v34, %v344_v28 }
  0xa0   :  { %v415_v36 = vmul.f32 0.6931472, %v1529_v31  ;;  %v1531_v19 = vpop.eup %1530  ;;  %v292_v37 = vrot.slane %v291_v45, 1  ;;  %v432_v39 = vadd.f32 %v421_v42, %v368_v46  ;;  %v2152_v54 = vadd.f32 %v2045_v2, %v337_v15 }
  0xa1   :  { %v1533_v63 = vpop.eup %1532  ;;  %v411_v55 = vadd.f32 1.0, %v1531_v19  ;;  %v456_v59 = vand.u32 2147483647, %v2142_v47  ;;  %1538 = vpow2.f32 %v474_v48  ;;  %v468_v62 = vmul.f32 1.442695, %v460_v12 }
  0xa2   :  { %v429_v44 = vadd.f32 %v415_v36, %v365_v35  ;;  %v293_v18 = vadd.f32 %v292_v37, %v291_v45  ;;  %v1535_v58 = vpop.eup %1534  ;;  %3182 = vst [vmem:[#allocation8_spill] sm:$0xff] %v2152_v54  ;;  %v2158_v3 = vadd.f32 1e-07, %v432_v39  ;;  %v385_v4 = vsub.f32 0.0, %v377_v14  ;;  %v2175_v39 = vpop.permute.xlu1 %535 }
  0xa3   :  { %1540 = vlog2.f32 %v411_v55  ;;  %v404_v0 = vadd.f32 1.0, %v1533_v63  ;;  %v503_v6 = vmul.f32 0.6931472, %v1535_v58  ;;  %v449_v11 = vmax.f32 %v2060_v22, 0.0 }
  0xa4   :  { %v2144_v52 = vadd.f32 1e-07, %v429_v44  ;;  %764 = vrot.lane.b32.xlu2 %v2138_v50, %s1669_s19  ;;  %v2156_v60 = vadd.f32 %v2045_v2, %v293_v18  ;;  %v458_v16 = vand.u32 2147483647, %v2152_v54  ;;  %v347_v17 = vrot.slane %v346_v57, 1 }
  0xa5   :  { %v1537_v61 = vpop.eup %1536  ;;  %v464_v21 = vsub.f32 0.0, %v456_v59  ;;  %v398_v23 = vmul.f32 1.442695, %v385_v4  ;;  %v513_v28 = vadd.f32 %v503_v6, %v449_v11  ;;  %v378_v25 = vand.u32 2147483647, %v1944_v29 }
  0xa6   :  { %760 = vrot.lane.b32.xlu0 %v2144_v52, %s1669_s19  ;;  %v485_v7 = vadd.f32 1.0, %v1537_v61  ;;  %v454_v10 = vand.u32 2147483647, %v2156_v60  ;;  %v466_v31 = vsub.f32 0.0, %v458_v16  ;;  %v348_v33 = vadd.f32 %v347_v17, %v346_v57 }
  0xa7   :  { %v1539_v27 = vpop.eup %1538  ;;  %v476_v51 = vmul.f32 1.442695, %v464_v21  ;;  %v2166_v38 = vadd.f32 1e-07, %v513_v28  ;;  %v445_v43 = vmax.f32 %v2123_v8, 0.0  ;;  %v371_v19 = vmax.f32 %v2109_v24, 0.0 }
  0xa8   :  { %1542 = vlog2.f32 %v485_v7  ;;  %v462_v13 = vsub.f32 0.0, %v454_v10  ;;  %v487_v36 = vadd.f32 1.0, %v1539_v27  ;;  %v480_v15 = vmul.f32 1.442695, %v466_v31  ;;  %v2185_v7 = vpop.permute.xlu2 %537 }
  0xa9   :  { %1544 = vpow2.f32 %v468_v62  ;;  %v1541_v30 = vpop.eup %1540  ;;  %v2173_v34 = vadd.f32 %v2045_v2, %v348_v33  ;;  %v386_v46 = vsub.f32 0.0, %v378_v25  ;;  %v364_v57 = vmax.f32 %v2085_v1, 0.0 }
  0xaa   :  { %1546 = vlog2.f32 %v404_v0  ;;  %v472_v26 = vmul.f32 1.442695, %v462_v13  ;;  %v427_v40 = vmul.f32 0.6931472, %v1541_v30  ;;  %v534_v30 = vpop.permute.xlu0 %533  ;;  %v447_v31 = vmax.f32 %v2117_v53, 0.0 }
  0xab   :  { %3183 = vst [vmem:[#allocation9_spill] sm:$0xff] %v2173_v34  ;;  %v400_v59 = vmul.f32 1.442695, %v386_v46  ;;  %v459_v2 = vand.u32 2147483647, %v2173_v34 }
  0xac   :  { %766 = vrot.lane.b32.xlu2 %v2158_v3, %s1669_s19  ;;  %1548 = vpow2.f32 %v472_v26  ;;  %v435_v63 = vadd.f32 %v427_v40, %v371_v19  ;;  %v617_v26 = vpop.permute.xlu1 %616  ;;  %v444_v19 = vmax.f32 %v2130_v9, 0.0 }
  0xad   :  { %1550 = vpow2.f32 %v398_v23  ;;  %v467_v10 = vsub.f32 0.0, %v459_v2  ;;  %v446_v23 = vmax.f32 %v2156_v60, 0.0 }
  0xae   :  { %v1543_v35 = vpop.eup %1542  ;;  %1552 = vpow2.f32 %v476_v51  ;;  %v2183_v62 = vadd.f32 1e-07, %v435_v63 }
  0xaf   :  { %v1545_v42 = vpop.eup %1544  ;;  %v495_v44 = vmul.f32 0.6931472, %v1543_v35  ;;  %1554 = vlog2.f32 %v487_v36  ;;  %v482_v33 = vmul.f32 1.442695, %v467_v10 }
  0xb0   :  { %v1547_v45 = vpop.eup %1546  ;;  %v484_v14 = vadd.f32 1.0, %v1545_v42  ;;  %1556 = vpow2.f32 %v480_v15 }
  0xb1   :  { %v509_v48 = vadd.f32 %v495_v44, %v445_v43  ;;  %v413_v55 = vmul.f32 0.6931472, %v1547_v45  ;;  %v619_v45 = vpop.permute.xlu2 %618 }
  0xb2   :  { %v1549_v37 = vpop.eup %1548 }
  0xb3   :  { %v1551_v12 = vpop.eup %1550  ;;  %v2177_v18 = vadd.f32 1e-07, %v509_v48  ;;  %v486_v58 = vadd.f32 1.0, %v1549_v37  ;;  %v428_v0 = vadd.f32 %v413_v55, %v364_v57 }
  0xb4   :  { %1034 = vrot.lane.b32.xlu2 %v2166_v38, %s1669_s19  ;;  %v409_v61 = vadd.f32 1.0, %v1551_v12  ;;  %v1553_v4 = vpop.eup %1552  ;;  %v369_v12 = vmax.f32 %v2134_v32, 0.0 }
  0xb5   :  { %1026 = vrot.lane.b32.xlu1 %v2177_v18, %s1669_s19  ;;  %1558 = vlog2.f32 %v486_v58  ;;  %v1555_v6 = vpop.eup %1554  ;;  %v2189_v16 = vadd.f32 1e-07, %v428_v0  ;;  %v488_v17 = vadd.f32 1.0, %v1553_v4  ;;  %v639_v35 = vmul.f32 %v617_v26, %v2177_v18  ;;  %v621_v58 = vpop.permute.xlu0 %620 }
  0xb6   :  { %1560 = vlog2.f32 %v484_v14  ;;  %v1557_v11 = vpop.eup %1556  ;;  %v499_v21 = vmul.f32 0.6931472, %v1555_v6  ;;  %v448_v4 = vmax.f32 %v2142_v47, 0.0 }
  0xb7   :  { %1562 = vpow2.f32 %v400_v59  ;;  %v490_v25 = vadd.f32 1.0, %v1557_v11  ;;  %v557_v14 = vmul.f32 %v534_v30, %v2189_v16 }
  0xb8   :  { %1564 = vlog2.f32 %v409_v61  ;;  %v511_v40 = vadd.f32 %v499_v21, %v447_v31  ;;  %v450_v21 = vmax.f32 %v2152_v54, 0.0  ;;  %v370_v31 = vmax.f32 %v1944_v29, 0.0 }
  0xb9   :  { %1566 = vlog2.f32 %v488_v17  ;;  %v615_v11 = vpop.permute.xlu2 %614 }
  0xba   :  { %1568 = vpow2.f32 %v482_v33  ;;  %v2202_v15 = vadd.f32 1e-07, %v511_v40 }
  0xbb   :  { %v1559_v13 = vpop.eup %1558  ;;  %1570 = vlog2.f32 %v490_v25 }
  0xbc   :  { %772 = vrot.lane.b32.xlu2 %v2183_v62, %s1669_s19  ;;  %v497_v27 = vmul.f32 0.6931472, %v1559_v13  ;;  %v1561_v28 = vpop.eup %1560 }
  0xbd   :  { %758 = vrot.lane.b32.xlu1 %v2189_v16, %s1669_s19  ;;  %v1563_v36 = vpop.eup %1562  ;;  %v493_v43 = vmul.f32 0.6931472, %v1561_v28  ;;  %v544_v30 = vpop.permute.xlu0 %543 }
  0xbe   :  { %v510_v51 = vadd.f32 %v497_v27, %v446_v23  ;;  %v1565_v42 = vpop.eup %1564  ;;  %v410_v46 = vadd.f32 1.0, %v1563_v36  ;;  %v641_v23 = vmul.f32 %v621_v58, %v2202_v15  ;;  %v540_v58 = vpop.permute.xlu1 %539 }
  0xbf   :  { %v423_v48 = vmul.f32 0.6931472, %v1565_v42  ;;  %v508_v37 = vadd.f32 %v493_v43, %v444_v19  ;;  %v1567_v63 = vpop.eup %1566  ;;  %v451_v43 = vmax.f32 %v2173_v34, 0.0 }
  0xc0   :  { %v2196_v44 = vadd.f32 1e-07, %v510_v51  ;;  %v1569_v55 = vpop.eup %1568  ;;  %1572 = vlog2.f32 %v410_v46  ;;  %v501_v61 = vmul.f32 0.6931472, %v1567_v63  ;;  %v558_v46 = vmul.f32 %v2175_v39, %v2144_v52 }
  0xc1   :  { %v433_v57 = vadd.f32 %v423_v48, %v369_v12  ;;  %v1571_v59 = vpop.eup %1570  ;;  %v516_v2 = vadd.f32 1e-07, %v508_v37  ;;  %v491_v6 = vadd.f32 1.0, %v1569_v55 }
  0xc2   :  { %1028 = vrot.lane.b32.xlu0 %v2196_v44, %s1669_s19  ;;  %v505_v10 = vmul.f32 0.6931472, %v1571_v59  ;;  %v512_v13 = vadd.f32 %v501_v61, %v448_v4  ;;  %v640_v55 = vmul.f32 %v619_v45, %v2196_v44  ;;  %v560_v4 = vmul.f32 %v540_v58, %v2138_v50 }
  0xc3   :  { %v2211_v0 = vadd.f32 1e-07, %v433_v57  ;;  %1574 = vlog2.f32 %v491_v6  ;;  %v638_v61 = vmul.f32 %v615_v11, %v516_v2 }
  0xc4   :  { %656 = vrot.lane.b32.xlu2 %v639_v35, %s1669_s19  ;;  %v514_v27 = vadd.f32 %v505_v10, %v450_v21  ;;  %v520_v28 = vadd.f32 1e-07, %v512_v13  ;;  %v623_v35 = vpop.permute.xlu2 %622  ;;  %1576 = vlog2.f32 %v2144_v52  ;;  %v559_v52 = vmul.f32 %v2185_v7, %v2120_v5 }
  0xc5   :  { %1030 = vrot.lane.b32.xlu1 %v2202_v15, %s1669_s19  ;;  %v562_v36 = vmul.f32 %v544_v30, %v2211_v0  ;;  %v627_v19 = vpop.permute.xlu0 %626  ;;  %1578 = vlog2.f32 %v2196_v44 }
  0xc6   :  { %v1573_v17 = vpop.eup %1572  ;;  %v2220_v33 = vadd.f32 1e-07, %v514_v27  ;;  %1580 = vlog2.f32 %v516_v2  ;;  %v542_v44 = vpop.permute.xlu1 %541  ;;  %v642_v10 = vmul.f32 %v623_v35, %v520_v28 }
  0xc7   :  { %v425_v26 = vmul.f32 0.6931472, %v1573_v17  ;;  %1582 = vlog2.f32 %v520_v28  ;;  %v561_v11 = vmul.f32 %v542_v44, %v2158_v3 }
  0xc8   :  { %v644_v37 = vmul.f32 %v627_v19, %v2220_v33 }
  0xc9   :  { %v434_v51 = vadd.f32 %v425_v26, %v370_v31  ;;  %v1575_v25 = vpop.eup %1574 }
  0xca   :  { %1024 = vrot.lane.b32.xlu0 %v516_v2, %s1669_s19  ;;  %v507_v42 = vmul.f32 0.6931472, %v1575_v25 }
  0xcb   :  { %v442_v40 = vadd.f32 1e-07, %v434_v51 }
  0xcc   :  { %573 = vrot.lane.b32.xlu2 %v557_v14, %s1669_s19  ;;  %v515_v48 = vadd.f32 %v507_v42, %v451_v43  ;;  %v546_v63 = vpop.permute.xlu2 %545  ;;  %v1577_v14 = vpop.eup %1576 }
  0xcd   :  { %768 = vrot.lane.b32.xlu1 %v2211_v0, %s1669_s19  ;;  %v921_v39 = vmul.f32 0.6931472, %v1577_v14  ;;  %v1579_v59 = vpop.eup %1578  ;;  %v563_v21 = vmul.f32 %v546_v63, %v442_v40  ;;  %1584 = vlog2.f32 %v442_v40 }
  0xce   :  { %v523_v12 = vadd.f32 1e-07, %v515_v48  ;;  %v1189_v45 = vmul.f32 0.6931472, %v1579_v59  ;;  %v1581_v7 = vpop.eup %1580  ;;  %1586 = vlog2.f32 %v2120_v5 }
  0xcf   :  { %v1185_v13 = vmul.f32 0.6931472, %v1581_v7  ;;  %v1583_v17 = vpop.eup %1582 }
  0xd0   :  { %v1193_v27 = vmul.f32 0.6931472, %v1583_v17  ;;  %1588 = vlog2.f32 %v523_v12 }
  0xd1   :  { %1590 = vlog2.f32 %v2177_v18 }
  0xd2   :  { %1032 = vrot.lane.b32.xlu0 %v520_v28, %s1669_s19  ;;  %1592 = vlog2.f32 %v2138_v50 }
  0xd3   :  { %v1585_v30 = vpop.eup %1584  ;;  %1594 = vlog2.f32 %v2189_v16 }
  0xd4   :  { %660 = vrot.lane.b32.xlu2 %v641_v23, %s1669_s19  ;;  %v629_v57 = vpop.permute.xlu2 %628  ;;  %v625_v23 = vpop.permute.xlu1 %624  ;;  %v931_v25 = vmul.f32 0.6931472, %v1585_v30  ;;  %1596 = vlog2.f32 %v2158_v3 }
  0xd5   :  { %1036 = vrot.lane.b32.xlu1 %v2220_v33, %s1669_s19  ;;  %v643_v26 = vmul.f32 %v625_v23, %v2166_v38  ;;  %v645_v31 = vmul.f32 %v629_v57, %v523_v12  ;;  %v1587_v35 = vpop.eup %1586  ;;  %1598 = vlog2.f32 %v2202_v15 }
  0xd6   :  { %v923_v42 = vmul.f32 0.6931472, %v1587_v35  ;;  %1600 = vlog2.f32 %v2166_v38 }
  0xd7   :  { %1602 = vlog2.f32 %v2211_v0 }
  0xda   :  { %770 = vrot.lane.b32.xlu0 %v442_v40, %s1669_s19  ;;  %v1589_v40 = vpop.eup %1588 }
  0xdb   :  { %v1591_v43 = vpop.eup %1590  ;;  %v1199_v19 = vmul.f32 0.6931472, %v1589_v40 }
  0xdc   :  { %583 = vrot.lane.b32.xlu2 %v562_v36, %s1669_s19  ;;  %v548_v51 = vpop.permute.xlu1 %547  ;;  %v1593_v18 = vpop.eup %1592 }
  0xdd   :  { %575 = vrot.lane.b32.xlu1 %v558_v46, %s1669_s19  ;;  %v564_v36 = vmul.f32 %v548_v51, %v2183_v62  ;;  %v1187_v46 = vmul.f32 0.6931472, %v1591_v43  ;;  %v925_v48 = vmul.f32 0.6931472, %v1593_v18 }
  0xe2   :  { %1038 = vrot.lane.b32.xlu0 %v523_v12, %s1669_s19 }
  0xe4   :  { %666 = vrot.lane.b32.xlu2 %v644_v37, %s1669_s19  ;;  %v1595_v37 = vpop.eup %1594 }
  0xe5   :  { %658 = vrot.lane.b32.xlu1 %v640_v55, %s1669_s19  ;;  %v1597_v63 = vpop.eup %1596  ;;  %v919_v12 = vmul.f32 0.6931472, %v1595_v37 }
  0xe6   :  { %v927_v16 = vmul.f32 0.6931472, %v1597_v63  ;;  %v1599_v14 = vpop.eup %1598 }
  0xe7   :  { %v1601_v3 = vpop.eup %1600 }
  0xe8   :  { %v1195_v38 = vmul.f32 0.6931472, %v1601_v3  ;;  %v1603_v15 = vpop.eup %1602 }
  0xe9   :  { %v929_v59 = vmul.f32 0.6931472, %v1603_v15 }
  0xea   :  { %577 = vrot.lane.b32.xlu0 %v559_v52, %s1669_s19 }
  0xec   :  { %944 = vrot.lane.b32.xlu2 %v921_v39, %s1669_s19  ;;  %v1191_v39 = vmul.f32 0.6931472, %v1599_v14 }
  0xed   :  { %654 = vrot.lane.b32.xlu1 %v638_v61, %s1669_s19 }
  0xf2   :  { %579 = vrot.lane.b32.xlu0 %v560_v4, %s1669_s19 }
  0xf4   :  { %1212 = vrot.lane.b32.xlu2 %v1189_v45, %s1669_s19 }
  0xf5   :  { %662 = vrot.lane.b32.xlu1 %v642_v10, %s1669_s19 }
  0xf6   :  { %v2246_v6 = vpop.permute.xlu2 %762 }
  0xf7   :  { %1604 = vrcp.f32 %v2246_v6  ;;  %v821_v35 = vand.u32 2147483647, %v2246_v6  ;;  %vm817_vm1 = vweird.f32 %v2246_v6 }
  0xf8   :  { %1606 = vlog2.f32 %v2183_v62 }
  0xf9   :  { %vm2343_vm4 = vcmp.eq.f32.partialorder %v821_v35, 8.507059e+37 }
  0xfa   :  { %581 = vrot.lane.b32.xlu0 %v561_v11, %s1669_s19 }
  0xfc   :  { %1208 = vrot.lane.b32.xlu2 %v1185_v13, %s1669_s19 }
  0xfd   :  { %585 = vrot.lane.b32.xlu1 %v563_v21, %s1669_s19  ;;  %v2293_v0 = vpop.eup %1604 }
  0xfe   :  { %v2252_v2 = vpop.permute.xlu2 %764  ;;  %v1607_v57 = vpop.eup %1606  ;;  %v813_v45 = vmul.f32 %v2293_v0, %v2246_v6  ;;  %vm818_vm2 = vweird.f32 %v2293_v0 }
  0xff   :  { %v933_v4 = vmul.f32 0.6931472, %v1607_v57  ;;  %v838_v51 = vand.u32 2147483648, %v2252_v2  ;;  %vm832_vm3 = vweird.f32 %v2252_v2  ;;  %vm2365_vm8 = vmor %vm817_vm1, %vm818_vm2 }
 0x100   :  { %v814_v13 = vsub.f32 1.0, %v813_v45 }
 0x101   :  { %v839_v63 = vor.u32 1.1754944e-38, %v838_v51 }
 0x102   :  { %664 = vrot.lane.b32.xlu0 %v643_v26, %s1669_s19  ;;  %v823_v26 = vand.u32 2147483648, %v2246_v6 }
 0x104   :  { %1216 = vrot.lane.b32.xlu2 %v1193_v27, %s1669_s19  ;;  %v824_v18 = vor.u32 1.1754944e-38, %v823_v26 }
 0x105   :  { %668 = vrot.lane.b32.xlu1 %v645_v31, %s1669_s19  ;;  %v815_v31 = vmul.f32 %v2293_v0, %v814_v13 }
 0x106   :  { %v2259_v28 = vpop.permute.xlu2 %766 }
 0x107   :  { %v853_v40 = vand.u32 2147483648, %v2259_v28  ;;  %vm847_vm6 = vweird.f32 %v2259_v28  ;;  %v851_v26 = vand.u32 2147483647, %v2259_v28 }
 0x109   :  { %v854_v3 = vor.u32 1.1754944e-38, %v853_v40  ;;  %vm852_vm1 = vcmp.eq.f32.partialorder %v851_v26, 8.507059e+37 }
 0x10a   :  { %587 = vrot.lane.b32.xlu0 %v564_v36, %s1669_s19 }
 0x10c   :  { %954 = vrot.lane.b32.xlu2 %v931_v25, %s1669_s19 }
 0x10d   :  { %946 = vrot.lane.b32.xlu1 %v923_v42, %s1669_s19 }
 0x10e   :  { %v2267_v5 = vpop.permute.xlu2 %1034 }
 0x10f   :  { %vm1128_vm0 = vweird.f32 %v2267_v5 }
 0x112   :  { %1210 = vrot.lane.b32.xlu0 %v1187_v46, %s1669_s19 }
 0x114   :  { %1222 = vrot.lane.b32.xlu2 %v1199_v19, %s1669_s19 }
 0x115   :  { %948 = vrot.lane.b32.xlu1 %v925_v48, %s1669_s19  ;;  %v836_v48 = vand.u32 2147483647, %v2252_v2 }
 0x116   :  { %v2274_v50 = vpop.permute.xlu2 %772 }
 0x117   :  { %3184 = vst [vmem:[#allocation10_spill] sm:$0xff] %v2274_v50  ;;  %vm2373_vm9 = vcmp.eq.f32.partialorder %v836_v48, 8.507059e+37  ;;  %v1132_v48 = vand.u32 2147483647, %v2267_v5 }
 0x118   :  { %v2284_v58 = vpop.permute.xlu0 %760 }
 0x119   :  { %1608 = vrcp.f32 %v2284_v58  ;;  %vm802_vm11 = vweird.f32 %v2284_v58  ;;  %v806_v6 = vand.u32 2147483647, %v2284_v58 }
 0x11a   :  { %942 = vrot.lane.b32.xlu0 %v919_v12, %s1669_s19  ;;  %1610 = vlog2.f32 %v2220_v33  ;;  %v816_v12 = vadd.f32 %v2293_v0, %v815_v31  ;;  %v898_v31 = vand.u32 2147483648, %v2274_v50 }
 0x11b   :  { %1612 = vrcp.f32 %v2252_v2  ;;  %vm807_vm14 = vcmp.eq.f32.partialorder %v806_v6, 8.507059e+37 }
 0x11c   :  { %1614 = vrcp.f32 %v2259_v28  ;;  %v820_v13 = vsel %vm2365_vm8, %v2293_v0, %v816_v12 }
 0x11d   :  { %950 = vrot.lane.b32.xlu1 %v927_v16, %s1669_s19  ;;  %1616 = vrcp.f32 %v2267_v5 }
 0x11e   :  { %v2281_v55 = vpop.permute.xlu2 %656 }
 0x11f   :  { %v2300_v62 = vpop.eup %1608  ;;  %v2358_v57 = vadd.f32 %v2281_v55, %v2123_v8 }
 0x120   :  { %v1611_v33 = vpop.eup %1610  ;;  %v798_v7 = vmul.f32 %v2300_v62, %v2284_v58  ;;  %vm803_vm7 = vweird.f32 %v2300_v62 }
 0x121   :  { %v2305_v44 = vpop.eup %1612  ;;  %v1197_v27 = vmul.f32 0.6931472, %v1611_v33  ;;  %vm2384_vm12 = vmor %vm802_vm11, %vm803_vm7  ;;  %v1276_v26 = vsub.f32 %v2358_v57, %v2123_v8 }
 0x122   :  { %1214 = vrot.lane.b32.xlu0 %v1191_v39, %s1669_s19  ;;  %v2310_v10 = vpop.eup %1614  ;;  %v828_v11 = vmul.f32 %v2305_v44, %v2252_v2  ;;  %v799_v23 = vsub.f32 1.0, %v798_v7  ;;  %vm833_vm5 = vweird.f32 %v2305_v44 }
 0x123   :  { %v843_v21 = vmul.f32 %v2310_v10, %v2259_v28  ;;  %v2321_v30 = vpop.eup %1616  ;;  %vm848_vm10 = vweird.f32 %v2310_v10  ;;  %vm2409_vm13 = vmor %vm832_vm3, %vm833_vm5  ;;  %vm2456_vm3 = vcmp.eq.f32.partialorder %v1132_v48, 8.507059e+37 }
 0x124   :  { %v829_v36 = vsub.f32 1.0, %v828_v11  ;;  %v800_v43 = vmul.f32 %v2300_v62, %v799_v23  ;;  %v1124_v46 = vmul.f32 %v2321_v30, %v2267_v5  ;;  %v1134_v11 = vand.u32 2147483648, %v2267_v5  ;;  %vm2425_vm15 = vmor %vm847_vm6, %vm848_vm10 }
 0x125   :  { %1218 = vrot.lane.b32.xlu1 %v1195_v38, %s1669_s19  ;;  %v844_v42 = vsub.f32 1.0, %v843_v21  ;;  %vm1129_vm2 = vweird.f32 %v2321_v30 }
 0x126   :  { %v2298_v61 = vpop.permute.xlu2 %573  ;;  %v830_v14 = vmul.f32 %v2305_v44, %v829_v36  ;;  %v1125_v33 = vsub.f32 1.0, %v1124_v46 }
 0x127   :  { %v2296_v52 = vpop.permute.xlu1 %1026  ;;  %v845_v15 = vmul.f32 %v2310_v10, %v844_v42 }
 0x128   :  { %1618 = vrcp.f32 %v2296_v52  ;;  %v1126_v40 = vmul.f32 %v2321_v30, %v1125_v33  ;;  %v1074_v21 = vand.u32 2147483648, %v2296_v52  ;;  %vm1068_vm6 = vweird.f32 %v2296_v52 }
 0x129   :  { %1620 = vrcp.f32 %v2274_v50  ;;  %v846_v36 = vadd.f32 %v2310_v10, %v845_v15 }
 0x12a   :  { %952 = vrot.lane.b32.xlu0 %v929_v59, %s1669_s19  ;;  %v801_v59 = vadd.f32 %v2300_v62, %v800_v43  ;;  %v1075_v48 = vor.u32 1.1754944e-38, %v1074_v21 }
 0x12b   :  { %v850_v28 = vsel %vm2425_vm15, %v2310_v10, %v846_v36 }
 0x12c   :  { %v805_v35 = vsel %vm2384_vm12, %v2300_v62, %v801_v59  ;;  %v2416_v62 = vsel %vm2343_vm4, %v824_v18, %v820_v13  ;;  %v1135_v59 = vor.u32 1.1754944e-38, %v1134_v11  ;;  %vm2473_vm4 = vmor %vm1128_vm0, %vm1129_vm2 }
 0x12d   :  { %956 = vrot.lane.b32.xlu1 %v933_v4, %s1669_s19  ;;  %v808_v4 = vand.u32 2147483648, %v2284_v58  ;;  %v1350_v58 = vsub.f32 %v2358_v57, %v2075_v41 }
 0x12e   :  { %v2327_v25 = vpop.permute.xlu2 %660  ;;  %v2339_v37 = vpop.eup %1618 }
 0x12f   :  { %v2315_v17 = vpop.permute.xlu1 %758  ;;  %v2352_v38 = vpop.eup %1620  ;;  %v1064_v7 = vmul.f32 %v2339_v37, %v2296_v52  ;;  %v809_v42 = vor.u32 1.1754944e-38, %v808_v4  ;;  %v2443_v4 = vor.u32 1.1754944e-38, %v898_v31  ;;  %vm1069_vm5 = vweird.f32 %v2339_v37 }
 0x130   :  { %3187 = vst [vmem:[#allocation11_spill] sm:$0xff] %v2352_v38  ;;  %1622 = vrcp.f32 %v2315_v17  ;;  %v888_v23 = vmul.f32 %v2352_v38, %v2274_v50  ;;  %vm2504_vm7 = vmor %vm1068_vm6, %vm1069_vm5 }
 0x131   :  { %v1065_v43 = vsub.f32 1.0, %v1064_v7  ;;  %v2432_v16 = vsel %vm807_vm14, %v809_v42, %v805_v35  ;;  %3198 = vst [vmem:[#allocation12_spill] sm:$0xff] %v2443_v4  ;;  %v1127_v7 = vadd.f32 %v2321_v30, %v1126_v40  ;;  %v1072_v35 = vand.u32 2147483647, %v2296_v52 }
 0x132   :  { %1220 = vrot.lane.b32.xlu0 %v1197_v27, %s1669_s19  ;;  %v831_v27 = vadd.f32 %v2305_v44, %v830_v14  ;;  %v889_v14 = vsub.f32 1.0, %v888_v23  ;;  %v1358_v45 = vmul.f32 %v1350_v58, %v2432_v16 }
 0x133   :  { %v1066_v33 = vmul.f32 %v2339_v37, %v1065_v43  ;;  %v1131_v36 = vsel %vm2473_vm4, %v2321_v30, %v1127_v7  ;;  %vm2510_vm8 = vcmp.eq.f32.partialorder %v1072_v35, 8.507059e+37 }
 0x134   :  { %v2333_v19 = vpop.permute.xlu0 %1028  ;;  %v835_v18 = vsel %vm2409_vm13, %v2305_v44, %v831_v27  ;;  %v2450_v44 = vadd.f32 %v2298_v61, %v2085_v1  ;;  %v2464_v23 = vmul.f32 %v2352_v38, %v889_v14  ;;  %v2467_v27 = vsel %vm852_vm1, %v854_v3, %v850_v28 }
 0x135   :  { %1624 = vrcp.f32 %v2333_v19  ;;  %v2454_v13 = vsel %vm2373_vm9, %v839_v63, %v835_v18  ;;  %3202 = vst [vmem:[#allocation14_spill] sm:$0xff] %v2467_v27  ;;  %v1366_v58 = vmul.f32 %v1358_v45, %v1358_v45  ;;  %v2486_v3 = vadd.f32 %v2327_v25, %v2117_v53 }
 0x136   :  { %v2397_v0 = vpop.permute.xlu2 %583  ;;  %v2419_v12 = vpop.eup %1622  ;;  %3201 = vst [vmem:[#allocation13_spill] sm:$0xff] %v2464_v23  ;;  %v1067_v5 = vadd.f32 %v2339_v37, %v1066_v33  ;;  %v793_v14 = vand.u32 2147483648, %v2315_v17  ;;  %v791_v28 = vand.u32 2147483647, %v2315_v17  ;;  %v2517_v33 = vsel %vm2456_vm3, %v1135_v59, %v1131_v36 }
 0x137   :  { %v2350_v39 = vpop.permute.xlu1 %1030  ;;  %v783_v6 = vmul.f32 %v2419_v12, %v2315_v17  ;;  %v2508_v18 = vmul.f32 -0.5, %v1366_v58  ;;  %3209 = vst [vmem:[#allocation15_spill] sm:$0xff] %v2517_v33  ;;  %v1352_v63 = vsub.f32 %v2486_v3, %v1979_v56  ;;  %vm787_vm9 = vweird.f32 %v2315_v17 }
 0x138   :  { %v1071_v58 = vsel %vm2504_vm7, %v2339_v37, %v1067_v5  ;;  %v2534_v10 = vadd.f32 %v2397_v0, %v2134_v32  ;;  %v794_v55 = vor.u32 1.1754944e-38, %v793_v14  ;;  %v1104_v5 = vand.u32 2147483648, %v2350_v39 }
 0x139   :  { %v784_v40 = vsub.f32 1.0, %v783_v6  ;;  %v1089_v6 = vand.u32 2147483648, %v2333_v19  ;;  %v2545_v52 = vsel %vm2510_vm8, %v1075_v48, %v1071_v58  ;;  %vm2547_vm10 = vcmp.eq.f32.partialorder %v791_v28, 8.507059e+37 }
 0x13a   :  { %vm1083_vm11 = vweird.f32 %v2333_v19  ;;  %v1360_v14 = vmul.f32 %v1352_v63, %v2454_v13  ;;  %vm788_vm12 = vweird.f32 %v2419_v12  ;;  %v1284_v42 = vmul.f32 %v1276_v26, %v2545_v52 }
 0x13b   :  { %v2460_v11 = vpop.eup %1624  ;;  %v785_v35 = vmul.f32 %v2419_v12, %v784_v40  ;;  %v2567_v50 = vor.u32 1.1754944e-38, %v1104_v5  ;;  %v1102_v48 = vand.u32 2147483647, %v2350_v39  ;;  %vm2580_vm15 = vmor %vm787_vm9, %vm788_vm12  ;;  %vm1098_vm2 = vweird.f32 %v2350_v39 }
 0x13c   :  { %v2395_v51 = vpop.permute.xlu0 %1024  ;;  %v1079_v25 = vmul.f32 %v2460_v11, %v2333_v19  ;;  %vm1084_vm13 = vweird.f32 %v2460_v11  ;;  %v1292_v38 = vmul.f32 %v1284_v42, %v1284_v42  ;;  %vm695_vm12 = vcmask 1041409  }
 0x13d   :  { %1626 = vrcp.f32 %v2395_v51  ;;  %v786_v45 = vadd.f32 %v2419_v12, %v785_v35  ;;  %v1059_v63 = vand.u32 2147483648, %v2395_v51  ;;  %vm1053_vm14 = vweird.f32 %v2395_v51  ;;  %vm2613_vm4 = vmor %vm1083_vm11, %vm1084_vm13 }
 0x13e   :  { %1628 = vrcp.f32 %v2350_v39  ;;  %v667_v46 = vpop.permute.xlu2 %666  ;;  %v1080_v36 = vsub.f32 1.0, %v1079_v25  ;;  %v2552_v25 = vor.u32 1.1754944e-38, %v1089_v6  ;;  %v1057_v17 = vand.u32 2147483647, %v2395_v51 }
 0x13f   :  { %v2430_v15 = vpop.permute.xlu1 %768  ;;  %v2593_v6 = vadd.f32 %v667_v46, %v2152_v54  ;;  %v790_v23 = vsel %vm2580_vm15, %v2419_v12, %v786_v45  ;;  %v1060_v34 = vor.u32 1.1754944e-38, %v1059_v63  ;;  %vm2653_vm6 = vcmp.eq.f32.partialorder %v1102_v48, 8.507059e+37 }
 0x140   :  { %1630 = vrcp.f32 %v2430_v15  ;;  %v1081_v28 = vmul.f32 %v2460_v11, %v1080_v36  ;;  %v1368_v36 = vmul.f32 %v1360_v14, %v1360_v14  ;;  %v868_v5 = vand.u32 2147483648, %v2430_v15 }
 0x141   :  { %v2624_v45 = vsel %vm2547_vm10, %v794_v55, %v790_v23  ;;  %vm1058_vm7 = vcmp.eq.f32.partialorder %v1057_v17, 8.507059e+37  ;;  %vm862_vm11 = vweird.f32 %v2430_v15 }
 0x143   :  { %v2469_v61 = vpop.eup %1626 }
 0x144   :  { %v2480_v31 = vpop.permute.xlu0 %1032  ;;  %v1049_v2 = vmul.f32 %v2469_v61, %v2395_v51  ;;  %v2519_v7 = vpop.eup %1628  ;;  %vm1054_vm1 = vweird.f32 %v2469_v61 }
 0x145   :  { %1632 = vrcp.f32 %v2480_v31  ;;  %v1094_v37 = vmul.f32 %v2519_v7, %v2350_v39  ;;  %vm1099_vm3 = vweird.f32 %v2519_v7  ;;  %vm2630_vm5 = vmor %vm1053_vm14, %vm1054_vm1  ;;  %v1119_v55 = vand.u32 2147483648, %v2480_v31 }
 0x146   :  { %v1050_v21 = vsub.f32 1.0, %v1049_v2  ;;  %v1087_v2 = vand.u32 2147483647, %v2333_v19  ;;  %v2569_v59 = vpop.permute.xlu2 %944  ;;  %v2572_v35 = vpop.eup %1630  ;;  %v1117_v19 = vand.u32 2147483647, %v2480_v31  ;;  %vm1113_vm8 = vweird.f32 %v2480_v31  ;;  %vm2694_vm10 = vmor %vm1098_vm2, %vm1099_vm3 }
 0x147   :  { %v2502_v30 = vpop.permute.xlu1 %1036  ;;  %v1095_v4 = vsub.f32 1.0, %v1094_v37  ;;  %v1382_v26 = vsub.f32 %v2508_v18, %v2569_v59  ;;  %v2634_v18 = vor.u32 1.1754944e-38, %v868_v5  ;;  %vm863_vm9 = vweird.f32 %v2572_v35 }
 0x148   :  { %v1051_v58 = vmul.f32 %v2469_v61, %v1050_v21  ;;  %vm2585_vm0 = vcmp.eq.f32.partialorder %v1087_v2, 8.507059e+37  ;;  %v1082_v2 = vadd.f32 %v2460_v11, %v1081_v28  ;;  %v1149_v0 = vand.u32 2147483648, %v2502_v30 }
 0x149   :  { %v1096_v24 = vmul.f32 %v2519_v7, %v1095_v4  ;;  %v858_v4 = vmul.f32 %v2572_v35, %v2430_v15  ;;  %v2658_v54 = vadd.f32 -0.9189385, %v1382_v26  ;;  %v3229_v39 = vsub.f32 %v2450_v44, %v2130_v9 }
 0x14a   :  { %v1052_v14 = vadd.f32 %v2469_v61, %v1051_v58  ;;  %v1086_v5 = vsel %vm2613_vm4, %v2460_v11, %v1082_v2  ;;  %v2664_v2 = vmul.f32 -0.5, %v1292_v38  ;;  %v2682_v38 = vor.u32 1.1754944e-38, %v1119_v55  ;;  %vm2784_vm4 = vmor %vm862_vm11, %vm863_vm9 }
 0x14b   :  { %v2589_v37 = vpop.eup %1632  ;;  %3222 = vst [vmem:[#allocation16_spill] sm:$0xff] %v2658_v54  ;;  %v859_v11 = vsub.f32 1.0, %v858_v4  ;;  %v2698_v21 = vor.u32 1.1754944e-38, %v1149_v0  ;;  %vm2721_vm14 = vcmp.eq.f32.partialorder %v1117_v19, 8.507059e+37 }
 0x14c   :  { %v2541_v40 = vpop.permute.xlu0 %770  ;;  %v1109_v42 = vmul.f32 %v2589_v37, %v2480_v31  ;;  %v1056_v28 = vsel %vm2630_vm5, %v2469_v61, %v1052_v14  ;;  %3224 = vst [vmem:[#allocation17_spill] sm:$0xff] %v2664_v2  ;;  %v1097_v61 = vadd.f32 %v2519_v7, %v1096_v24  ;;  %v2672_v14 = vsel %vm2585_vm0, %v2552_v25, %v1086_v5 }
 0x14d   :  { %1634 = vrcp.f32 %v2541_v40  ;;  %v2676_v26 = vsel %vm1058_vm7, %v1060_v34, %v1056_v28  ;;  %3227 = vst [vmem:[#allocation18_spill] sm:$0xff] %v2698_v21  ;;  %v2701_v5 = vmul.f32 -0.5, %v1368_v36  ;;  %vm1114_vm13 = vweird.f32 %v2589_v37 }
 0x14e   :  { %1636 = vrcp.f32 %v2502_v30  ;;  %v1110_v12 = vsub.f32 1.0, %v1109_v42  ;;  %v2674_v17 = vpop.permute.xlu2 %1212  ;;  %v1101_v0 = vsel %vm2694_vm10, %v2519_v7, %v1097_v61  ;;  %v3232_v7 = vsub.f32 %v2534_v10, %v2060_v22  ;;  %vm2756_vm0 = vmor %vm1113_vm8, %vm1114_vm13 }
 0x14f   :  { %v576_v43 = vpop.permute.xlu1 %575  ;;  %3228 = vst [vmem:[#allocation19_spill] sm:$0xff] %v2701_v5  ;;  %vm877_vm15 = vweird.f32 %v2541_v40  ;;  %vm701_vm7 = vcmask 1043459   ;;  %vm704_vm10 = vcmask 1044484   ;;  %vm707_vm13 = vcmask 1045509  }
 0x150   :  { %v2645_v51 = vadd.f32 %v576_v43, %v2075_v41  ;;  %v3223_v43 = vsub.f32 %v2450_v44, %v2085_v1  ;;  %v1137_v61 = vmul.f32 %v2517_v33, %v3232_v7 }
 0x152   :  { %v796_v27 = vmul.f32 %v2624_v45, %v3223_v43  ;;  %v743_v24 = vsub.f32 %v2645_v51, %v2075_v41  ;;  %v1111_v41 = vmul.f32 %v2589_v37, %v1110_v12  ;;  %v1062_v43 = vmul.f32 %v2676_v26, %v3229_v39 }
 0x153   :  { %v2641_v23 = vpop.eup %1634  ;;  %v866_v12 = vand.u32 2147483647, %v2430_v15  ;;  %v1009_v19 = vsub.f32 %v2645_v51, %v2123_v8 }
 0x154   :  { %v2605_v46 = vpop.permute.xlu0 %1038  ;;  %v873_v48 = vmul.f32 %v2641_v23, %v2541_v40  ;;  %v2679_v42 = vpop.eup %1636  ;;  %v902_v55 = vmul.f32 %v796_v27, %v796_v27  ;;  %v883_v27 = vand.u32 2147483648, %v2541_v40  ;;  %v811_v21 = vmul.f32 %v2432_v16, %v743_v24 }
 0x155   :  { %v1139_v36 = vmul.f32 %v2679_v42, %v2502_v30  ;;  %v2736_v16 = vsel %vm2653_vm6, %v2567_v50, %v1101_v0  ;;  %1638 = vrcp.f32 %v2605_v46  ;;  %v1168_v24 = vmul.f32 %v1062_v43, %v1062_v43 }
 0x156   :  { %v874_v28 = vsub.f32 1.0, %v873_v48  ;;  %v881_v48 = vand.u32 2147483647, %v2541_v40  ;;  %v2731_v34 = vmul.f32 -0.5, %v902_v55  ;;  %v1112_v5 = vadd.f32 %v2589_v37, %v1111_v41  ;;  %v2762_v43 = vpop.permute.xlu2 %1208 }
 0x157   :  { %v659_v63 = vpop.permute.xlu1 %658  ;;  %v884_v33 = vor.u32 1.1754944e-38, %v883_v27  ;;  %v1140_v2 = vsub.f32 1.0, %v1139_v36  ;;  %v3234_v50 = vsub.f32 %v2486_v3, %v2117_v53  ;;  %vm2768_vm2 = vcmp.eq.f32.partialorder %v866_v12, 8.507059e+37 }
 0x158   :  { %v2688_v25 = vadd.f32 %v659_v63, %v2156_v60  ;;  %v860_v63 = vmul.f32 %v2572_v35, %v859_v11  ;;  %3233 = vst [vmem:[#allocation20_spill] sm:$0xff] %v2731_v34  ;;  %v875_v7 = vmul.f32 %v2641_v23, %v874_v28  ;;  %v903_v34 = vmul.f32 %v811_v21, %v811_v21 }
 0x159   :  { %v1286_v0 = vmul.f32 %v3234_v50, %v2736_v16  ;;  %v694_v21 = vrot.slane %v2645_v51, 7  ;;  %vm2764_vm1 = vcmp.eq.f32.partialorder %v881_v48, 8.507059e+37  ;;  %v1176_v36 = vmul.f32 -0.5, %v1168_v24 }
 0x15a   :  { %v1277_v11 = vsub.f32 %v2688_v25, %v2156_v60  ;;  %v861_v8 = vadd.f32 %v2572_v35, %v860_v63  ;;  %v1077_v51 = vmul.f32 %v2545_v52, %v1009_v19  ;;  %vm878_vm3 = vweird.f32 %v2641_v23 }
 0x15b   :  { %v911_v52 = vmul.f32 -0.5, %v903_v34  ;;  %v1294_v50 = vmul.f32 %v1286_v0, %v1286_v0  ;;  %vm2813_vm5 = vmor %vm877_vm15, %vm878_vm3  ;;  %vm698_vm6 = vcmask 1042434   ;;  %v1162_v54 = vand.u32 2147483647, %v2605_v46 }
 0x15c   :  { %v578_v4 = vpop.permute.xlu0 %577  ;;  %v1285_v58 = vmul.f32 %v1277_v11, %v2672_v14  ;;  %v1116_v11 = vsel %vm2756_vm0, %v2589_v37, %v1112_v5  ;;  %v876_v37 = vadd.f32 %v2641_v23, %v875_v7  ;;  %v2794_v5 = vpop.eup %1638  ;;  %v865_v15 = vsel %vm2784_vm4, %v2572_v35, %v861_v8 }
 0x15d   :  { %v2744_v55 = vadd.f32 %v578_v4, %v2033_v49  ;;  %v1164_v4 = vand.u32 2147483648, %v2605_v46  ;;  %v1351_v35 = vsub.f32 %v2688_v25, %v2033_v49  ;;  %v1169_v7 = vmul.f32 %v1077_v51, %v1077_v51 }
 0x15e   :  { %v1293_v19 = vmul.f32 %v1285_v58, %v1285_v58  ;;  %v880_v40 = vsel %vm2813_vm5, %v2641_v23, %v876_v37  ;;  %v2831_v0 = vsel %vm2768_vm2, %v2634_v18, %v865_v15  ;;  %v967_v8 = vsub.f32 %v911_v52, %v2569_v59  ;;  %v2856_v37 = vpop.permute.xlu2 %1216 }
 0x15f   :  { %v655_v39 = vpop.permute.xlu1 %654  ;;  %v1010_v48 = vsub.f32 %v2744_v55, %v2156_v60  ;;  %v2799_v28 = vor.u32 1.1754944e-38, %v1164_v4  ;;  %v2807_v60 = vsel %vm2721_vm14, %v2682_v38, %v1116_v11  ;;  %v1154_v38 = vmul.f32 %v2794_v5, %v2605_v46 }
 0x160   :  { %v2773_v31 = vadd.f32 %v655_v39, %v2130_v9  ;;  %v2789_v39 = vmul.f32 %v2679_v42, %v1140_v2  ;;  %v696_v2 = vsel %vm695_vm12, %v694_v21, %v2450_v44  ;;  %v2837_v21 = vmul.f32 -0.5, %v1294_v50 }
 0x161   :  { %v1092_v58 = vmul.f32 %v2672_v14, %v1010_v48  ;;  %v744_v14 = vsub.f32 %v2744_v55, %v2033_v49  ;;  %v2844_v63 = vmul.f32 %v1137_v61, %v1137_v61  ;;  %v2849_v59 = vsel %vm2764_vm1, %v884_v33, %v880_v40 }
 0x162   :  { %3243 = vst [vmem:[#allocation21_spill] sm:$0xff] %v2789_v39  ;;  %v1232_v39 = vsub.f32 %v1176_v36, %v2762_v43  ;;  %v1275_v44 = vsub.f32 %v2773_v31, %v2130_v9  ;;  %v1301_v9 = vmul.f32 -0.5, %v1293_v19  ;;  %v728_v36 = vrot.slane %v2688_v25, 6 }
 0x163   :  { %v1359_v51 = vmul.f32 %v1351_v35, %v2416_v62  ;;  %v3246_v12 = vsub.f32 %v2534_v10, %v2134_v32  ;;  %v1155_v48 = vsub.f32 1.0, %v1154_v38  ;;  %v1170_v25 = vmul.f32 %v1092_v58, %v1092_v58 }
 0x164   :  { %v580_v41 = vpop.permute.xlu0 %579  ;;  %v2842_v11 = vadd.f32 -0.9189385, %v1232_v39  ;;  %v1283_v18 = vmul.f32 %v1275_v44, %v2676_v26  ;;  %v2858_v39 = vmul.f32 -0.5, %v1169_v7  ;;  %v3247_v26 = vsub.f32 %v2593_v6, %v1944_v29 }
 0x165   :  { %v871_v49 = vmul.f32 %v2831_v0, %v3246_v12  ;;  %v2864_v33 = vadd.f32 -0.9189385, %v967_v8  ;;  %v3248_v27 = vrot.slane %v2358_v57, 7  ;;  %v1309_v19 = vsub.f32 %v1301_v9, %v2674_v17 }
 0x166   :  { %v1363_v61 = vmul.f32 %v3247_v26, %v2849_v59  ;;  %vm1158_vm8 = vweird.f32 %v2605_v46  ;;  %vm1159_vm9 = vweird.f32 %v2794_v5  ;;  %v697_v15 = vrot.slane %v2744_v55, 6 }
 0x167   :  { %v663_v24 = vpop.permute.xlu1 %662  ;;  %v727_v52 = vsel %vm695_vm12, %v3248_v27, %v2773_v31  ;;  %v1349_v34 = vsub.f32 %v2773_v31, %v2085_v1  ;;  %v826_v35 = vmul.f32 %v2416_v62, %v744_v14  ;;  %v600_v57 = vadd.f32 %v580_v41, %v1979_v56  ;;  %vm2923_vm15 = vmor %vm1158_vm8, %vm1159_vm9 }
 0x168   :  { %v2835_v4 = vadd.f32 %v663_v24, %v2142_v47  ;;  %v1291_v44 = vmul.f32 %v1283_v18, %v1283_v18  ;;  %v1367_v7 = vmul.f32 %v1359_v51, %v1359_v51  ;;  %v2880_v38 = vmul.f32 %v871_v49, %v871_v49 }
 0x169   :  { %v1156_v58 = vmul.f32 %v2794_v5, %v1155_v48  ;;  %v729_v40 = vsel %vm698_vm6, %v728_v36, %v727_v52  ;;  %v1178_v8 = vmul.f32 -0.5, %v1170_v25  ;;  %v1371_v9 = vmul.f32 %v1363_v61, %v1363_v61 }
 0x16a   :  { %v1279_v24 = vsub.f32 %v2835_v4, %v2142_v47  ;;  %v990_v12 = vrot.slane %v2864_v33, 7  ;;  %v2886_v1 = vadd.f32 -0.9189385, %v1309_v19  ;;  %v699_v41 = vsel %vm698_vm6, %v697_v15, %v696_v2  ;;  %v2917_v15 = vpop.permute.xlu2 %954 }
 0x16b   :  { %v1234_v31 = vsub.f32 %v1178_v8, %v2674_v17  ;;  %v904_v18 = vmul.f32 %v826_v35, %v826_v35  ;;  %v1357_v51 = vmul.f32 %v1349_v34, %v2624_v45  ;;  %vm2892_vm11 = vcmp.eq.f32.partialorder %v1162_v54, 8.507059e+37 }
 0x16c   :  { %v582_v23 = vpop.permute.xlu0 %581  ;;  %v1287_v62 = vmul.f32 %v1279_v24, %v2807_v60  ;;  %v700_v49 = vrot.slane %v600_v57, 5  ;;  %v3251_v48 = vrot.slane %v2486_v3, 5  ;;  %v1299_v25 = vmul.f32 -0.5, %v1291_v44 }
 0x16d   :  { %v601_v55 = vadd.f32 %v582_v23, %v2005_v20  ;;  %v2899_v26 = vmul.f32 -0.5, %v1367_v7  ;;  %v745_v2 = vsub.f32 %v600_v57, %v1979_v56  ;;  %v1011_v17 = vsub.f32 %v600_v57, %v2117_v53 }
 0x16e   :  { %v731_v23 = vsel %vm701_vm7, %v3251_v48, %v729_v40  ;;  %v2903_v61 = vmul.f32 -0.5, %v1371_v9  ;;  %v1157_v45 = vadd.f32 %v2794_v5, %v1156_v58  ;;  %vm1144_vm14 = vweird.f32 %v2679_v42  ;;  %v3254_v9 = vld [vmem:[#allocation14_spill] sm:$0xff] }
 0x16f   :  { %v586_v50 = vpop.permute.xlu1 %585  ;;  %v1012_v54 = vsub.f32 %v601_v55, %v2142_v47  ;;  %v1333_v3 = vrot.slane %v2886_v1, 6  ;;  %v1353_v27 = vsub.f32 %v2835_v4, %v2005_v20  ;;  %v1295_v52 = vmul.f32 %v1287_v62, %v1287_v62 }
 0x170   :  { %v746_v56 = vsub.f32 %v601_v55, %v2005_v20  ;;  %v2912_v24 = vadd.f32 -0.9189385, %v1234_v31  ;;  %v2915_v53 = vadd.f32 %v586_v50, %v1944_v29  ;;  %v1365_v34 = vmul.f32 %v1357_v51, %v1357_v51 }
 0x171   :  { %vm1143_vm0 = vweird.f32 %v2502_v30  ;;  %v702_v20 = vsel %vm701_vm7, %v700_v49, %v699_v41  ;;  %v732_v35 = vrot.slane %v2835_v4, 4  ;;  %v1307_v50 = vsub.f32 %v1299_v25, %v2762_v43 }
 0x172   :  { %vm710_vm1 = vcmask 1046534   ;;  %v2931_v57 = vmul.f32 -0.5, %v904_v18  ;;  %v703_v44 = vrot.slane %v601_v55, 4  ;;  %v1161_v46 = vsel %vm2923_vm15, %v2794_v5, %v1157_v45  ;;  %vm2987_vm3 = vmor %vm1143_vm0, %vm1144_vm14 }
 0x173   :  { %v841_v7 = vmul.f32 %v2454_v13, %v745_v2  ;;  %v1107_v58 = vmul.f32 %v2736_v16, %v1011_v17  ;;  %v1122_v40 = vmul.f32 %v2807_v60, %v1012_v54  ;;  %v1303_v8 = vmul.f32 -0.5, %v1295_v52  ;;  %v3256_v54 = vld [vmem:[#allocation7_spill] sm:$0xff] }
 0x174   :  { %v665_v14 = vpop.permute.xlu0 %664  ;;  %v1361_v43 = vmul.f32 %v1353_v27, %v3254_v9  ;;  %v1258_v62 = vrot.slane %v2912_v24, 6  ;;  %v748_v55 = vsub.f32 %v2915_v53, %v1944_v29  ;;  %v2945_v31 = vmul.f32 -0.5, %v1365_v34 }
 0x175   :  { %v856_v13 = vmul.f32 %v3254_v9, %v746_v56  ;;  %v2949_v16 = vadd.f32 %v665_v14, %v2060_v22  ;;  %v733_v5 = vsel %vm704_vm10, %v732_v35, %v731_v23  ;;  %v2952_v60 = vadd.f32 -0.9189385, %v1307_v50  ;;  %v3255_v23 = vld [vmem:[#allocation21_spill] sm:$0xff] }
 0x176   :  { %vm713_vm2 = vcmask 1047559   ;;  %v2957_v18 = vsel %vm2892_vm11, %v2799_v28, %v1161_v46  ;;  %v705_v51 = vsel %vm704_vm10, %v703_v44, %v702_v20  ;;  %v709_v29 = vrot.slane %v2915_v53, 2  ;;  %v3258_v20 = vld [vmem:[#allocation9_spill] sm:$0xff]  ;;  %v3261_v44 = vld [vmem:[#allocation8_spill] sm:$0xff] }
 0x177   :  { %v669_v19 = vpop.permute.xlu1 %668  ;;  %v905_v49 = vmul.f32 %v841_v7, %v841_v7  ;;  %v1171_v48 = vmul.f32 %v1107_v58, %v1107_v58  ;;  %v1172_v25 = vmul.f32 %v1122_v40, %v1122_v40  ;;  %v1311_v14 = vsub.f32 %v1303_v8, %v2856_v37 }
 0x178   :  { %v1369_v17 = vmul.f32 %v1361_v43, %v1361_v43  ;;  %v2964_v45 = vadd.f32 %v2679_v42, %v3255_v23  ;;  %v886_v28 = vmul.f32 %v2849_v59, %v748_v55  ;;  %v906_v36 = vmul.f32 %v856_v13, %v856_v13  ;;  %v3262_v13 = vld [vmem:[#allocation11_spill] sm:$0xff]  ;;  %v3264_v23 = vld [vmem:[#allocation13_spill] sm:$0xff] }
 0x179   :  { %v2971_v52 = vmul.f32 -0.5, %v2880_v38  ;;  %v734_v56 = vrot.slane %v2949_v16, 3  ;;  %v3257_v34 = vrot.slane %v2534_v10, 3  ;;  %v2978_v35 = vadd.f32 %v669_v19, %v3258_v20 }
 0x17a   :  { %v2981_v50 = vmul.f32 -0.5, %v2844_v63  ;;  %v913_v46 = vmul.f32 -0.5, %v905_v49  ;;  %v2994_v7 = vmul.f32 -0.5, %v1171_v48  ;;  %v1180_v19 = vmul.f32 -0.5, %v1172_v25  ;;  %v3263_v49 = vld [vmem:[#allocation17_spill] sm:$0xff] }
 0x17b   :  { %v708_v47 = vsel %vm707_vm13, %v3257_v34, %v705_v51  ;;  %v2996_v58 = vadd.f32 -0.9189385, %v1311_v14  ;;  %v2998_v63 = vmul.f32 -0.5, %v1369_v17  ;;  %v908_v43 = vmul.f32 %v886_v28, %v886_v28 }
 0x17c   :  { %v588_v41 = vpop.permute.xlu0 %587  ;;  %v711_v38 = vsel %vm710_vm1, %v709_v29, %v708_v47  ;;  %v1147_v55 = vand.u32 2147483647, %v2502_v30  ;;  %vm893_vm4 = vweird.f32 %v3262_v13  ;;  %v735_v51 = vsel %vm707_vm13, %v734_v56, %v733_v5 }
 0x17d   :  { %v2967_v27 = vadd.f32 %v588_v41, %v3256_v54  ;;  %v3005_v41 = vmul.f32 -0.5, %v906_v36  ;;  %v738_v25 = vrot.slane %v2978_v35, 1  ;;  %v3017_v28 = vadd.f32 %v3262_v13, %v3264_v23  ;;  %v3265_v36 = vld [vmem:[#allocation10_spill] sm:$0xff] }
 0x17e   :  { %v896_v30 = vand.u32 2147483647, %v3265_v36  ;;  %vm892_vm5 = vweird.f32 %v3265_v36  ;;  %v1280_v5 = vsub.f32 %v2949_v16, %v2060_v22  ;;  %v1236_v4 = vsub.f32 %v1180_v19, %v2856_v37 }
 0x17f   :  { %v947_v2 = vpop.permute.xlu1 %946  ;;  %v712_v8 = vrot.slane %v2967_v27, 1  ;;  %vm716_vm8 = vcmask 523264   ;;  %v3041_v37 = vmul.f32 -0.5, %v908_v43  ;;  %v3269_v43 = vld [vmem:[#allocation20_spill] sm:$0xff]  ;;  %vm3062_vm9 = vcmp.eq.f32.partialorder %v1147_v55, 8.507059e+37  ;;  %vm3073_vm11 = vmor %vm892_vm5, %vm893_vm4 }
 0x180   :  { %v968_v14 = vsub.f32 %v2931_v57, %v947_v2  ;;  %v1383_v17 = vsub.f32 %v2899_v26, %v947_v2  ;;  %v3266_v26 = vrot.slane %v2593_v6, 2  ;;  %v1282_v1 = vsub.f32 %v2978_v35, %v3258_v20 }
 0x181   :  { %v714_v57 = vsel %vm713_vm2, %v712_v8, %v711_v38  ;;  %v1356_v55 = vsub.f32 %v2978_v35, %v3256_v54  ;;  %v895_v35 = vsel %vm3073_vm11, %v3262_v13, %v3017_v28  ;;  %v1015_v33 = vsub.f32 %v2967_v27, %v3258_v20  ;;  %v3277_v20 = vld [vmem:[#allocation18_spill] sm:$0xff] }
 0x182   :  { %v737_v2 = vsel %vm710_vm1, %v3266_v26, %v735_v51  ;;  %717 = vst.msk [vmem:[%s3164_s8] sm:$0xff] %vm716_vm8, %v714_v57  ;;  %v749_v26 = vsub.f32 %v2967_v27, %v3256_v54  ;;  %v3276_v27 = vsel %vm2987_vm3, %v2679_v42, %v2964_v45  ;;  %v972_v42 = vsub.f32 %v3041_v37, %v2917_v15  ;;  %s1671_s8 = smov [#allocation4]  }
 0x183   :  { %v739_v22 = vsel %vm713_vm2, %v738_v25, %v737_v2 }
 0x184   :  { %v1211_v9 = vpop.permute.xlu0 %1210  ;;  %741 = vst.msk [vmem:[%s3165_s9] sm:$0xff] %vm716_vm8, %v739_v22  ;;  %s1456_s9 = sshll.u32 %s1671_s8, 4  ;;  %s1457_s9 = int_to_ptr.vmem [resolvable:$true] %s1456_s9 }
 0x185   :  { %v1233_v29 = vsub.f32 %v2858_v39, %v1211_v9  ;;  %v1308_v48 = vsub.f32 %v3263_v49, %v1211_v9  ;;  %v1354_v39 = vsub.f32 %v2949_v16, %v2134_v32  ;;  %v3267_v49 = vld [vmem:[#allocation19_spill] sm:$0xff]  ;;  %v1337_v32 = vrot.slane %v2996_v58, 4 }
 0x186   :  { %v1473_v16 = vadd.f32 -0.9189385, %v968_v14 }
 0x187   :  { %v1480_v56 = vadd.f32 -0.9189385, %v1233_v29  ;;  %v1488_v34 = vadd.f32 -0.9189385, %v1308_v48  ;;  %v949_v47 = vpop.permute.xlu1 %948  ;;  %v1497_v29 = vadd.f32 -0.9189385, %v1383_v17  ;;  %v1362_v17 = vmul.f32 %v1354_v39, %v2831_v0 }
 0x188   :  { %v969_v9 = vsub.f32 %v913_v46, %v949_v47  ;;  %v1384_v23 = vsub.f32 %v3267_v49, %v949_v47 }
 0x189   :  { %v1256_v10 = vrot.slane %v1480_v56, 7  ;;  %v1331_v40 = vrot.slane %v1488_v34, 7  ;;  %v1407_v14 = vrot.slane %v1497_v29, 6  ;;  %v1370_v29 = vmul.f32 %v1362_v17, %v1362_v17 }
 0x18a   :  { %v1474_v46 = vadd.f32 -0.9189385, %v969_v9  ;;  %v1498_v51 = vadd.f32 -0.9189385, %v1384_v23  ;;  %v3274_v9 = vld [vmem:[#allocation16_spill] sm:$0xff] }
 0x18b   :  { %v1257_v38 = vsel %vm695_vm12, %v1256_v10, %v2842_v11  ;;  %v1332_v8 = vsel %vm695_vm12, %v1331_v40, %v2952_v60  ;;  %v3268_v60 = vld [vmem:[#allocation15_spill] sm:$0xff]  ;;  %v3058_v40 = vadd.f32 -0.9189385, %v1236_v4  ;;  %v3275_v49 = vrot.slane %v3274_v9, 7 }
 0x18c   :  { %v943_v19 = vpop.permute.xlu0 %942  ;;  %v3046_v48 = vsel %vm698_vm6, %v1258_v62, %v1257_v38  ;;  %v3051_v11 = vsel %vm698_vm6, %v1333_v3, %v1332_v8  ;;  %v1288_v10 = vmul.f32 %v1280_v5, %v3268_v60  ;;  %v992_v3 = vrot.slane %v1473_v16, 6  ;;  %v3278_v60 = vld [vmem:[#allocation12_spill] sm:$0xff] }
 0x18d   :  { %v966_v25 = vsub.f32 %v3269_v43, %v943_v19  ;;  %v1381_v24 = vsub.f32 %v2945_v31, %v943_v19  ;;  %v994_v34 = vrot.slane %v1474_v46, 5  ;;  %v1409_v4 = vrot.slane %v1498_v51, 5 }
 0x18e   :  { %v1296_v39 = vmul.f32 %v1288_v10, %v1288_v10  ;;  %v1290_v38 = vmul.f32 %v1282_v1, %v2957_v18  ;;  %v1151_v19 = vsel %vm3062_vm9, %v3277_v20, %v3276_v27  ;;  %v1378_v45 = vmul.f32 -0.5, %v1370_v29 }
 0x18f   :  { %v1471_v5 = vadd.f32 -0.9189385, %v966_v25  ;;  %v1495_v56 = vadd.f32 -0.9189385, %v1381_v24  ;;  %v951_v47 = vpop.permute.xlu1 %950 }
 0x190   :  { %v970_v57 = vsub.f32 %v3005_v41, %v951_v47  ;;  %v1385_v0 = vsub.f32 %v2998_v63, %v951_v47 }
 0x191   :  { %v991_v2 = vsel %vm695_vm12, %v990_v12, %v1471_v5  ;;  %v1406_v23 = vsel %vm695_vm12, %v3275_v49, %v1495_v56  ;;  %vm897_vm12 = vcmp.eq.f32.partialorder %v896_v30, 8.507059e+37  ;;  %v1304_v30 = vmul.f32 -0.5, %v1296_v39 }
 0x192   :  { %v993_v41 = vsel %vm698_vm6, %v992_v3, %v991_v2  ;;  %v1408_v63 = vsel %vm698_vm6, %v1407_v14, %v1406_v23  ;;  %v1475_v22 = vadd.f32 -0.9189385, %v970_v57  ;;  %v1499_v16 = vadd.f32 -0.9189385, %v1385_v0 }
 0x193   :  { %v995_v12 = vsel %vm701_vm7, %v994_v34, %v993_v41  ;;  %v1410_v54 = vsel %vm701_vm7, %v1409_v4, %v1408_v63  ;;  %v900_v10 = vsel %vm897_vm12, %v3278_v60, %v895_v35  ;;  %v1298_v14 = vmul.f32 %v1290_v38, %v1290_v38  ;;  %v1223_v63 = vpop.permute.xlu2 %1222 }
 0x194   :  { %v1215_v8 = vpop.permute.xlu0 %1214  ;;  %v996_v46 = vrot.slane %v1475_v22, 4  ;;  %v1411_v51 = vrot.slane %v1499_v16, 4  ;;  %v901_v25 = vmul.f32 %v900_v10, %v749_v26  ;;  %v3279_v56 = vsub.f32 %v2593_v6, %v3261_v44 }
 0x195   :  { %v1235_v13 = vsub.f32 %v2994_v7, %v1215_v8  ;;  %v1310_v28 = vsub.f32 %v2837_v21, %v1215_v8  ;;  %v1262_v7 = vrot.slane %v3058_v40, 4  ;;  %v1167_v21 = vmul.f32 %v2957_v18, %v1015_v33 }
 0x196   :  { %v997_v43 = vsel %vm704_vm10, %v996_v46, %v995_v12  ;;  %v1412_v36 = vsel %vm704_vm10, %v1411_v51, %v1410_v54  ;;  %v1289_v34 = vmul.f32 %v3279_v56, %v1151_v19  ;;  %v3280_v18 = vsub.f32 %v2915_v53, %v3261_v44 }
 0x197   :  { %v1482_v59 = vadd.f32 -0.9189385, %v1235_v13  ;;  %v1490_v24 = vadd.f32 -0.9189385, %v1310_v28  ;;  %v1219_v1 = vpop.permute.xlu1 %1218  ;;  %v909_v31 = vmul.f32 %v901_v25, %v901_v25  ;;  %v1175_v57 = vmul.f32 %v1167_v21, %v1167_v21 }
 0x198   :  { %v1237_v62 = vsub.f32 %v2981_v50, %v1219_v1  ;;  %v1312_v3 = vsub.f32 %v1304_v30, %v1219_v1  ;;  %v1152_v47 = vmul.f32 %v1151_v19, %v3280_v18  ;;  %v1364_v0 = vmul.f32 %v1356_v55, %v900_v10 }
 0x199   :  { %v1260_v17 = vrot.slane %v1482_v59, 5  ;;  %v1335_v5 = vrot.slane %v1490_v24, 5  ;;  %v1477_v53 = vadd.f32 -0.9189385, %v972_v42  ;;  %v3281_v44 = vsub.f32 %v2903_v61, %v2917_v15 }
 0x19a   :  { %v1484_v40 = vadd.f32 -0.9189385, %v1237_v62  ;;  %v1492_v4 = vadd.f32 -0.9189385, %v1312_v3  ;;  %v1306_v35 = vmul.f32 -0.5, %v1298_v14  ;;  %v1297_v16 = vmul.f32 %v1289_v34, %v1289_v34 }
 0x19b   :  { %v1261_v37 = vsel %vm701_vm7, %v1260_v17, %v3046_v48  ;;  %v1336_v50 = vsel %vm701_vm7, %v1335_v5, %v3051_v11  ;;  %v1501_v49 = vadd.f32 -0.9189385, %v3281_v44  ;;  %v917_v11 = vmul.f32 -0.5, %v909_v31 }
 0x19c   :  { %v953_v39 = vpop.permute.xlu0 %952  ;;  %v1264_v26 = vrot.slane %v1484_v40, 3  ;;  %v1339_v2 = vrot.slane %v1492_v4, 3  ;;  %v1338_v6 = vsel %vm704_vm10, %v1337_v32, %v1336_v50  ;;  %v1263_v9 = vsel %vm704_vm10, %v1262_v7, %v1261_v37 }
 0x19d   :  { %v971_v48 = vsub.f32 %v2971_v52, %v953_v39  ;;  %v1386_v23 = vsub.f32 %v1378_v45, %v953_v39  ;;  %v1174_v32 = vmul.f32 %v1152_v47, %v1152_v47  ;;  %v1183_v12 = vmul.f32 -0.5, %v1175_v57 }
 0x19e   :  { %v1340_v55 = vsel %vm707_vm13, %v1339_v2, %v1338_v6  ;;  %v1265_v41 = vsel %vm707_vm13, %v1264_v26, %v1263_v9  ;;  %v1372_v54 = vmul.f32 %v1364_v0, %v1364_v0  ;;  %v1415_v61 = vrot.slane %v1501_v49, 2 }
 0x19f   :  { %v1476_v58 = vadd.f32 -0.9189385, %v971_v48  ;;  %v1500_v22 = vadd.f32 -0.9189385, %v1386_v23  ;;  %v957_v33 = vpop.permute.xlu1 %956  ;;  %v1000_v52 = vrot.slane %v1477_v53, 2  ;;  %v1239_v8 = vsub.f32 %v1183_v12, %v1223_v63 }
 0x1a0   :  { %v973_v29 = vsub.f32 %v917_v11, %v957_v33  ;;  %v1314_v46 = vsub.f32 %v1306_v35, %v1223_v63  ;;  %v1182_v13 = vmul.f32 -0.5, %v1174_v32  ;;  %v1305_v28 = vmul.f32 -0.5, %v1297_v16 }
 0x1a1   :  { %v998_v15 = vrot.slane %v1476_v58, 3  ;;  %v1413_v38 = vrot.slane %v1500_v22, 3  ;;  %v1380_v60 = vmul.f32 -0.5, %v1372_v54  ;;  %v1486_v59 = vadd.f32 -0.9189385, %v1239_v8 }
 0x1a2   :  { %v1478_v51 = vadd.f32 -0.9189385, %v973_v29  ;;  %v1494_v24 = vadd.f32 -0.9189385, %v1314_v46  ;;  %vm1425_vm6 = vcmask 7168   ;;  %vm1445_vm10 = vcmask 0  }
 0x1a3   :  { %v999_v27 = vsel %vm707_vm13, %v998_v15, %v997_v43  ;;  %v1414_v20 = vsel %vm707_vm13, %v1413_v38, %v1412_v36  ;;  %v1388_v1 = vsub.f32 %v1380_v60, %v957_v33  ;;  %v1268_v14 = vrot.slane %v1486_v59, 1 }
 0x1a4   :  { %v1221_v19 = vpop.permute.xlu0 %1220  ;;  %v1002_v10 = vrot.slane %v1478_v51, 1  ;;  %v1001_v30 = vsel %vm710_vm1, %v1000_v52, %v999_v27  ;;  %v1416_v25 = vsel %vm710_vm1, %v1415_v61, %v1414_v20  ;;  %v1343_v17 = vrot.slane %v1494_v24, 1 }
 0x1a5   :  { %v1238_v7 = vsub.f32 %v1182_v13, %v1221_v19  ;;  %v1313_v21 = vsub.f32 %v1305_v28, %v1221_v19  ;;  %v1502_v5 = vadd.f32 -0.9189385, %v1388_v1 }
 0x1a6   :  { %v1003_v42 = vsel %vm713_vm2, %v1002_v10, %v1001_v30 }
 0x1a7   :  { %v1485_v45 = vadd.f32 -0.9189385, %v1238_v7  ;;  %v1493_v62 = vadd.f32 -0.9189385, %v1313_v21  ;;  %v1005_v43 = vsel %vm716_vm8, %v1003_v42, 0.0  ;;  %v1417_v31 = vrot.slane %v1502_v5, 1 }
 0x1a8   :  { %1006 = vadd.xlane.f32.xlu0 %v1005_v43 }
 0x1a9   :  { %v1266_v36 = vrot.slane %v1485_v45, 2  ;;  %v1341_v3 = vrot.slane %v1493_v62, 2  ;;  %v1418_v57 = vsel %vm713_vm2, %v1417_v31, %v1416_v25 }
 0x1aa   :  { %v1420_v37 = vsel %vm716_vm8, %v1418_v57, 0.0 }
 0x1ab   :  { %v1342_v56 = vsel %vm710_vm1, %v1341_v3, %v1340_v55  ;;  %v1267_v34 = vsel %vm710_vm1, %v1266_v36, %v1265_v41  ;;  %v1670_v41 = vmov 16.0  }
 0x1ac   :  { %v1344_v40 = vsel %vm713_vm2, %v1343_v17, %v1342_v56  ;;  %v1269_v4 = vsel %vm713_vm2, %v1268_v14, %v1267_v34  ;;  %1640 = vrcp.f32 %v1670_v41 }
 0x1ad   :  { %v1346_v18 = vsel %vm716_vm8, %v1344_v40, 0.0  ;;  %v1271_v47 = vsel %vm716_vm8, %v1269_v4, 0.0 }
 0x1ae   :  { %1347 = vadd.xlane.f32.xlu2 %v1346_v18  ;;  %1272 = vadd.xlane.f32.xlu1 %v1271_v47 }
 0x1b2   :  { %v1641_v63 = vpop.eup %1640 }
 0x1b3   :  { %v1438_v58 = vmul.f32 16.0, %v1641_v63  ;;  %vm1442_vm7 = vweird.f32 %v1641_v63 }
 0x1b5   :  { %v1439_v22 = vsub.f32 1.0, %v1438_v58 }
 0x1b6   :  { %1421 = vadd.xlane.f32.xlu2 %v1420_v37 }
 0x1b7   :  { %v1440_v32 = vmul.f32 %v1641_v63, %v1439_v22 }
 0x1b9   :  { %v1441_v16 = vadd.f32 %v1641_v63, %v1440_v32 }
 0x1bb   :  { %v1443_v33 = vsel %vm1442_vm7, %v1641_v63, %v1441_v16 }
 0x21b   :  { %v1007_v0 = vpop.xlane.xlu0 %1006 }
 0x221   :  { %v1348_v50 = vpop.xlane.xlu2 %1347  ;;  %v1273_v39 = vpop.xlane.xlu1 %1272 }
 0x222   :  { %v1274_v2 = vsub.f32 %v1007_v0, %v1273_v39 }
 0x229   :  { %v1422_v26 = vpop.xlane.xlu2 %1421 }
 0x22a   :  { %v1423_v6 = vsub.f32 %v1348_v50, %v1422_v26 }
 0x22c   :  { %v1424_v9 = vadd.f32 %v1423_v6, %v1274_v2 }
 0x22e   :  { %v1426_v53 = vsel %vm1425_vm6, %v1424_v9, 0.0 }
 0x22f   :  { %1427 = vadd.xlane.f32.xlu0 %v1426_v53 }
 0x2a2   :  { %v1428_v44 = vpop.xlane.xlu0 %1427 }
 0x2a3   :  { %v1429_v49 = vrot.slane %v1428_v44, 4 }
 0x2a5   :  { %v1430_v48 = vadd.f32 %v1429_v49, %v1428_v44 }
 0x2a7   :  { %v1431_v23 = vrot.slane %v1430_v48, 2 }
 0x2a9   :  { %v1432_v35 = vadd.f32 %v1431_v23, %v1430_v48 }
 0x2ab   :  { %v1433_v11 = vrot.slane %v1432_v35, 1 }
 0x2ad   :  { %v1434_v55 = vadd.f32 %v1433_v11, %v1432_v35 }
 0x2af   :  { %1503 = vpush %v1434_v55 }
 0x2e0   :  { %s1504_s4 = spop %1503 }
 0x2e1   :  { %v1436_v12 = vstv %s1504_s4 }
 0x2e2   :  { %v1444_v54 = vmul.f32 %v1443_v33, %v1436_v12 }
 0x2e4   :  { %1446 = vst.msk [vmem:[#allocation4] sm:$0x1] %vm1445_vm10, %v1444_v54 }
 0x2e5   :  { %1461 = dma.vmem_to_hbm [thread:$0]  %s1457_s9, 16, %s1459_s18, [#allocation5]  }
 0x2e6   :  { %1666 = dma.done.wait [#allocation5], 16  }
 0x2e7   :  { %1667 = vsyncadd [#allocation5], 4294967280 }
 0x2e8   :  { %1470 = vsyncpa [#allocation5], 1 }

</bundles_post_ra>
